<compile_context>
chip_gen: v7x
topology: tpu7x:2x2x1
jax: 0.10.0
libtpu: 0.0.40
codegen_flags: <defaults>
</compile_context>

<pallas_src>
import functools

import jax
import jax.numpy as jnp
from jax.experimental import pallas as pl
from jax.experimental.pallas import tpu as pltpu


def _proj_embed_kernel(x_ref, w_ref, pos_ref, time_ref, o_ref):
    """out[:, f, :] = x[f] @ W + pos + time[f]   for every frame f of this tile.

    x_ref   : (F, tp, K)  patchified pixel rows (one patch tile, all frames)
    w_ref   : (K, D)      projection weight, pre-transposed (VMEM-resident)
    pos_ref : (tp, D)     position embeddings for this patch tile
    time_ref: (F, D)      time embeddings + conv bias (VMEM-resident)
    o_ref   : (tp, F, D)
    """
    w = w_ref[...]
    pos = pos_ref[...].astype(jnp.float32)
    t_all = time_ref[...].astype(jnp.float32)
    num_frames = x_ref.shape[0]
    for f in range(num_frames):                      # static unroll; F is small
        acc = jax.lax.dot_general(
            x_ref[f], w,
            dimension_numbers=(((1,), (0,)), ((), ())),   # x @ W, contract K on dim 0
            preferred_element_type=jnp.float32,
        )
        acc = acc + pos + t_all[f : f + 1, :]
        o_ref[:, f, :] = acc.astype(o_ref.dtype)


def _pick_patch_tile(num_patches: int, target: int) -> int:
    """Largest patch tile <= target dividing P while keeping (8,128) legality."""
    if num_patches <= target:
        return num_patches                 # full-extent block is always legal
    for t in range(target, 7, -1):
        if num_patches % t == 0 and t % 8 == 0:
            return t
    # TODO(synk): when P has no multiple-of-8 divisor <= target (e.g. P=729), this
    # falls back to one full-P block; a cdiv grid + masked last tile (or wrapper pad)
    # would be needed to keep tiles small under v7x's 64 MiB VMEM.
    return num_patches


@functools.partial(
    jax.jit,
    static_argnames=("attention_type", "tp_target", "compute_dtype",
                     "single_buffer_residents"),
)
def _forward(
    pixel_values,          # (B, F, C, H, W)
    conv_weight,           # (D, C, ph, pw)  -- PyTorch Conv2d layout
    conv_bias,             # (D,)
    position_embeddings,   # (1, P, D)
    time_embeddings=None,  # (1, T, D) or None (space_only)
    *,
    attention_type: str = "divided_space_time",
    tp_target: int = 512,          # v6e/v5e: larger tiles amortize step overhead;
                                   # lower (~256-384) on v7x's 64 MiB VMEM.
    compute_dtype=None,            # e.g. jnp.bfloat16 for MXU-native compute
    single_buffer_residents: bool = True,
):
    B, F, C, H, W = pixel_values.shape
    D, Cw, ph, pw = conv_weight.shape
    assert C == Cw
    gh, gw = H // ph, W // pw
    P = gh * gw
    K = C * ph * pw

    pos = position_embeddings.reshape(-1, D)          # (N, D) f32 params
    N = pos.shape[0]
    # TODO(synk): interpolate_pos_encoding (bicubic + antialias resize) branch is not
    # implemented; only the identity path (npatch == N, square image) is supported.
    assert P == N and H == W, "pos-embedding interpolation path not implemented"

    # Patchify with a single channel-interleave transpose.  The (patch, frame)
    # interleave of the module's final layout is handled entirely by the output
    # index_map (output is logically (B, P, F, D)), so the final reshape to
    # (B, P*F, D) is free (no second transpose, no post-kernel copy).
    # TODO(synk): this one transpose is still an XLA HBM round trip over the pixels;
    # removing it entirely needs an in-kernel manual DMA gather (memory_space=pl.ANY).
    x = pixel_values.reshape(B, F, C, gh, ph, gw, pw)
    x = x.transpose(0, 1, 3, 5, 2, 4, 6).reshape(B, F, P, K)   # (B, F, P, K)

    # One-time weight transpose to (K, D): the kernel contracts K on the RHS dim 0,
    # so the VMEM-resident weight needs no per-tile layout change.  (In production,
    # do this once at parameter-load time.)
    w2 = conv_weight.reshape(D, K).T                   # (K, D)
    bias = conv_bias.reshape(1, D)

    if attention_type != "space_only":
        t = time_embeddings.reshape(-1, D)             # (T, D)
        T = t.shape[0]
        if F != T:
            if F < T:
                t = t[:F]
            else:
                # matches nn.functional.interpolate(mode='nearest') over time
                t = t[(jnp.arange(F) * T) // F]
        time_b = t + bias                              # fold conv bias into per-frame add
        G, F_in = B, F
        x_in = x                                       # (B, F, P, K)
        out_logical = (B, P, F, D)
    else:
        time_b = bias                                  # just the bias, no time embedding
        G, F_in = B * F, 1
        x_in = x.reshape(B * F, 1, P, K)
        out_logical = (B * F, P, 1, D)

    # TODO(synk): pos_drop / time_drop are identity (eval mode / dropout prob 0.0).

    out_dtype = pixel_values.dtype
    if compute_dtype is not None:
        x_in = x_in.astype(compute_dtype)
        w2 = w2.astype(compute_dtype)
        # pos / time_b stay in param dtype; they're tiny and added in f32 in-kernel.

    tp = _pick_patch_tile(P, tp_target)
    grid = (G, P // tp)

    # VMEM budget: double-buffered x / pos / out streams + resident weight & time.
    bytes_x = 2 * F_in * tp * K * x_in.dtype.itemsize
    bytes_o = 2 * tp * F_in * D * jnp.dtype(out_dtype).itemsize
    bytes_p = 2 * tp * D * pos.dtype.itemsize
    n_res = 1 if single_buffer_residents else 2
    bytes_r = n_res * (K * D * w2.dtype.itemsize + F_in * D * time_b.dtype.itemsize)
    vmem_limit = int(min(128 * 1024 * 1024,
                         max(32 * 1024 * 1024,
                             2 * (bytes_x + bytes_o + bytes_p + bytes_r))))

    def _resident_spec(block_shape, index_map):
        # Constant index_map => the tile never changes; double buffering it is waste.
        if single_buffer_residents:
            return pl.BlockSpec(block_shape, index_map,
                                pipeline_mode=pl.Buffered(buffer_count=1))
        return pl.BlockSpec(block_shape, index_map)

    out = pl.pallas_call(
        _proj_embed_kernel,
        out_shape=jax.ShapeDtypeStruct(out_logical, out_dtype),
        grid_spec=pltpu.PrefetchScalarGridSpec(
            num_scalar_prefetch=0,
            grid=grid,
            in_specs=[
                pl.BlockSpec((None, F_in, tp, K), lambda g, p: (g, 0, p, 0)),  # pixels
                _resident_spec((K, D), lambda g, p: (0, 0)),                   # weight
                pl.BlockSpec((tp, D), lambda g, p: (p, 0)),                    # pos tile
                _resident_spec((F_in, D), lambda g, p: (0, 0)),                # time+bias
            ],
            out_specs=pl.BlockSpec((None, tp, F_in, D), lambda g, p: (g, p, 0, 0)),
        ),
        compiler_params=pltpu.CompilerParams(
            dimension_semantics=("parallel", "parallel"),
            vmem_limit_bytes=vmem_limit,
        ),
    )(x_in, w2, pos, time_b)

    if attention_type != "space_only":
        return out.reshape(B, P * F, D)
    return out.reshape(B * F, P, D)


def timesformer_embeddings_siglip(pixel_values, conv_weight, conv_bias,
                                  position_embeddings, time_embeddings=None, **kwargs):
    """Entry point with a capability probe: try single-buffered resident specs
    (pl.Buffered(1) on the constant-index weight/time — saves VMEM on v7x); if this
    pallas build rejects pipeline_mode on the main pipeline, fall back to the default
    double-buffered specs (identical results)."""
    try:
        return _forward(pixel_values, conv_weight, conv_bias, position_embeddings,
                        time_embeddings, single_buffer_residents=True, **kwargs)
    except Exception:  # capability fallback only; re-raises genuine errors below
        return _forward(pixel_values, conv_weight, conv_bias, position_embeddings,
                        time_embeddings, single_buffer_residents=False, **kwargs)


def _reference(pixel_values, conv_weight, conv_bias, position_embeddings,
               time_embeddings=None, attention_type="divided_space_time"):
    """Pure-JAX replica of the PyTorch forward (eval mode)."""
    B, F, C, H, W = pixel_values.shape
    D = conv_weight.shape[0]
    ph, pw = conv_weight.shape[2], conv_weight.shape[3]
    x = pixel_values.reshape(B * F, C, H, W)
    emb = jax.lax.conv_general_dilated(
        x, conv_weight, window_strides=(ph, pw), padding="VALID",
        dimension_numbers=("NCHW", "OIHW", "NCHW"),
        precision=jax.lax.Precision.HIGHEST)
    emb = emb + conv_bias.reshape(1, D, 1, 1)
    gh, gw = emb.shape[2], emb.shape[3]
    P = gh * gw
    emb = emb.reshape(B * F, D, P).transpose(0, 2, 1)      # (B*F, P, D)
    emb = emb + position_embeddings                         # (1, P, D)
    if attention_type != "space_only":
        emb = emb.reshape(B, F, P, D).transpose(0, 2, 1, 3).reshape(B * P, F, D)
        T = time_embeddings.shape[1]
        if F != T:
            if F < T:
                t = time_embeddings[:, :F, :]
            else:
                t = time_embeddings[:, (jnp.arange(F) * T) // F, :]
        else:
            t = time_embeddings
        emb = emb + t
        emb = emb.reshape(B, P * F, D)
    return emb


if __name__ == "__main__":
    # Small config consistent with the module:
    # batch=2, frames=8, channels=3, image 32x32, patch 8 -> 16 patches, hidden=32.
    # NOTE: D=32 (< 128 lanes) is only for the correctness check; do not benchmark
    # at this width — real SigLIP D (768/1152) is lane-dense.
    batch, num_frames, channels = 2, 8, 3
    image_size, patch_size, hidden = 32, 8, 32
    grid_hw = image_size // patch_size
    num_patches = grid_hw * grid_hw

    key = jax.random.PRNGKey(0)
    k_px, k_w, k_b, k_pos, k_time = jax.random.split(key, 5)

    pixel_values = jax.random.normal(
        k_px, (batch, num_frames, channels, image_size, image_size), dtype=jnp.float32)
    conv_weight = jax.random.normal(
        k_w, (hidden, channels, patch_size, patch_size), dtype=jnp.float32) * 0.02
    conv_bias = jax.random.normal(k_b, (hidden,), dtype=jnp.float32) * 0.02
    position_embeddings = jax.random.normal(
        k_pos, (1, num_patches, hidden), dtype=jnp.float32) * 0.02
    time_embeddings = jax.random.normal(
        k_time, (1, num_frames, hidden), dtype=jnp.float32) * 0.02

    ref = _reference(pixel_values, conv_weight, conv_bias,
                     position_embeddings, time_embeddings)

    # f32 path (strict check).
    out = timesformer_embeddings_siglip(
        pixel_values, conv_weight, conv_bias, position_embeddings, time_embeddings)
    jax.block_until_ready(out)
    assert out.shape == (batch, num_patches * num_frames, hidden), out.shape
    err = float(jnp.max(jnp.abs(out - ref)))
    assert jnp.allclose(out, ref, atol=2e-3, rtol=2e-3), err

    # bf16 compute path (MXU-native on v5e/v6e/v7x; halves the dominant HBM streams).
    out_bf16 = timesformer_embeddings_siglip(
        pixel_values, conv_weight, conv_bias, position_embeddings, time_embeddings,
        compute_dtype=jnp.bfloat16)
    jax.block_until_ready(out_bf16)
    err_bf16 = float(jnp.max(jnp.abs(out_bf16 - ref)))
    assert err_bf16 < 2e-2, err_bf16

    print("KERNEL_OK")
</pallas_src>

<mosaic_0001>
module attributes {stable_mosaic.version = 11 : i64} {
  func.func @_proj_embed_kernel(%arg0: i32, %arg1: i32, %arg2: memref<1x8x16x192xf32, #tpu.memory_space<vmem>>, %arg3: memref<192x32xf32, #tpu.memory_space<vmem>>, %arg4: memref<16x32xf32, #tpu.memory_space<vmem>>, %arg5: memref<8x32xf32, #tpu.memory_space<vmem>>, %arg6: memref<1x16x8x32xf32, #tpu.memory_space<vmem>>) attributes {dimension_semantics = [#tpu.dimension_semantics<parallel>, #tpu.dimension_semantics<parallel>], iteration_bounds = array<i64: 2, 1>, scalar_prefetch = 0 : i64, scratch_operands = 0 : i64, tpu.core_type = #tpu.core_type<tc>, window_params = [{transform_indices = @transform_0, window_bounds = array<i64: 1, 8, 16, 192>}, {pipeline_mode = #tpu.pipeline_mode<synchronous>, transform_indices = @transform_1, window_bounds = array<i64: 192, 32>}, {transform_indices = @transform_2, window_bounds = array<i64: 16, 32>}, {pipeline_mode = #tpu.pipeline_mode<synchronous>, transform_indices = @transform_3, window_bounds = array<i64: 8, 32>}, {transform_indices = @transform_4, window_bounds = array<i64: 1, 16, 8, 32>}]} {
    %c0 = arith.constant 0 : index
    %c0_0 = arith.constant 0 : index
    %0 = vector.load %arg3[%c0, %c0_0] : memref<192x32xf32, #tpu.memory_space<vmem>>, vector<192x32xf32>
    %c0_1 = arith.constant 0 : index
    %c0_2 = arith.constant 0 : index
    %1 = vector.load %arg4[%c0_1, %c0_2] : memref<16x32xf32, #tpu.memory_space<vmem>>, vector<16x32xf32>
    %c0_3 = arith.constant 0 : index
    %c0_4 = arith.constant 0 : index
    %2 = vector.load %arg5[%c0_3, %c0_4] : memref<8x32xf32, #tpu.memory_space<vmem>>, vector<8x32xf32>
    %c0_5 = arith.constant 0 : index
    %c0_6 = arith.constant 0 : index
    %c0_7 = arith.constant 0 : index
    %c0_8 = arith.constant 0 : index
    %3 = vector.load %arg2[%c0_5, %c0_6, %c0_7, %c0_8] : memref<1x8x16x192xf32, #tpu.memory_space<vmem>>, vector<1x1x16x192xf32>
    %4 = vector.shape_cast %3 : vector<1x1x16x192xf32> to vector<16x192xf32>
    %cst = arith.constant dense<0.000000e+00> : vector<16x32xf32>
    %5 = tpu.matmul %4, %0, %cst {dimension_numbers = #tpu.dot_dimension_numbers<[1], [0], [0], [1], [0, 0, 1, 1], [], []>} : vector<16x192xf32>, vector<192x32xf32>, vector<16x32xf32> -> vector<16x32xf32>
    %6 = arith.addf %5, %1 : vector<16x32xf32>
    %7 = vector.extract_strided_slice %2 {offsets = [0, 0], sizes = [1, 32], strides = [1, 1]} : vector<8x32xf32> to vector<1x32xf32>
    %8 = vector.broadcast %7 : vector<1x32xf32> to vector<16x32xf32>
    %9 = arith.addf %6, %8 : vector<16x32xf32>
    %c0_9 = arith.constant 0 : index
    %c0_10 = arith.constant 0 : index
    %c0_11 = arith.constant 0 : index
    %c0_12 = arith.constant 0 : index
    %10 = vector.load %arg6[%c0_9, %c0_10, %c0_11, %c0_12] : memref<1x16x8x32xf32, #tpu.memory_space<vmem>>, vector<1x16x1x32xf32>
    %11 = vector.shape_cast %10 : vector<1x16x1x32xf32> to vector<16x32xf32>
    %12 = vector.shape_cast %9 : vector<16x32xf32> to vector<1x16x1x32xf32>
    tpu.vector_store %arg6[%c0_9, %c0_10, %c0_11, %c0_12], %12 {strides = array<i32>} : memref<1x16x8x32xf32, #tpu.memory_space<vmem>>, vector<1x16x1x32xf32>,
    %c0_13 = arith.constant 0 : index
    %c1 = arith.constant 1 : index
    %c0_14 = arith.constant 0 : index
    %c0_15 = arith.constant 0 : index
    %13 = vector.load %arg2[%c0_13, %c1, %c0_14, %c0_15] : memref<1x8x16x192xf32, #tpu.memory_space<vmem>>, vector<1x1x16x192xf32>
    %14 = vector.shape_cast %13 : vector<1x1x16x192xf32> to vector<16x192xf32>
    %cst_16 = arith.constant dense<0.000000e+00> : vector<16x32xf32>
    %15 = tpu.matmul %14, %0, %cst_16 {dimension_numbers = #tpu.dot_dimension_numbers<[1], [0], [0], [1], [0, 0, 1, 1], [], []>} : vector<16x192xf32>, vector<192x32xf32>, vector<16x32xf32> -> vector<16x32xf32>
    %16 = arith.addf %15, %1 : vector<16x32xf32>
    %17 = vector.extract_strided_slice %2 {offsets = [1, 0], sizes = [1, 32], strides = [1, 1]} : vector<8x32xf32> to vector<1x32xf32>
    %18 = vector.broadcast %17 : vector<1x32xf32> to vector<16x32xf32>
    %19 = arith.addf %16, %18 : vector<16x32xf32>
    %c0_17 = arith.constant 0 : index
    %c0_18 = arith.constant 0 : index
    %c1_19 = arith.constant 1 : index
    %c0_20 = arith.constant 0 : index
    %20 = vector.load %arg6[%c0_17, %c0_18, %c1_19, %c0_20] : memref<1x16x8x32xf32, #tpu.memory_space<vmem>>, vector<1x16x1x32xf32>
    %21 = vector.shape_cast %20 : vector<1x16x1x32xf32> to vector<16x32xf32>
    %22 = vector.shape_cast %19 : vector<16x32xf32> to vector<1x16x1x32xf32>
    tpu.vector_store %arg6[%c0_17, %c0_18, %c1_19, %c0_20], %22 {strides = array<i32>} : memref<1x16x8x32xf32, #tpu.memory_space<vmem>>, vector<1x16x1x32xf32>,
    %c0_21 = arith.constant 0 : index
    %c2 = arith.constant 2 : index
    %c0_22 = arith.constant 0 : index
    %c0_23 = arith.constant 0 : index
    %23 = vector.load %arg2[%c0_21, %c2, %c0_22, %c0_23] : memref<1x8x16x192xf32, #tpu.memory_space<vmem>>, vector<1x1x16x192xf32>
    %24 = vector.shape_cast %23 : vector<1x1x16x192xf32> to vector<16x192xf32>
    %cst_24 = arith.constant dense<0.000000e+00> : vector<16x32xf32>
    %25 = tpu.matmul %24, %0, %cst_24 {dimension_numbers = #tpu.dot_dimension_numbers<[1], [0], [0], [1], [0, 0, 1, 1], [], []>} : vector<16x192xf32>, vector<192x32xf32>, vector<16x32xf32> -> vector<16x32xf32>
    %26 = arith.addf %25, %1 : vector<16x32xf32>
    %27 = vector.extract_strided_slice %2 {offsets = [2, 0], sizes = [1, 32], strides = [1, 1]} : vector<8x32xf32> to vector<1x32xf32>
    %28 = vector.broadcast %27 : vector<1x32xf32> to vector<16x32xf32>
    %29 = arith.addf %26, %28 : vector<16x32xf32>
    %c0_25 = arith.constant 0 : index
    %c0_26 = arith.constant 0 : index
    %c2_27 = arith.constant 2 : index
    %c0_28 = arith.constant 0 : index
    %30 = vector.load %arg6[%c0_25, %c0_26, %c2_27, %c0_28] : memref<1x16x8x32xf32, #tpu.memory_space<vmem>>, vector<1x16x1x32xf32>
    %31 = vector.shape_cast %30 : vector<1x16x1x32xf32> to vector<16x32xf32>
    %32 = vector.shape_cast %29 : vector<16x32xf32> to vector<1x16x1x32xf32>
    tpu.vector_store %arg6[%c0_25, %c0_26, %c2_27, %c0_28], %32 {strides = array<i32>} : memref<1x16x8x32xf32, #tpu.memory_space<vmem>>, vector<1x16x1x32xf32>,
    %c0_29 = arith.constant 0 : index
    %c3 = arith.constant 3 : index
    %c0_30 = arith.constant 0 : index
    %c0_31 = arith.constant 0 : index
    %33 = vector.load %arg2[%c0_29, %c3, %c0_30, %c0_31] : memref<1x8x16x192xf32, #tpu.memory_space<vmem>>, vector<1x1x16x192xf32>
    %34 = vector.shape_cast %33 : vector<1x1x16x192xf32> to vector<16x192xf32>
    %cst_32 = arith.constant dense<0.000000e+00> : vector<16x32xf32>
    %35 = tpu.matmul %34, %0, %cst_32 {dimension_numbers = #tpu.dot_dimension_numbers<[1], [0], [0], [1], [0, 0, 1, 1], [], []>} : vector<16x192xf32>, vector<192x32xf32>, vector<16x32xf32> -> vector<16x32xf32>
    %36 = arith.addf %35, %1 : vector<16x32xf32>
    %37 = vector.extract_strided_slice %2 {offsets = [3, 0], sizes = [1, 32], strides = [1, 1]} : vector<8x32xf32> to vector<1x32xf32>
    %38 = vector.broadcast %37 : vector<1x32xf32> to vector<16x32xf32>
    %39 = arith.addf %36, %38 : vector<16x32xf32>
    %c0_33 = arith.constant 0 : index
    %c0_34 = arith.constant 0 : index
    %c3_35 = arith.constant 3 : index
    %c0_36 = arith.constant 0 : index
    %40 = vector.load %arg6[%c0_33, %c0_34, %c3_35, %c0_36] : memref<1x16x8x32xf32, #tpu.memory_space<vmem>>, vector<1x16x1x32xf32>
    %41 = vector.shape_cast %40 : vector<1x16x1x32xf32> to vector<16x32xf32>
    %42 = vector.shape_cast %39 : vector<16x32xf32> to vector<1x16x1x32xf32>
    tpu.vector_store %arg6[%c0_33, %c0_34, %c3_35, %c0_36], %42 {strides = array<i32>} : memref<1x16x8x32xf32, #tpu.memory_space<vmem>>, vector<1x16x1x32xf32>,
    %c0_37 = arith.constant 0 : index
    %c4 = arith.constant 4 : index
    %c0_38 = arith.constant 0 : index
    %c0_39 = arith.constant 0 : index
    %43 = vector.load %arg2[%c0_37, %c4, %c0_38, %c0_39] : memref<1x8x16x192xf32, #tpu.memory_space<vmem>>, vector<1x1x16x192xf32>
    %44 = vector.shape_cast %43 : vector<1x1x16x192xf32> to vector<16x192xf32>
    %cst_40 = arith.constant dense<0.000000e+00> : vector<16x32xf32>
    %45 = tpu.matmul %44, %0, %cst_40 {dimension_numbers = #tpu.dot_dimension_numbers<[1], [0], [0], [1], [0, 0, 1, 1], [], []>} : vector<16x192xf32>, vector<192x32xf32>, vector<16x32xf32> -> vector<16x32xf32>
    %46 = arith.addf %45, %1 : vector<16x32xf32>
    %47 = vector.extract_strided_slice %2 {offsets = [4, 0], sizes = [1, 32], strides = [1, 1]} : vector<8x32xf32> to vector<1x32xf32>
    %48 = vector.broadcast %47 : vector<1x32xf32> to vector<16x32xf32>
    %49 = arith.addf %46, %48 : vector<16x32xf32>
    %c0_41 = arith.constant 0 : index
    %c0_42 = arith.constant 0 : index
    %c4_43 = arith.constant 4 : index
    %c0_44 = arith.constant 0 : index
    %50 = vector.load %arg6[%c0_41, %c0_42, %c4_43, %c0_44] : memref<1x16x8x32xf32, #tpu.memory_space<vmem>>, vector<1x16x1x32xf32>
    %51 = vector.shape_cast %50 : vector<1x16x1x32xf32> to vector<16x32xf32>
    %52 = vector.shape_cast %49 : vector<16x32xf32> to vector<1x16x1x32xf32>
    tpu.vector_store %arg6[%c0_41, %c0_42, %c4_43, %c0_44], %52 {strides = array<i32>} : memref<1x16x8x32xf32, #tpu.memory_space<vmem>>, vector<1x16x1x32xf32>,
    %c0_45 = arith.constant 0 : index
    %c5 = arith.constant 5 : index
    %c0_46 = arith.constant 0 : index
    %c0_47 = arith.constant 0 : index
    %53 = vector.load %arg2[%c0_45, %c5, %c0_46, %c0_47] : memref<1x8x16x192xf32, #tpu.memory_space<vmem>>, vector<1x1x16x192xf32>
    %54 = vector.shape_cast %53 : vector<1x1x16x192xf32> to vector<16x192xf32>
    %cst_48 = arith.constant dense<0.000000e+00> : vector<16x32xf32>
    %55 = tpu.matmul %54, %0, %cst_48 {dimension_numbers = #tpu.dot_dimension_numbers<[1], [0], [0], [1], [0, 0, 1, 1], [], []>} : vector<16x192xf32>, vector<192x32xf32>, vector<16x32xf32> -> vector<16x32xf32>
    %56 = arith.addf %55, %1 : vector<16x32xf32>
    %57 = vector.extract_strided_slice %2 {offsets = [5, 0], sizes = [1, 32], strides = [1, 1]} : vector<8x32xf32> to vector<1x32xf32>
    %58 = vector.broadcast %57 : vector<1x32xf32> to vector<16x32xf32>
    %59 = arith.addf %56, %58 : vector<16x32xf32>
    %c0_49 = arith.constant 0 : index
    %c0_50 = arith.constant 0 : index
    %c5_51 = arith.constant 5 : index
    %c0_52 = arith.constant 0 : index
    %60 = vector.load %arg6[%c0_49, %c0_50, %c5_51, %c0_52] : memref<1x16x8x32xf32, #tpu.memory_space<vmem>>, vector<1x16x1x32xf32>
    %61 = vector.shape_cast %60 : vector<1x16x1x32xf32> to vector<16x32xf32>
    %62 = vector.shape_cast %59 : vector<16x32xf32> to vector<1x16x1x32xf32>
    tpu.vector_store %arg6[%c0_49, %c0_50, %c5_51, %c0_52], %62 {strides = array<i32>} : memref<1x16x8x32xf32, #tpu.memory_space<vmem>>, vector<1x16x1x32xf32>,
    %c0_53 = arith.constant 0 : index
    %c6 = arith.constant 6 : index
    %c0_54 = arith.constant 0 : index
    %c0_55 = arith.constant 0 : index
    %63 = vector.load %arg2[%c0_53, %c6, %c0_54, %c0_55] : memref<1x8x16x192xf32, #tpu.memory_space<vmem>>, vector<1x1x16x192xf32>
    %64 = vector.shape_cast %63 : vector<1x1x16x192xf32> to vector<16x192xf32>
    %cst_56 = arith.constant dense<0.000000e+00> : vector<16x32xf32>
    %65 = tpu.matmul %64, %0, %cst_56 {dimension_numbers = #tpu.dot_dimension_numbers<[1], [0], [0], [1], [0, 0, 1, 1], [], []>} : vector<16x192xf32>, vector<192x32xf32>, vector<16x32xf32> -> vector<16x32xf32>
    %66 = arith.addf %65, %1 : vector<16x32xf32>
    %67 = vector.extract_strided_slice %2 {offsets = [6, 0], sizes = [1, 32], strides = [1, 1]} : vector<8x32xf32> to vector<1x32xf32>
    %68 = vector.broadcast %67 : vector<1x32xf32> to vector<16x32xf32>
    %69 = arith.addf %66, %68 : vector<16x32xf32>
    %c0_57 = arith.constant 0 : index
    %c0_58 = arith.constant 0 : index
    %c6_59 = arith.constant 6 : index
    %c0_60 = arith.constant 0 : index
    %70 = vector.load %arg6[%c0_57, %c0_58, %c6_59, %c0_60] : memref<1x16x8x32xf32, #tpu.memory_space<vmem>>, vector<1x16x1x32xf32>
    %71 = vector.shape_cast %70 : vector<1x16x1x32xf32> to vector<16x32xf32>
    %72 = vector.shape_cast %69 : vector<16x32xf32> to vector<1x16x1x32xf32>
    tpu.vector_store %arg6[%c0_57, %c0_58, %c6_59, %c0_60], %72 {strides = array<i32>} : memref<1x16x8x32xf32, #tpu.memory_space<vmem>>, vector<1x16x1x32xf32>,
    %c0_61 = arith.constant 0 : index
    %c7 = arith.constant 7 : index
    %c0_62 = arith.constant 0 : index
    %c0_63 = arith.constant 0 : index
    %73 = vector.load %arg2[%c0_61, %c7, %c0_62, %c0_63] : memref<1x8x16x192xf32, #tpu.memory_space<vmem>>, vector<1x1x16x192xf32>
    %74 = vector.shape_cast %73 : vector<1x1x16x192xf32> to vector<16x192xf32>
    %cst_64 = arith.constant dense<0.000000e+00> : vector<16x32xf32>
    %75 = tpu.matmul %74, %0, %cst_64 {dimension_numbers = #tpu.dot_dimension_numbers<[1], [0], [0], [1], [0, 0, 1, 1], [], []>} : vector<16x192xf32>, vector<192x32xf32>, vector<16x32xf32> -> vector<16x32xf32>
    %76 = arith.addf %75, %1 : vector<16x32xf32>
    %77 = vector.extract_strided_slice %2 {offsets = [7, 0], sizes = [1, 32], strides = [1, 1]} : vector<8x32xf32> to vector<1x32xf32>
    %78 = vector.broadcast %77 : vector<1x32xf32> to vector<16x32xf32>
    %79 = arith.addf %76, %78 : vector<16x32xf32>
    %c0_65 = arith.constant 0 : index
    %c0_66 = arith.constant 0 : index
    %c7_67 = arith.constant 7 : index
    %c0_68 = arith.constant 0 : index
    %80 = vector.load %arg6[%c0_65, %c0_66, %c7_67, %c0_68] : memref<1x16x8x32xf32, #tpu.memory_space<vmem>>, vector<1x16x1x32xf32>
    %81 = vector.shape_cast %80 : vector<1x16x1x32xf32> to vector<16x32xf32>
    %82 = vector.shape_cast %79 : vector<16x32xf32> to vector<1x16x1x32xf32>
    tpu.vector_store %arg6[%c0_65, %c0_66, %c7_67, %c0_68], %82 {strides = array<i32>} : memref<1x16x8x32xf32, #tpu.memory_space<vmem>>, vector<1x16x1x32xf32>,
    return
  }
  func.func @transform_0(%arg0: i32, %arg1: i32) -> (i32, i32, i32, i32) {
    %c0_i32 = arith.constant 0 : i32
    %c0_i32_0 = arith.constant 0 : i32
    %c0_i32_1 = arith.constant 0 : i32
    return %arg0, %c0_i32, %arg1, %c0_i32_0 : i32, i32, i32, i32
  }
  func.func @transform_1(%arg0: i32, %arg1: i32) -> (i32, i32) {
    %c0_i32 = arith.constant 0 : i32
    %c0_i32_0 = arith.constant 0 : i32
    %c0_i32_1 = arith.constant 0 : i32
    return %c0_i32, %c0_i32_0 : i32, i32
  }
  func.func @transform_2(%arg0: i32, %arg1: i32) -> (i32, i32) {
    %c0_i32 = arith.constant 0 : i32
    %c0_i32_0 = arith.constant 0 : i32
    return %arg1, %c0_i32 : i32, i32
  }
  func.func @transform_3(%arg0: i32, %arg1: i32) -> (i32, i32) {
    %c0_i32 = arith.constant 0 : i32
    %c0_i32_0 = arith.constant 0 : i32
    %c0_i32_1 = arith.constant 0 : i32
    return %c0_i32, %c0_i32_0 : i32, i32
  }
  func.func @transform_4(%arg0: i32, %arg1: i32) -> (i32, i32, i32, i32) {
    %c0_i32 = arith.constant 0 : i32
    %c0_i32_0 = arith.constant 0 : i32
    %c0_i32_1 = arith.constant 0 : i32
    return %arg0, %arg1, %c0_i32, %c0_i32_0 : i32, i32, i32, i32
  }
}

module attributes {stable_mosaic.version = 11 : i64} {
  func.func @_proj_embed_kernel(%arg0: i32, %arg1: i32, %arg2: memref<1x8x16x192xf32, #tpu.memory_space<vmem>>, %arg3: memref<192x32xf32, #tpu.memory_space<vmem>>, %arg4: memref<16x32xf32, #tpu.memory_space<vmem>>, %arg5: memref<8x32xf32, #tpu.memory_space<vmem>>, %arg6: memref<1x16x8x32xf32, #tpu.memory_space<vmem>>) attributes {dimension_semantics = [#tpu.dimension_semantics<parallel>, #tpu.dimension_semantics<parallel>], iteration_bounds = array<i64: 2, 1>, scalar_prefetch = 0 : i64, scratch_operands = 0 : i64, tpu.core_type = #tpu.core_type<tc>, window_params = [{transform_indices = @transform_0, window_bounds = array<i64: 1, 8, 16, 192>}, {pipeline_mode = #tpu.pipeline_mode<synchronous>, transform_indices = @transform_1, window_bounds = array<i64: 192, 32>}, {transform_indices = @transform_2, window_bounds = array<i64: 16, 32>}, {pipeline_mode = #tpu.pipeline_mode<synchronous>, transform_indices = @transform_3, window_bounds = array<i64: 8, 32>}, {transform_indices = @transform_4, window_bounds = array<i64: 1, 16, 8, 32>}]} {
    %c0 = arith.constant 0 : index
    %c0_0 = arith.constant 0 : index
    %0 = vector.load %arg3[%c0, %c0_0] : memref<192x32xf32, #tpu.memory_space<vmem>>, vector<192x32xf32>
    %c0_1 = arith.constant 0 : index
    %c0_2 = arith.constant 0 : index
    %1 = vector.load %arg4[%c0_1, %c0_2] : memref<16x32xf32, #tpu.memory_space<vmem>>, vector<16x32xf32>
    %c0_3 = arith.constant 0 : index
    %c0_4 = arith.constant 0 : index
    %2 = vector.load %arg5[%c0_3, %c0_4] : memref<8x32xf32, #tpu.memory_space<vmem>>, vector<8x32xf32>
    %c0_5 = arith.constant 0 : index
    %c0_6 = arith.constant 0 : index
    %c0_7 = arith.constant 0 : index
    %c0_8 = arith.constant 0 : index
    %3 = vector.load %arg2[%c0_5, %c0_6, %c0_7, %c0_8] : memref<1x8x16x192xf32, #tpu.memory_space<vmem>>, vector<1x1x16x192xf32>
    %4 = vector.shape_cast %3 : vector<1x1x16x192xf32> to vector<16x192xf32>
    %cst = arith.constant dense<0.000000e+00> : vector<16x32xf32>
    %5 = tpu.matmul %4, %0, %cst {dimension_numbers = #tpu.dot_dimension_numbers<[1], [0], [0], [1], [0, 0, 1, 1], [], []>} : vector<16x192xf32>, vector<192x32xf32>, vector<16x32xf32> -> vector<16x32xf32>
    %6 = arith.addf %5, %1 : vector<16x32xf32>
    %7 = vector.extract_strided_slice %2 {offsets = [0, 0], sizes = [1, 32], strides = [1, 1]} : vector<8x32xf32> to vector<1x32xf32>
    %8 = vector.broadcast %7 : vector<1x32xf32> to vector<16x32xf32>
    %9 = arith.addf %6, %8 : vector<16x32xf32>
    %c0_9 = arith.constant 0 : index
    %c0_10 = arith.constant 0 : index
    %c0_11 = arith.constant 0 : index
    %c0_12 = arith.constant 0 : index
    %10 = vector.load %arg6[%c0_9, %c0_10, %c0_11, %c0_12] : memref<1x16x8x32xf32, #tpu.memory_space<vmem>>, vector<1x16x1x32xf32>
    %11 = vector.shape_cast %10 : vector<1x16x1x32xf32> to vector<16x32xf32>
    %12 = vector.shape_cast %9 : vector<16x32xf32> to vector<1x16x1x32xf32>
    tpu.vector_store %arg6[%c0_9, %c0_10, %c0_11, %c0_12], %12 {strides = array<i32>} : memref<1x16x8x32xf32, #tpu.memory_space<vmem>>, vector<1x16x1x32xf32>,
    %c0_13 = arith.constant 0 : index
    %c1 = arith.constant 1 : index
    %c0_14 = arith.constant 0 : index
    %c0_15 = arith.constant 0 : index
    %13 = vector.load %arg2[%c0_13, %c1, %c0_14, %c0_15] : memref<1x8x16x192xf32, #tpu.memory_space<vmem>>, vector<1x1x16x192xf32>
    %14 = vector.shape_cast %13 : vector<1x1x16x192xf32> to vector<16x192xf32>
    %cst_16 = arith.constant dense<0.000000e+00> : vector<16x32xf32>
    %15 = tpu.matmul %14, %0, %cst_16 {dimension_numbers = #tpu.dot_dimension_numbers<[1], [0], [0], [1], [0, 0, 1, 1], [], []>} : vector<16x192xf32>, vector<192x32xf32>, vector<16x32xf32> -> vector<16x32xf32>
    %16 = arith.addf %15, %1 : vector<16x32xf32>
    %17 = vector.extract_strided_slice %2 {offsets = [1, 0], sizes = [1, 32], strides = [1, 1]} : vector<8x32xf32> to vector<1x32xf32>
    %18 = vector.broadcast %17 : vector<1x32xf32> to vector<16x32xf32>
    %19 = arith.addf %16, %18 : vector<16x32xf32>
    %c0_17 = arith.constant 0 : index
    %c0_18 = arith.constant 0 : index
    %c1_19 = arith.constant 1 : index
    %c0_20 = arith.constant 0 : index
    %20 = vector.load %arg6[%c0_17, %c0_18, %c1_19, %c0_20] : memref<1x16x8x32xf32, #tpu.memory_space<vmem>>, vector<1x16x1x32xf32>
    %21 = vector.shape_cast %20 : vector<1x16x1x32xf32> to vector<16x32xf32>
    %22 = vector.shape_cast %19 : vector<16x32xf32> to vector<1x16x1x32xf32>
    tpu.vector_store %arg6[%c0_17, %c0_18, %c1_19, %c0_20], %22 {strides = array<i32>} : memref<1x16x8x32xf32, #tpu.memory_space<vmem>>, vector<1x16x1x32xf32>,
    %c0_21 = arith.constant 0 : index
    %c2 = arith.constant 2 : index
    %c0_22 = arith.constant 0 : index
    %c0_23 = arith.constant 0 : index
    %23 = vector.load %arg2[%c0_21, %c2, %c0_22, %c0_23] : memref<1x8x16x192xf32, #tpu.memory_space<vmem>>, vector<1x1x16x192xf32>
    %24 = vector.shape_cast %23 : vector<1x1x16x192xf32> to vector<16x192xf32>
    %cst_24 = arith.constant dense<0.000000e+00> : vector<16x32xf32>
    %25 = tpu.matmul %24, %0, %cst_24 {dimension_numbers = #tpu.dot_dimension_numbers<[1], [0], [0], [1], [0, 0, 1, 1], [], []>} : vector<16x192xf32>, vector<192x32xf32>, vector<16x32xf32> -> vector<16x32xf32>
    %26 = arith.addf %25, %1 : vector<16x32xf32>
    %27 = vector.extract_strided_slice %2 {offsets = [2, 0], sizes = [1, 32], strides = [1, 1]} : vector<8x32xf32> to vector<1x32xf32>
    %28 = vector.broadcast %27 : vector<1x32xf32> to vector<16x32xf32>
    %29 = arith.addf %26, %28 : vector<16x32xf32>
    %c0_25 = arith.constant 0 : index
    %c0_26 = arith.constant 0 : index
    %c2_27 = arith.constant 2 : index
    %c0_28 = arith.constant 0 : index
    %30 = vector.load %arg6[%c0_25, %c0_26, %c2_27, %c0_28] : memref<1x16x8x32xf32, #tpu.memory_space<vmem>>, vector<1x16x1x32xf32>
    %31 = vector.shape_cast %30 : vector<1x16x1x32xf32> to vector<16x32xf32>
    %32 = vector.shape_cast %29 : vector<16x32xf32> to vector<1x16x1x32xf32>
    tpu.vector_store %arg6[%c0_25, %c0_26, %c2_27, %c0_28], %32 {strides = array<i32>} : memref<1x16x8x32xf32, #tpu.memory_space<vmem>>, vector<1x16x1x32xf32>,
    %c0_29 = arith.constant 0 : index
    %c3 = arith.constant 3 : index
    %c0_30 = arith.constant 0 : index
    %c0_31 = arith.constant 0 : index
    %33 = vector.load %arg2[%c0_29, %c3, %c0_30, %c0_31] : memref<1x8x16x192xf32, #tpu.memory_space<vmem>>, vector<1x1x16x192xf32>
    %34 = vector.shape_cast %33 : vector<1x1x16x192xf32> to vector<16x192xf32>
    %cst_32 = arith.constant dense<0.000000e+00> : vector<16x32xf32>
    %35 = tpu.matmul %34, %0, %cst_32 {dimension_numbers = #tpu.dot_dimension_numbers<[1], [0], [0], [1], [0, 0, 1, 1], [], []>} : vector<16x192xf32>, vector<192x32xf32>, vector<16x32xf32> -> vector<16x32xf32>
    %36 = arith.addf %35, %1 : vector<16x32xf32>
    %37 = vector.extract_strided_slice %2 {offsets = [3, 0], sizes = [1, 32], strides = [1, 1]} : vector<8x32xf32> to vector<1x32xf32>
    %38 = vector.broadcast %37 : vector<1x32xf32> to vector<16x32xf32>
    %39 = arith.addf %36, %38 : vector<16x32xf32>
    %c0_33 = arith.constant 0 : index
    %c0_34 = arith.constant 0 : index
    %c3_35 = arith.constant 3 : index
    %c0_36 = arith.constant 0 : index
    %40 = vector.load %arg6[%c0_33, %c0_34, %c3_35, %c0_36] : memref<1x16x8x32xf32, #tpu.memory_space<vmem>>, vector<1x16x1x32xf32>
    %41 = vector.shape_cast %40 : vector<1x16x1x32xf32> to vector<16x32xf32>
    %42 = vector.shape_cast %39 : vector<16x32xf32> to vector<1x16x1x32xf32>
    tpu.vector_store %arg6[%c0_33, %c0_34, %c3_35, %c0_36], %42 {strides = array<i32>} : memref<1x16x8x32xf32, #tpu.memory_space<vmem>>, vector<1x16x1x32xf32>,
    %c0_37 = arith.constant 0 : index
    %c4 = arith.constant 4 : index
    %c0_38 = arith.constant 0 : index
    %c0_39 = arith.constant 0 : index
    %43 = vector.load %arg2[%c0_37, %c4, %c0_38, %c0_39] : memref<1x8x16x192xf32, #tpu.memory_space<vmem>>, vector<1x1x16x192xf32>
    %44 = vector.shape_cast %43 : vector<1x1x16x192xf32> to vector<16x192xf32>
    %cst_40 = arith.constant dense<0.000000e+00> : vector<16x32xf32>
    %45 = tpu.matmul %44, %0, %cst_40 {dimension_numbers = #tpu.dot_dimension_numbers<[1], [0], [0], [1], [0, 0, 1, 1], [], []>} : vector<16x192xf32>, vector<192x32xf32>, vector<16x32xf32> -> vector<16x32xf32>
    %46 = arith.addf %45, %1 : vector<16x32xf32>
    %47 = vector.extract_strided_slice %2 {offsets = [4, 0], sizes = [1, 32], strides = [1, 1]} : vector<8x32xf32> to vector<1x32xf32>
    %48 = vector.broadcast %47 : vector<1x32xf32> to vector<16x32xf32>
    %49 = arith.addf %46, %48 : vector<16x32xf32>
    %c0_41 = arith.constant 0 : index
    %c0_42 = arith.constant 0 : index
    %c4_43 = arith.constant 4 : index
    %c0_44 = arith.constant 0 : index
    %50 = vector.load %arg6[%c0_41, %c0_42, %c4_43, %c0_44] : memref<1x16x8x32xf32, #tpu.memory_space<vmem>>, vector<1x16x1x32xf32>
    %51 = vector.shape_cast %50 : vector<1x16x1x32xf32> to vector<16x32xf32>
    %52 = vector.shape_cast %49 : vector<16x32xf32> to vector<1x16x1x32xf32>
    tpu.vector_store %arg6[%c0_41, %c0_42, %c4_43, %c0_44], %52 {strides = array<i32>} : memref<1x16x8x32xf32, #tpu.memory_space<vmem>>, vector<1x16x1x32xf32>,
    %c0_45 = arith.constant 0 : index
    %c5 = arith.constant 5 : index
    %c0_46 = arith.constant 0 : index
    %c0_47 = arith.constant 0 : index
    %53 = vector.load %arg2[%c0_45, %c5, %c0_46, %c0_47] : memref<1x8x16x192xf32, #tpu.memory_space<vmem>>, vector<1x1x16x192xf32>
    %54 = vector.shape_cast %53 : vector<1x1x16x192xf32> to vector<16x192xf32>
    %cst_48 = arith.constant dense<0.000000e+00> : vector<16x32xf32>
    %55 = tpu.matmul %54, %0, %cst_48 {dimension_numbers = #tpu.dot_dimension_numbers<[1], [0], [0], [1], [0, 0, 1, 1], [], []>} : vector<16x192xf32>, vector<192x32xf32>, vector<16x32xf32> -> vector<16x32xf32>
    %56 = arith.addf %55, %1 : vector<16x32xf32>
    %57 = vector.extract_strided_slice %2 {offsets = [5, 0], sizes = [1, 32], strides = [1, 1]} : vector<8x32xf32> to vector<1x32xf32>
    %58 = vector.broadcast %57 : vector<1x32xf32> to vector<16x32xf32>
    %59 = arith.addf %56, %58 : vector<16x32xf32>
    %c0_49 = arith.constant 0 : index
    %c0_50 = arith.constant 0 : index
    %c5_51 = arith.constant 5 : index
    %c0_52 = arith.constant 0 : index
    %60 = vector.load %arg6[%c0_49, %c0_50, %c5_51, %c0_52] : memref<1x16x8x32xf32, #tpu.memory_space<vmem>>, vector<1x16x1x32xf32>
    %61 = vector.shape_cast %60 : vector<1x16x1x32xf32> to vector<16x32xf32>
    %62 = vector.shape_cast %59 : vector<16x32xf32> to vector<1x16x1x32xf32>
    tpu.vector_store %arg6[%c0_49, %c0_50, %c5_51, %c0_52], %62 {strides = array<i32>} : memref<1x16x8x32xf32, #tpu.memory_space<vmem>>, vector<1x16x1x32xf32>,
    %c0_53 = arith.constant 0 : index
    %c6 = arith.constant 6 : index
    %c0_54 = arith.constant 0 : index
    %c0_55 = arith.constant 0 : index
    %63 = vector.load %arg2[%c0_53, %c6, %c0_54, %c0_55] : memref<1x8x16x192xf32, #tpu.memory_space<vmem>>, vector<1x1x16x192xf32>
    %64 = vector.shape_cast %63 : vector<1x1x16x192xf32> to vector<16x192xf32>
    %cst_56 = arith.constant dense<0.000000e+00> : vector<16x32xf32>
    %65 = tpu.matmul %64, %0, %cst_56 {dimension_numbers = #tpu.dot_dimension_numbers<[1], [0], [0], [1], [0, 0, 1, 1], [], []>} : vector<16x192xf32>, vector<192x32xf32>, vector<16x32xf32> -> vector<16x32xf32>
    %66 = arith.addf %65, %1 : vector<16x32xf32>
    %67 = vector.extract_strided_slice %2 {offsets = [6, 0], sizes = [1, 32], strides = [1, 1]} : vector<8x32xf32> to vector<1x32xf32>
    %68 = vector.broadcast %67 : vector<1x32xf32> to vector<16x32xf32>
    %69 = arith.addf %66, %68 : vector<16x32xf32>
    %c0_57 = arith.constant 0 : index
    %c0_58 = arith.constant 0 : index
    %c6_59 = arith.constant 6 : index
    %c0_60 = arith.constant 0 : index
    %70 = vector.load %arg6[%c0_57, %c0_58, %c6_59, %c0_60] : memref<1x16x8x32xf32, #tpu.memory_space<vmem>>, vector<1x16x1x32xf32>
    %71 = vector.shape_cast %70 : vector<1x16x1x32xf32> to vector<16x32xf32>
    %72 = vector.shape_cast %69 : vector<16x32xf32> to vector<1x16x1x32xf32>
    tpu.vector_store %arg6[%c0_57, %c0_58, %c6_59, %c0_60], %72 {strides = array<i32>} : memref<1x16x8x32xf32, #tpu.memory_space<vmem>>, vector<1x16x1x32xf32>,
    %c0_61 = arith.constant 0 : index
    %c7 = arith.constant 7 : index
    %c0_62 = arith.constant 0 : index
    %c0_63 = arith.constant 0 : index
    %73 = vector.load %arg2[%c0_61, %c7, %c0_62, %c0_63] : memref<1x8x16x192xf32, #tpu.memory_space<vmem>>, vector<1x1x16x192xf32>
    %74 = vector.shape_cast %73 : vector<1x1x16x192xf32> to vector<16x192xf32>
    %cst_64 = arith.constant dense<0.000000e+00> : vector<16x32xf32>
    %75 = tpu.matmul %74, %0, %cst_64 {dimension_numbers = #tpu.dot_dimension_numbers<[1], [0], [0], [1], [0, 0, 1, 1], [], []>} : vector<16x192xf32>, vector<192x32xf32>, vector<16x32xf32> -> vector<16x32xf32>
    %76 = arith.addf %75, %1 : vector<16x32xf32>
    %77 = vector.extract_strided_slice %2 {offsets = [7, 0], sizes = [1, 32], strides = [1, 1]} : vector<8x32xf32> to vector<1x32xf32>
    %78 = vector.broadcast %77 : vector<1x32xf32> to vector<16x32xf32>
    %79 = arith.addf %76, %78 : vector<16x32xf32>
    %c0_65 = arith.constant 0 : index
    %c0_66 = arith.constant 0 : index
    %c7_67 = arith.constant 7 : index
    %c0_68 = arith.constant 0 : index
    %80 = vector.load %arg6[%c0_65, %c0_66, %c7_67, %c0_68] : memref<1x16x8x32xf32, #tpu.memory_space<vmem>>, vector<1x16x1x32xf32>
    %81 = vector.shape_cast %80 : vector<1x16x1x32xf32> to vector<16x32xf32>
    %82 = vector.shape_cast %79 : vector<16x32xf32> to vector<1x16x1x32xf32>
    tpu.vector_store %arg6[%c0_65, %c0_66, %c7_67, %c0_68], %82 {strides = array<i32>} : memref<1x16x8x32xf32, #tpu.memory_space<vmem>>, vector<1x16x1x32xf32>,
    return
  }
  func.func @transform_0(%arg0: i32, %arg1: i32) -> (i32, i32, i32, i32) {
    %c0_i32 = arith.constant 0 : i32
    %c0_i32_0 = arith.constant 0 : i32
    %c0_i32_1 = arith.constant 0 : i32
    return %arg0, %c0_i32, %arg1, %c0_i32_0 : i32, i32, i32, i32
  }
  func.func @transform_1(%arg0: i32, %arg1: i32) -> (i32, i32) {
    %c0_i32 = arith.constant 0 : i32
    %c0_i32_0 = arith.constant 0 : i32
    %c0_i32_1 = arith.constant 0 : i32
    return %c0_i32, %c0_i32_0 : i32, i32
  }
  func.func @transform_2(%arg0: i32, %arg1: i32) -> (i32, i32) {
    %c0_i32 = arith.constant 0 : i32
    %c0_i32_0 = arith.constant 0 : i32
    return %arg1, %c0_i32 : i32, i32
  }
  func.func @transform_3(%arg0: i32, %arg1: i32) -> (i32, i32) {
    %c0_i32 = arith.constant 0 : i32
    %c0_i32_0 = arith.constant 0 : i32
    %c0_i32_1 = arith.constant 0 : i32
    return %c0_i32, %c0_i32_0 : i32, i32
  }
  func.func @transform_4(%arg0: i32, %arg1: i32) -> (i32, i32, i32, i32) {
    %c0_i32 = arith.constant 0 : i32
    %c0_i32_0 = arith.constant 0 : i32
    %c0_i32_1 = arith.constant 0 : i32
    return %arg0, %arg1, %c0_i32, %c0_i32_0 : i32, i32, i32, i32
  }
}

</mosaic_0001>

<bundles_post_ra>
// kernel: _forward.1
= control target key start
LH: loop header
LB: loop body
LE: loop exit
PB: predicated region body
PF: predicated region fallthrough
CT: control target
= control target key end

     0   :  { %s2610_s15 = smov 0   ;;  %s2612_s16 = smov 0   ;;  %s3391_s0 = inlined_call_operand.vmem [shape: f32[2,8,16,192], index: 0, kind: input, shape index: {}]   ;;  %s3392_s1 = inlined_call_operand.vmem [shape: f32[192,32], index: 1, kind: input, shape index: {}]   ;;  %s3393_s2 = inlined_call_operand.vmem [shape: f32[16,32], index: 2, kind: input, shape index: {}]   ;;  %s3394_s3 = inlined_call_operand.vmem [shape: f32[8,32], index: 3, kind: input, shape index: {}]   ;;  %s3395_s4 = inlined_call_operand.vmem [shape: f32[2,16,8,32], index: 4, kind: output, shape index: {}]  }
   0x1   :  { %s2614_s17 = smov 0  }
   0x2 LB: > { %s26_s18 = sadd.s32 1, %s2577_s16  ;;  %p2192_p0 = scmp.ge.s32.totalorder %s2581_s17, 1  ;;  %s2581_s17 = sphi %s2614_s17, %s14_s17   ;;  %s2577_s16 = sphi %s2612_s16, %s3397_s16   ;;  %s2573_s15 = sphi %s2610_s15, %s3396_s15  }
   0x3   : > { %p28_p1 = scmp.ge.s32.totalorder %s26_s18, 2  ;;  %p195_p2 = scmp.lt.s32.totalorder %s2581_s17, 3 }
   0x5   : > { %s3399_s18 = smov (%p28_p1, %s26_s18), 0  ;;  %p196_p3 = pnand %p2192_p0, %p195_p2 }
   0x6   : > { %v262_v0 = vld [vmem:[%s3392_s1] sm:$0xff] (!%p196_p3)  ;;  %v263_v1 = vld [vmem:[%s3392_s1 + $0x8] sm:$0xff] (!%p196_p3)  ;;  %v264_v2 = vld [vmem:[%s3392_s1 + $0x10] sm:$0xff] (!%p196_p3)  ;;  %p236_p4 = scmp.lt.s32.totalorder (!%p196_p3), %s2573_s15, 1  ;;  %v2583_v3 = vmov (!%p196_p3), 0.0|0.0   ;;  %vm293_vm0 = vcmask (!%p196_p3), 523264  }
   0x7   : > { %199 = sbr.rel (%p196_p3) target bundleno = 438 (0x1b6), region = 36  ;;  %2245 = vmatprep.subr.bf16.mxu0 (!%p196_p3), %v2583_v3  ;;  %2281 = vmatprep.subr.bf16.mxu1 (!%p196_p3), %v2583_v3  ;;  %v2639_v4 = vpack.c.bf16 (!%p196_p3), %v263_v1, %v262_v0  ;;  %v265_v5 = vld [vmem:[%s3392_s1 + $0x18] sm:$0xff] (!%p196_p3)  ;;  %v266_v7 = vld [vmem:[%s3392_s1 + $0x20] sm:$0xff] (!%p196_p3)  ;;  %v267_v8 = vld [vmem:[%s3392_s1 + $0x28] sm:$0xff] (!%p196_p3)  ;;  %vm497_vm1 = vcmask (!%p196_p3), 253952  }
   0x8   : > { %v2648_v6 = vpack.c.bf16 (!%p196_p3), %v265_v5, %v264_v2  ;;  %v2666_v9 = vpack.c.bf16 (!%p196_p3), %v267_v8, %v266_v7  ;;  %v268_v10 = vld [vmem:[%s3392_s1 + $0x30] sm:$0xff] (!%p196_p3)  ;;  %v269_v11 = vld [vmem:[%s3392_s1 + $0x38] sm:$0xff] (!%p196_p3)  ;;  %v270_v15 = vld [vmem:[%s3392_s1 + $0x40] sm:$0xff] (!%p196_p3)  ;;  %v2584_v7 = vmov (!%p196_p3), 1966171168  }
   0x9   : > { %2247 = vmatpush1.bf16.msra.mxu0 (!%p196_p3), %v2639_v4  ;;  %2283 = vmatpush1.bf16.msra.mxu1 (!%p196_p3), %v2639_v4  ;;  %v2682_v14 = vpack.c.bf16 (!%p196_p3), %v269_v11, %v268_v10  ;;  %v271_v16 = vld [vmem:[%s3392_s1 + $0x48] sm:$0xff] (!%p196_p3)  ;;  %v272_v18 = vld [vmem:[%s3392_s1 + $0x50] sm:$0xff] (!%p196_p3)  ;;  %v273_v19 = vld [vmem:[%s3392_s1 + $0x58] sm:$0xff] (!%p196_p3)  ;;  %v385_v8 = vunpack.c.l.s4 (!%p196_p3), %v2584_v7 }
   0xa   : > { %2248 = vmatprep.subr.bf16.mxu0 (!%p196_p3), %v2583_v3  ;;  %2284 = vmatprep.subr.bf16.mxu1 (!%p196_p3), %v2583_v3  ;;  %v2694_v17 = vpack.c.bf16 (!%p196_p3), %v271_v16, %v270_v15  ;;  %v2706_v20 = vpack.c.bf16 (!%p196_p3), %v273_v19, %v272_v18  ;;  %v274_v21 = vld [vmem:[%s3392_s1 + $0x60] sm:$0xff] (!%p196_p3)  ;;  %v275_v22 = vld [vmem:[%s3392_s1 + $0x68] sm:$0xff] (!%p196_p3)  ;;  %v276_v24 = vld [vmem:[%s3392_s1 + $0x70] sm:$0xff] (!%p196_p3) }
   0xb   : > { %v2718_v23 = vpack.c.bf16 (!%p196_p3), %v275_v22, %v274_v21  ;;  %v277_v25 = vld [vmem:[%s3392_s1 + $0x78] sm:$0xff] (!%p196_p3)  ;;  %v278_v27 = vld [vmem:[%s3392_s1 + $0x80] sm:$0xff] (!%p196_p3)  ;;  %v279_v28 = vld [vmem:[%s3392_s1 + $0x88] sm:$0xff] (!%p196_p3) }
   0xc   : > { %v2730_v26 = vpack.c.bf16 (!%p196_p3), %v277_v25, %v276_v24  ;;  %v2742_v29 = vpack.c.bf16 (!%p196_p3), %v279_v28, %v278_v27  ;;  %v280_v30 = vld [vmem:[%s3392_s1 + $0x90] sm:$0xff] (!%p196_p3)  ;;  %v281_v31 = vld [vmem:[%s3392_s1 + $0x98] sm:$0xff] (!%p196_p3)  ;;  %v282_v33 = vld [vmem:[%s3392_s1 + $0xa0] sm:$0xff] (!%p196_p3) }
   0xd   : > { %2250 = vmatpush1.bf16.msra.mxu0 (!%p196_p3), %v2648_v6  ;;  %2286 = vmatpush1.bf16.msra.mxu1 (!%p196_p3), %v2648_v6  ;;  %v2754_v32 = vpack.c.bf16 (!%p196_p3), %v281_v31, %v280_v30  ;;  %v283_v34 = vld [vmem:[%s3392_s1 + $0xa8] sm:$0xff] (!%p196_p3)  ;;  %v284_v36 = vld [vmem:[%s3392_s1 + $0xb0] sm:$0xff] (!%p196_p3)  ;;  %v285_v37 = vld [vmem:[%s3392_s1 + $0xb8] sm:$0xff] (!%p196_p3) }
   0xe   : > { %s3401_s15 = smov (!%p236_p4, %s2573_s15), 1  ;;  %2251 = vmatprep.subr.bf16.mxu0 %v2583_v3  ;;  %2287 = vmatprep.subr.bf16.mxu1 %v2583_v3  ;;  %v2766_v35 = vpack.c.bf16 %v283_v34, %v282_v33  ;;  %v2778_v38 = vpack.c.bf16 %v285_v37, %v284_v36  ;;  %v2979_v11 = vld [vmem:[%s3394_s3] sm:$0xff]  ;;  %v2997_v25 = vld [vmem:[%s3393_s2 + $0x8] sm:$0xff] }
   0xf   : > { %s2243_s5 = sshll.u32 %s3401_s15, 8 }
  0x10   : > { %s2662_s8 = scalar_lea.vmem %s3391_s0, %s2243_s5  ;;  %s2244_s5 = sshll.u32 %s3401_s15, 7 }
  0x11   : > { %v290_v12 = vld [vmem:[%s2662_s8 + $0x8] sm:$0xff]  ;;  %2253 = vmatpush1.bf16.msra.mxu0 %v2666_v9  ;;  %2289 = vmatpush1.bf16.msra.mxu1 %v2666_v9  ;;  %v289_v39 = vld [vmem:[%s2662_s8] sm:$0xff]  ;;  %v292_v41 = vld [vmem:[%s2662_s8 + $0x18] sm:$0xff]  ;;  %s3004_s15 = scalar_lea.vmem %s3395_s4, %s2244_s5 }
  0x12   : > { %v2200_v13 = vld [vmem:[%s2662_s8 + $0x28] sm:$0xff]  ;;  %2197 = vmatprep.mubr.msk.f32.mxu0 %vm293_vm0, %v290_v12  ;;  %2254 = vmatprep.subr.bf16.mxu0 %v2583_v3  ;;  %v2199_v40 = vld [vmem:[%s2662_s8 + $0x20] sm:$0xff]  ;;  %v2202_v42 = vld [vmem:[%s2662_s8 + $0x38] sm:$0xff]  ;;  %v386_v12 = vunpack.c.0.s8 %v385_v8 }
  0x13   : > { %2203 = vmatprep.mubr.msk.f32.mxu1 %vm293_vm0, %v2200_v13  ;;  %2290 = vmatprep.subr.bf16.mxu1 %v2583_v3  ;;  %v291_v43 = vld [vmem:[%s2662_s8 + $0x10] sm:$0xff]  ;;  %v2206_v45 = vld [vmem:[%s2662_s8 + $0x48] sm:$0xff]  ;;  %v2205_v47 = vld [vmem:[%s2662_s8 + $0x40] sm:$0xff] }
  0x14   : > { %v2201_v44 = vld [vmem:[%s2662_s8 + $0x30] sm:$0xff]  ;;  %v2212_v46 = vld [vmem:[%s2662_s8 + $0x68] sm:$0xff]  ;;  %v2211_v48 = vld [vmem:[%s2662_s8 + $0x60] sm:$0xff] }
  0x15   : > { %2256 = vmatpush1.bf16.msra.mxu0 %v2682_v14  ;;  %2292 = vmatpush1.bf16.msra.mxu1 %v2682_v14  ;;  %v2208_v49 = vld [vmem:[%s2662_s8 + $0x58] sm:$0xff]  ;;  %v2207_v51 = vld [vmem:[%s2662_s8 + $0x50] sm:$0xff]  ;;  %v2218_v53 = vld [vmem:[%s2662_s8 + $0x88] sm:$0xff] }
  0x16   : > { %2257 = vmatprep.subr.bf16.mxu0 %v2583_v3  ;;  %2293 = vmatprep.subr.bf16.mxu1 %v2583_v3  ;;  %v2214_v50 = vld [vmem:[%s2662_s8 + $0x78] sm:$0xff]  ;;  %v2213_v52 = vld [vmem:[%s2662_s8 + $0x70] sm:$0xff]  ;;  %v2224_v54 = vld [vmem:[%s2662_s8 + $0xa8] sm:$0xff] }
  0x17   : > { %v2217_v55 = vld [vmem:[%s2662_s8 + $0x80] sm:$0xff]  ;;  %v2220_v57 = vld [vmem:[%s2662_s8 + $0x98] sm:$0xff]  ;;  %v2219_v59 = vld [vmem:[%s2662_s8 + $0x90] sm:$0xff] }
  0x18   : > { %v2223_v56 = vld [vmem:[%s2662_s8 + $0xa0] sm:$0xff]  ;;  %v2226_v58 = vld [vmem:[%s2662_s8 + $0xb8] sm:$0xff]  ;;  %v2225_v60 = vld [vmem:[%s2662_s8 + $0xb0] sm:$0xff] }
  0x19   : > { %2259 = vmatpush1.bf16.msra.mxu0 %v2694_v17  ;;  %2295 = vmatpush1.bf16.msra.mxu1 %v2694_v17  ;;  %v2230_v61 = vld [vmem:[%s2662_s8 + $0xc8] sm:$0xff]  ;;  %v2229_v63 = vld [vmem:[%s2662_s8 + $0xc0] sm:$0xff]  ;;  %v2232_v1 = vld [vmem:[%s2662_s8 + $0xd8] sm:$0xff] }
  0x1a   : > { %2260 = vmatprep.subr.bf16.mxu0 %v2583_v3  ;;  %2296 = vmatprep.subr.bf16.mxu1 %v2583_v3  ;;  %v2236_v62 = vld [vmem:[%s2662_s8 + $0xe8] sm:$0xff]  ;;  %v2235_v0 = vld [vmem:[%s2662_s8 + $0xe0] sm:$0xff]  ;;  %v2238_v2 = vld [vmem:[%s2662_s8 + $0xf8] sm:$0xff] }
  0x1b   : > { %v2237_v5 = vld [vmem:[%s2662_s8 + $0xf0] sm:$0xff]  ;;  %v2984_v13 = vld [vmem:[%s3393_s2] sm:$0xff] }
  0x1d   : > { %2262 = vmatpush1.bf16.msra.mxu0 %v2706_v20  ;;  %2298 = vmatpush1.bf16.msra.mxu1 %v2706_v20 }
  0x1e   : > { %2263 = vmatprep.subr.bf16.mxu0 %v2583_v3  ;;  %2299 = vmatprep.subr.bf16.mxu1 %v2583_v3 }
  0x21   : > { %2265 = vmatpush1.bf16.msra.mxu0 %v2718_v23  ;;  %2301 = vmatpush1.bf16.msra.mxu1 %v2718_v23 }
  0x22   : > { %2266 = vmatprep.subr.bf16.mxu0 %v2583_v3  ;;  %2302 = vmatprep.subr.bf16.mxu1 %v2583_v3 }
  0x25   : > { %2268 = vmatpush1.bf16.msra.mxu0 %v2730_v26  ;;  %2304 = vmatpush1.bf16.msra.mxu1 %v2730_v26 }
  0x26   : > { %2269 = vmatprep.subr.bf16.mxu0 %v2583_v3  ;;  %2305 = vmatprep.subr.bf16.mxu1 %v2583_v3 }
  0x29   : > { %2271 = vmatpush1.bf16.msra.mxu0 %v2742_v29  ;;  %2307 = vmatpush1.bf16.msra.mxu1 %v2742_v29 }
  0x2a   : > { %2272 = vmatprep.subr.bf16.mxu0 %v2583_v3  ;;  %2308 = vmatprep.subr.bf16.mxu1 %v2583_v3 }
  0x2d   : > { %2274 = vmatpush1.bf16.msra.mxu0 %v2754_v32  ;;  %2310 = vmatpush1.bf16.msra.mxu1 %v2754_v32 }
  0x2e   : > { %2275 = vmatprep.subr.bf16.mxu0 %v2583_v3  ;;  %2311 = vmatprep.subr.bf16.mxu1 %v2583_v3 }
  0x31   : > { %2277 = vmatpush1.bf16.msra.mxu0 %v2766_v35  ;;  %2313 = vmatpush1.bf16.msra.mxu1 %v2766_v35 }
  0x32   : > { %2278 = vmatprep.subr.bf16.mxu0 %v2583_v3  ;;  %2314 = vmatprep.subr.bf16.mxu1 %v2583_v3 }
  0x35   : > { %2280 = vmatpush1.bf16.msra.mxu0 %v2778_v38  ;;  %2316 = vmatpush1.bf16.msra.mxu1 %v2778_v38 }
  0x36   : > { %2317 = vmatprep.subr.bf16.mxu0 %v2583_v3  ;;  %2353 = vmatprep.subr.bf16.mxu1 %v2583_v3 }
  0x38   : > { %365 = vmatmul.mubr.f32.vlgmr.msra.gmra.mrb[0].mxu0 %v289_v39  ;;  %590 = vmatmul.mubr.f32.vlgmr.msra.gmra.mrb[0].mxu1 %v2199_v40 }
  0x39   : > { %2319 = vmatpush1.bf16.msra.mxu0 %v2639_v4  ;;  %2355 = vmatpush1.bf16.msra.mxu1 %v2639_v4 }
  0x3a   : > { %2320 = vmatprep.subr.bf16.mxu0 %v2583_v3  ;;  %2356 = vmatprep.subr.bf16.mxu1 %v2583_v3 }
  0x3b   : > { %2198 = vmatprep.mubr.msk.f32.mxu0 %vm293_vm0, %v292_v41  ;;  %2204 = vmatprep.mubr.msk.f32.mxu1 %vm293_vm0, %v2202_v42 }
  0x3c   : > { %370 = vmatmul.mubr.f32.gmra.mrb[2].mxu0 %v291_v43  ;;  %595 = vmatmul.mubr.f32.gmra.mrb[2].mxu1 %v2201_v44 }
  0x3d   : > { %2322 = vmatpush1.bf16.msra.mxu0 %v2648_v6  ;;  %2358 = vmatpush1.bf16.msra.mxu1 %v2648_v6 }
  0x3e   : > { %2323 = vmatprep.subr.bf16.mxu0 %v2583_v3  ;;  %2359 = vmatprep.subr.bf16.mxu1 %v2583_v3 }
  0x3f   : > { %2209 = vmatprep.mubr.msk.f32.mxu0 %vm293_vm0, %v2206_v45  ;;  %2215 = vmatprep.mubr.msk.f32.mxu1 %vm293_vm0, %v2212_v46 }
  0x41   : > { %2325 = vmatpush1.bf16.msra.mxu0 %v2666_v9  ;;  %2361 = vmatpush1.bf16.msra.mxu1 %v2666_v9 }
  0x42   : > { %2326 = vmatprep.subr.bf16.mxu0 %v2583_v3  ;;  %2362 = vmatprep.subr.bf16.mxu1 %v2583_v3 }
  0x45   : > { %2328 = vmatpush1.bf16.msra.mxu0 %v2682_v14  ;;  %2364 = vmatpush1.bf16.msra.mxu1 %v2682_v14 }
  0x46   : > { %2329 = vmatprep.subr.bf16.mxu0 %v2583_v3  ;;  %2365 = vmatprep.subr.bf16.mxu1 %v2583_v3 }
  0x49   : > { %2331 = vmatpush1.bf16.msra.mxu0 %v2694_v17  ;;  %2367 = vmatpush1.bf16.msra.mxu1 %v2694_v17 }
  0x4a   : > { %2332 = vmatprep.subr.bf16.mxu0 %v2583_v3  ;;  %2368 = vmatprep.subr.bf16.mxu1 %v2583_v3 }
  0x4d   : > { %2334 = vmatpush1.bf16.msra.mxu0 %v2706_v20  ;;  %2370 = vmatpush1.bf16.msra.mxu1 %v2706_v20 }
  0x4e   : > { %2335 = vmatprep.subr.bf16.mxu0 %v2583_v3  ;;  %2371 = vmatprep.subr.bf16.mxu1 %v2583_v3 }
  0x51   : > { %2337 = vmatpush1.bf16.msra.mxu0 %v2718_v23  ;;  %2373 = vmatpush1.bf16.msra.mxu1 %v2718_v23 }
  0x52   : > { %2338 = vmatprep.subr.bf16.mxu0 %v2583_v3  ;;  %2374 = vmatprep.subr.bf16.mxu1 %v2583_v3 }
  0x55   : > { %2340 = vmatpush1.bf16.msra.mxu0 %v2730_v26  ;;  %2376 = vmatpush1.bf16.msra.mxu1 %v2730_v26 }
  0x56   : > { %2341 = vmatprep.subr.bf16.mxu0 %v2583_v3  ;;  %2377 = vmatprep.subr.bf16.mxu1 %v2583_v3 }
  0x59   : > { %2343 = vmatpush1.bf16.msra.mxu0 %v2742_v29  ;;  %2379 = vmatpush1.bf16.msra.mxu1 %v2742_v29 }
  0x5a   : > { %2344 = vmatprep.subr.bf16.mxu0 %v2583_v3  ;;  %2380 = vmatprep.subr.bf16.mxu1 %v2583_v3 }
  0x5d   : > { %2346 = vmatpush1.bf16.msra.mxu0 %v2754_v32  ;;  %2382 = vmatpush1.bf16.msra.mxu1 %v2754_v32 }
  0x5e   : > { %2347 = vmatprep.subr.bf16.mxu0 %v2583_v3  ;;  %2383 = vmatprep.subr.bf16.mxu1 %v2583_v3 }
  0x61   : > { %2349 = vmatpush1.bf16.msra.mxu0 %v2766_v35  ;;  %2385 = vmatpush1.bf16.msra.mxu1 %v2766_v35 }
  0x62   : > { %2350 = vmatprep.subr.bf16.mxu0 %v2583_v3  ;;  %2386 = vmatprep.subr.bf16.mxu1 %v2583_v3 }
  0x65   : > { %2352 = vmatpush1.bf16.msra.mxu0 %v2778_v38  ;;  %2388 = vmatpush1.bf16.msra.mxu1 %v2778_v38 }
  0x66   : > { %2389 = vmatprep.subr.bf16.mxu0 %v2583_v3  ;;  %2425 = vmatprep.subr.bf16.mxu1 %v2583_v3 }
  0x68   : > { %814 = vmatmul.mubr.f32.vlgmr.msra.gmra.mrb[4].mxu0 %v2205_v47  ;;  %1038 = vmatmul.mubr.f32.vlgmr.msra.gmra.mrb[4].mxu1 %v2211_v48 }
  0x69   : > { %2391 = vmatpush1.bf16.msra.mxu0 %v2639_v4  ;;  %2427 = vmatpush1.bf16.msra.mxu1 %v2639_v4 }
  0x6a   : > { %2392 = vmatprep.subr.bf16.mxu0 %v2583_v3  ;;  %2428 = vmatprep.subr.bf16.mxu1 %v2583_v3 }
  0x6b   : > { %2210 = vmatprep.mubr.msk.f32.mxu0 %vm293_vm0, %v2208_v49  ;;  %2216 = vmatprep.mubr.msk.f32.mxu1 %vm293_vm0, %v2214_v50 }
  0x6c   : > { %819 = vmatmul.mubr.f32.gmra.mrb[6].mxu0 %v2207_v51  ;;  %1043 = vmatmul.mubr.f32.gmra.mrb[6].mxu1 %v2213_v52 }
  0x6d   : > { %2394 = vmatpush1.bf16.msra.mxu0 %v2648_v6  ;;  %2430 = vmatpush1.bf16.msra.mxu1 %v2648_v6 }
  0x6e   : > { %2395 = vmatprep.subr.bf16.mxu0 %v2583_v3  ;;  %2431 = vmatprep.subr.bf16.mxu1 %v2583_v3 }
  0x6f   : > { %2221 = vmatprep.mubr.msk.f32.mxu0 %vm293_vm0, %v2218_v53  ;;  %2227 = vmatprep.mubr.msk.f32.mxu1 %vm293_vm0, %v2224_v54 }
  0x71   : > { %2397 = vmatpush1.bf16.msra.mxu0 %v2666_v9  ;;  %2433 = vmatpush1.bf16.msra.mxu1 %v2666_v9 }
  0x72   : > { %2398 = vmatprep.subr.bf16.mxu0 %v2583_v3  ;;  %2434 = vmatprep.subr.bf16.mxu1 %v2583_v3 }
  0x75   : > { %2400 = vmatpush1.bf16.msra.mxu0 %v2682_v14  ;;  %2436 = vmatpush1.bf16.msra.mxu1 %v2682_v14 }
  0x76   : > { %2401 = vmatprep.subr.bf16.mxu0 %v2583_v3  ;;  %2437 = vmatprep.subr.bf16.mxu1 %v2583_v3 }
  0x79   : > { %2403 = vmatpush1.bf16.msra.mxu0 %v2694_v17  ;;  %2439 = vmatpush1.bf16.msra.mxu1 %v2694_v17 }
  0x7a   : > { %2404 = vmatprep.subr.bf16.mxu0 %v2583_v3  ;;  %2440 = vmatprep.subr.bf16.mxu1 %v2583_v3 }
  0x7d   : > { %2406 = vmatpush1.bf16.msra.mxu0 %v2706_v20  ;;  %2442 = vmatpush1.bf16.msra.mxu1 %v2706_v20 }
  0x7e   : > { %2407 = vmatprep.subr.bf16.mxu0 %v2583_v3  ;;  %2443 = vmatprep.subr.bf16.mxu1 %v2583_v3 }
  0x81   : > { %2409 = vmatpush1.bf16.msra.mxu0 %v2718_v23  ;;  %2445 = vmatpush1.bf16.msra.mxu1 %v2718_v23 }
  0x82   : > { %2410 = vmatprep.subr.bf16.mxu0 %v2583_v3  ;;  %2446 = vmatprep.subr.bf16.mxu1 %v2583_v3 }
  0x85   : > { %2412 = vmatpush1.bf16.msra.mxu0 %v2730_v26  ;;  %2448 = vmatpush1.bf16.msra.mxu1 %v2730_v26 }
  0x86   : > { %2413 = vmatprep.subr.bf16.mxu0 %v2583_v3  ;;  %2449 = vmatprep.subr.bf16.mxu1 %v2583_v3 }
  0x89   : > { %2415 = vmatpush1.bf16.msra.mxu0 %v2742_v29  ;;  %2451 = vmatpush1.bf16.msra.mxu1 %v2742_v29 }
  0x8a   : > { %2416 = vmatprep.subr.bf16.mxu0 %v2583_v3  ;;  %2452 = vmatprep.subr.bf16.mxu1 %v2583_v3 }
  0x8d   : > { %2418 = vmatpush1.bf16.msra.mxu0 %v2754_v32  ;;  %2454 = vmatpush1.bf16.msra.mxu1 %v2754_v32 }
  0x8e   : > { %2419 = vmatprep.subr.bf16.mxu0 %v2583_v3  ;;  %2455 = vmatprep.subr.bf16.mxu1 %v2583_v3 }
  0x91   : > { %2421 = vmatpush1.bf16.msra.mxu0 %v2766_v35  ;;  %2457 = vmatpush1.bf16.msra.mxu1 %v2766_v35 }
  0x92   : > { %2422 = vmatprep.subr.bf16.mxu0 %v2583_v3  ;;  %2458 = vmatprep.subr.bf16.mxu1 %v2583_v3 }
  0x95   : > { %2424 = vmatpush1.bf16.msra.mxu0 %v2778_v38  ;;  %2460 = vmatpush1.bf16.msra.mxu1 %v2778_v38 }
  0x96   : > { %2461 = vmatprep.subr.bf16.mxu0 %v2583_v3  ;;  %2497 = vmatprep.subr.bf16.mxu1 %v2583_v3 }
  0x98   : > { %1262 = vmatmul.mubr.f32.vlgmr.msra.gmra.mrb[8].mxu0 %v2217_v55  ;;  %1486 = vmatmul.mubr.f32.vlgmr.msra.gmra.mrb[8].mxu1 %v2223_v56 }
  0x99   : > { %2463 = vmatpush1.bf16.msra.mxu0 %v2639_v4  ;;  %2499 = vmatpush1.bf16.msra.mxu1 %v2639_v4  ;;  %v2231_v4 = vld [vmem:[%s2662_s8 + $0xd0] sm:$0xff] }
  0x9a   : > { %2464 = vmatprep.subr.bf16.mxu0 %v2583_v3  ;;  %2500 = vmatprep.subr.bf16.mxu1 %v2583_v3 }
  0x9b   : > { %2222 = vmatprep.mubr.msk.f32.mxu0 %vm293_vm0, %v2220_v57  ;;  %2228 = vmatprep.mubr.msk.f32.mxu1 %vm293_vm0, %v2226_v58 }
  0x9c   : > { %1267 = vmatmul.mubr.f32.gmra.mrb[10].mxu0 %v2219_v59  ;;  %1491 = vmatmul.mubr.f32.gmra.mrb[10].mxu1 %v2225_v60 }
  0x9d   : > { %2466 = vmatpush1.bf16.msra.mxu0 %v2648_v6  ;;  %2502 = vmatpush1.bf16.msra.mxu1 %v2648_v6  ;;  %v375_v6 = vlaneseq }
  0x9e   : > { %2467 = vmatprep.subr.bf16.mxu0 %v2583_v3  ;;  %2503 = vmatprep.subr.bf16.mxu1 %v2583_v3 }
  0x9f   : > { %2233 = vmatprep.mubr.msk.f32.mxu0 %vm293_vm0, %v2230_v61  ;;  %2239 = vmatprep.mubr.msk.f32.mxu1 %vm293_vm0, %v2236_v62 }
  0xa1   : > { %2469 = vmatpush1.bf16.msra.mxu0 %v2666_v9  ;;  %2505 = vmatpush1.bf16.msra.mxu1 %v2666_v9 }
  0xa2   : > { %2470 = vmatprep.subr.bf16.mxu0 %v2583_v3  ;;  %2506 = vmatprep.subr.bf16.mxu1 %v2583_v3 }
  0xa5   : > { %2472 = vmatpush1.bf16.msra.mxu0 %v2682_v14  ;;  %2508 = vmatpush1.bf16.msra.mxu1 %v2682_v14 }
  0xa6   : > { %2473 = vmatprep.subr.bf16.mxu0 %v2583_v3  ;;  %2509 = vmatprep.subr.bf16.mxu1 %v2583_v3 }
  0xa9   : > { %2475 = vmatpush1.bf16.msra.mxu0 %v2694_v17  ;;  %2511 = vmatpush1.bf16.msra.mxu1 %v2694_v17 }
  0xaa   : > { %2476 = vmatprep.subr.bf16.mxu0 %v2583_v3  ;;  %2512 = vmatprep.subr.bf16.mxu1 %v2583_v3 }
  0xad   : > { %2478 = vmatpush1.bf16.msra.mxu0 %v2706_v20  ;;  %2514 = vmatpush1.bf16.msra.mxu1 %v2706_v20 }
  0xae   : > { %2479 = vmatprep.subr.bf16.mxu0 %v2583_v3  ;;  %2515 = vmatprep.subr.bf16.mxu1 %v2583_v3 }
  0xb1   : > { %2481 = vmatpush1.bf16.msra.mxu0 %v2718_v23  ;;  %2517 = vmatpush1.bf16.msra.mxu1 %v2718_v23 }
  0xb2   : > { %2482 = vmatprep.subr.bf16.mxu0 %v2583_v3  ;;  %2518 = vmatprep.subr.bf16.mxu1 %v2583_v3 }
  0xb5   : > { %2484 = vmatpush1.bf16.msra.mxu0 %v2730_v26  ;;  %2520 = vmatpush1.bf16.msra.mxu1 %v2730_v26 }
  0xb6   : > { %2485 = vmatprep.subr.bf16.mxu0 %v2583_v3  ;;  %2521 = vmatprep.subr.bf16.mxu1 %v2583_v3 }
  0xb9   : > { %2487 = vmatpush1.bf16.msra.mxu0 %v2742_v29  ;;  %2523 = vmatpush1.bf16.msra.mxu1 %v2742_v29 }
  0xba   : > { %2488 = vmatprep.subr.bf16.mxu0 %v2583_v3  ;;  %2524 = vmatprep.subr.bf16.mxu1 %v2583_v3 }
  0xbd   : > { %2490 = vmatpush1.bf16.msra.mxu0 %v2754_v32  ;;  %2526 = vmatpush1.bf16.msra.mxu1 %v2754_v32 }
  0xbe   : > { %2491 = vmatprep.subr.bf16.mxu0 %v2583_v3  ;;  %2527 = vmatprep.subr.bf16.mxu1 %v2583_v3 }
  0xc1   : > { %2493 = vmatpush1.bf16.msra.mxu0 %v2766_v35  ;;  %2529 = vmatpush1.bf16.msra.mxu1 %v2766_v35 }
  0xc2   : > { %2494 = vmatprep.subr.bf16.mxu0 %v2583_v3  ;;  %2530 = vmatprep.subr.bf16.mxu1 %v2583_v3  ;;  %v2972_v3 = vshrl.u32 %v375_v6, 7 }
  0xc4   : > { %v377_v9 = vsub.s32 0, %v2972_v3  ;;  %v602_v10 = vsub.s32 1, %v2972_v3  ;;  %v2990_v19 = vsub.s32 %v386_v12, %v2972_v3 }
  0xc5   : > { %2496 = vmatpush1.bf16.msra.mxu0 %v2778_v38  ;;  %2532 = vmatpush1.bf16.msra.mxu1 %v2778_v38 }
  0xc6   : > { %v378_v14 = vrot.slane %v2979_v11, %v377_v9  ;;  %v603_v15 = vrot.slane %v2979_v11, %v602_v10 }
  0xc8   : > { %1710 = vmatmul.mubr.f32.vlgmr.msra.gmra.mrb[12].mxu0 %v2229_v63  ;;  %1934 = vmatmul.mubr.f32.vlgmr.msra.gmra.mrb[12].mxu1 %v2235_v0 }
  0xc9   : > { %2234 = vmatprep.mubr.msk.f32.mxu0 %vm293_vm0, %v2232_v1  ;;  %2240 = vmatprep.mubr.msk.f32.mxu1 %vm293_vm0, %v2238_v2 }
  0xcc   : > { %1715 = vmatmul.mubr.f32.gmra.mrb[14].mxu0 %v2231_v4  ;;  %1939 = vmatmul.mubr.f32.gmra.mrb[14].mxu1 %v2237_v5 }
 0x10b   : > { %v366_v16 = vpop.f32.mrb[0].mxu0  ;;  %v591_v17 = vpop.f32.mrb[0].mxu1 }
 0x10c   : > { %v367_v18 = vadd.f32 %v366_v16, %v2984_v13  ;;  %v592_v20 = vadd.f32 %v591_v17, %v2984_v13  ;;  %v368_v21 = vpop.f32.mrb[1].mxu0  ;;  %v593_v22 = vpop.f32.mrb[1].mxu1 }
 0x10e   : > { %v379_v23 = vadd.f32 %v378_v14, %v367_v18  ;;  %v604_v24 = vadd.f32 %v603_v15, %v592_v20 }
 0x10f   : > { %v371_v26 = vpop.f32.mrb[2].mxu0  ;;  %v596_v27 = vpop.f32.mrb[2].mxu1 }
 0x110   : > { %v383_v28 = vcombine.high %v379_v23, %v379_v23  ;;  %v390_v29 = vrot.slane %v379_v23, %v2990_v19  ;;  %v608_v30 = vcombine.high %v604_v24, %v604_v24  ;;  %v615_v31 = vrot.slane %v604_v24, %v2990_v19  ;;  %v373_v32 = vpop.f32.mrb[3].mxu0  ;;  %v598_v33 = vpop.f32.mrb[3].mxu1 }
 0x111   : > { %v372_v34 = vadd.f32 %v371_v26, %v2997_v25  ;;  %v597_v35 = vadd.f32 %v596_v27, %v2997_v25  ;;  %v826_v27 = vsub.s32 2, %v2972_v3 }
 0x112   : > { %v397_v36 = vrot.slane %v383_v28, %v2990_v19  ;;  %v398_v37 = vcombine.high %v390_v29, %v390_v29  ;;  %v406_v38 = vrot.slane %v390_v29, %v2990_v19  ;;  %v622_v39 = vrot.slane %v608_v30, %v2990_v19 }
 0x113   : > { %v623_v40 = vcombine.high %v615_v31, %v615_v31  ;;  %v631_v41 = vrot.slane %v615_v31, %v2990_v19  ;;  %v380_v42 = vadd.f32 %v378_v14, %v372_v34  ;;  %v605_v43 = vadd.f32 %v603_v15, %v597_v35 }
 0x114   : > { %v399_v44 = vcombine.high %v397_v36, %v397_v36  ;;  %v413_v45 = vrot.slane %v397_v36, %v2990_v19  ;;  %v420_v46 = vrot.slane %v398_v37, %v2990_v19  ;;  %v428_v47 = vcombine.high %v406_v38, %v406_v38  ;;  %498 = vst.msk [vmem:[%s3004_s15] sm:$0x1] %vm497_vm1, %v406_v38 }
 0x115   : > { %v624_v48 = vcombine.high %v622_v39, %v622_v39  ;;  %v638_v49 = vrot.slane %v622_v39, %v2990_v19  ;;  %v645_v50 = vrot.slane %v623_v40, %v2990_v19  ;;  %v653_v51 = vcombine.high %v631_v41, %v631_v41  ;;  %722 = vst.msk [vmem:[%s3004_s15 + $0x1] sm:$0x1] %vm497_vm1, %v631_v41 }
 0x116   : > { %v427_v52 = vrot.slane %v399_v44, %v2990_v19  ;;  %v429_v53 = vcombine.high %v413_v45, %v413_v45  ;;  %v430_v54 = vcombine.high %v420_v46, %v420_v46  ;;  %499 = vst.msk [vmem:[%s3004_s15 + $0x8] sm:$0x1] %vm497_vm1, %v420_v46  ;;  %500 = vst.msk [vmem:[%s3004_s15 + $0x10] sm:$0x1] %vm497_vm1, %v428_v47  ;;  %v1050_v28 = vsub.s32 3, %v2972_v3 }
 0x117   : > { %502 = vst.msk [vmem:[%s3004_s15 + $0x20] sm:$0x1] %vm497_vm1, %v413_v45  ;;  %v432_v55 = vcombine.high %v380_v42, %v380_v42  ;;  %v652_v56 = vrot.slane %v624_v48, %v2990_v19  ;;  %v654_v57 = vcombine.high %v638_v49, %v638_v49  ;;  %v655_v58 = vcombine.high %v645_v50, %v645_v50 }
 0x118   : > { %723 = vst.msk [vmem:[%s3004_s15 + $0x9] sm:$0x1] %vm497_vm1, %v645_v50  ;;  %724 = vst.msk [vmem:[%s3004_s15 + $0x11] sm:$0x1] %vm497_vm1, %v653_v51  ;;  %v439_v59 = vrot.slane %v380_v42, %v2990_v19  ;;  %v431_v60 = vcombine.high %v427_v52, %v427_v52  ;;  %v657_v62 = vcombine.high %v605_v43, %v605_v43 }
 0x119   : > { %726 = vst.msk [vmem:[%s3004_s15 + $0x21] sm:$0x1] %vm497_vm1, %v638_v49  ;;  %501 = vst.msk [vmem:[%s3004_s15 + $0x18] sm:$0x1] %vm497_vm1, %v430_v54  ;;  %v446_v61 = vrot.slane %v432_v55, %v2990_v19  ;;  %v664_v63 = vrot.slane %v605_v43, %v2990_v19  ;;  %v656_v0 = vcombine.high %v652_v56, %v652_v56 }
 0x11a   : > { %503 = vst.msk [vmem:[%s3004_s15 + $0x28] sm:$0x1] %vm497_vm1, %v427_v52  ;;  %504 = vst.msk [vmem:[%s3004_s15 + $0x30] sm:$0x1] %vm497_vm1, %v429_v53  ;;  %v447_v1 = vcombine.high %v439_v59, %v439_v59  ;;  %v455_v2 = vrot.slane %v439_v59, %v2990_v19  ;;  %v671_v6 = vrot.slane %v657_v62, %v2990_v19 }
 0x11b   : > { %725 = vst.msk [vmem:[%s3004_s15 + $0x19] sm:$0x1] %vm497_vm1, %v655_v58  ;;  %727 = vst.msk [vmem:[%s3004_s15 + $0x29] sm:$0x1] %vm497_vm1, %v652_v56  ;;  %v448_v4 = vcombine.high %v446_v61, %v446_v61  ;;  %v462_v5 = vrot.slane %v446_v61, %v2990_v19  ;;  %v672_v7 = vcombine.high %v664_v63, %v664_v63 }
 0x11c   : > { %728 = vst.msk [vmem:[%s3004_s15 + $0x31] sm:$0x1] %vm497_vm1, %v654_v57  ;;  %505 = vst.msk [vmem:[%s3004_s15 + $0x38] sm:$0x1] %vm497_vm1, %v431_v60  ;;  %v469_v8 = vrot.slane %v447_v1, %v2990_v19  ;;  %v477_v9 = vcombine.high %v455_v2, %v455_v2  ;;  %v680_v10 = vrot.slane %v664_v63, %v2990_v19 }
 0x11d   : > { %729 = vst.msk [vmem:[%s3004_s15 + $0x39] sm:$0x1] %vm497_vm1, %v656_v0  ;;  %506 = vst.msk [vmem:[%s3004_s15 + $0x40] sm:$0x1] %vm497_vm1, %v455_v2  ;;  %v476_v12 = vrot.slane %v448_v4, %v2990_v19  ;;  %v478_v14 = vcombine.high %v462_v5, %v462_v5  ;;  %v673_v15 = vcombine.high %v671_v6, %v671_v6 }
 0x11e   : > { %510 = vst.msk [vmem:[%s3004_s15 + $0x60] sm:$0x1] %vm497_vm1, %v462_v5  ;;  %v687_v16 = vrot.slane %v671_v6, %v2990_v19  ;;  %v479_v17 = vcombine.high %v469_v8, %v469_v8  ;;  %507 = vst.msk [vmem:[%s3004_s15 + $0x48] sm:$0x1] %vm497_vm1, %v469_v8  ;;  %v694_v18 = vrot.slane %v672_v7, %v2990_v19 }
 0x11f   : > { %508 = vst.msk [vmem:[%s3004_s15 + $0x50] sm:$0x1] %vm497_vm1, %v477_v9  ;;  %v702_v20 = vcombine.high %v680_v10, %v680_v10  ;;  %730 = vst.msk [vmem:[%s3004_s15 + $0x41] sm:$0x1] %vm497_vm1, %v680_v10  ;;  %v480_v21 = vcombine.high %v476_v12, %v476_v12  ;;  %v701_v22 = vrot.slane %v673_v15, %v2990_v19 }
 0x120   : > { %511 = vst.msk [vmem:[%s3004_s15 + $0x68] sm:$0x1] %vm497_vm1, %v476_v12  ;;  %512 = vst.msk [vmem:[%s3004_s15 + $0x70] sm:$0x1] %vm497_vm1, %v478_v14  ;;  %v703_v23 = vcombine.high %v687_v16, %v687_v16  ;;  %v704_v24 = vcombine.high %v694_v18, %v694_v18  ;;  %v827_v29 = vrot.slane %v2979_v11, %v826_v27 }
 0x121   : > { %734 = vst.msk [vmem:[%s3004_s15 + $0x61] sm:$0x1] %vm497_vm1, %v687_v16  ;;  %509 = vst.msk [vmem:[%s3004_s15 + $0x58] sm:$0x1] %vm497_vm1, %v479_v17  ;;  %v705_v26 = vcombine.high %v701_v22, %v701_v22  ;;  %v1051_v30 = vrot.slane %v2979_v11, %v1050_v28 }
 0x122   : > { %731 = vst.msk [vmem:[%s3004_s15 + $0x49] sm:$0x1] %vm497_vm1, %v694_v18  ;;  %732 = vst.msk [vmem:[%s3004_s15 + $0x51] sm:$0x1] %vm497_vm1, %v702_v20 }
 0x123   : > { %513 = vst.msk [vmem:[%s3004_s15 + $0x78] sm:$0x1] %vm497_vm1, %v480_v21  ;;  %735 = vst.msk [vmem:[%s3004_s15 + $0x69] sm:$0x1] %vm497_vm1, %v701_v22 }
 0x124   : > { %736 = vst.msk [vmem:[%s3004_s15 + $0x71] sm:$0x1] %vm497_vm1, %v703_v23  ;;  %733 = vst.msk [vmem:[%s3004_s15 + $0x59] sm:$0x1] %vm497_vm1, %v704_v24 }
 0x125   : > { %737 = vst.msk [vmem:[%s3004_s15 + $0x79] sm:$0x1] %vm497_vm1, %v705_v26 }
 0x13b   : > { %v815_v31 = vpop.f32.mrb[4].mxu0  ;;  %v1039_v32 = vpop.f32.mrb[4].mxu1 }
 0x13c   : > { %v816_v33 = vadd.f32 %v815_v31, %v2984_v13  ;;  %v1040_v34 = vadd.f32 %v1039_v32, %v2984_v13  ;;  %v817_v35 = vpop.f32.mrb[5].mxu0  ;;  %v1041_v36 = vpop.f32.mrb[5].mxu1 }
 0x13e   : > { %v828_v37 = vadd.f32 %v827_v29, %v816_v33  ;;  %v1052_v38 = vadd.f32 %v1051_v30, %v1040_v34 }
 0x13f   : > { %v820_v39 = vpop.f32.mrb[6].mxu0  ;;  %v1044_v40 = vpop.f32.mrb[6].mxu1 }
 0x140   : > { %v832_v41 = vcombine.high %v828_v37, %v828_v37  ;;  %v839_v42 = vrot.slane %v828_v37, %v2990_v19  ;;  %v1056_v43 = vcombine.high %v1052_v38, %v1052_v38  ;;  %v1063_v44 = vrot.slane %v1052_v38, %v2990_v19  ;;  %v822_v45 = vpop.f32.mrb[7].mxu0  ;;  %v1046_v46 = vpop.f32.mrb[7].mxu1 }
 0x141   : > { %v821_v47 = vadd.f32 %v820_v39, %v2997_v25  ;;  %v1045_v48 = vadd.f32 %v1044_v40, %v2997_v25  ;;  %v1274_v40 = vsub.s32 4, %v2972_v3 }
 0x142   : > { %v846_v49 = vrot.slane %v832_v41, %v2990_v19  ;;  %v847_v50 = vcombine.high %v839_v42, %v839_v42  ;;  %v855_v51 = vrot.slane %v839_v42, %v2990_v19  ;;  %v1070_v52 = vrot.slane %v1056_v43, %v2990_v19 }
 0x143   : > { %v1071_v53 = vcombine.high %v1063_v44, %v1063_v44  ;;  %v1079_v54 = vrot.slane %v1063_v44, %v2990_v19  ;;  %v829_v55 = vadd.f32 %v827_v29, %v821_v47  ;;  %v1053_v56 = vadd.f32 %v1051_v30, %v1045_v48 }
 0x144   : > { %v848_v57 = vcombine.high %v846_v49, %v846_v49  ;;  %v862_v58 = vrot.slane %v846_v49, %v2990_v19  ;;  %v869_v59 = vrot.slane %v847_v50, %v2990_v19  ;;  %v877_v60 = vcombine.high %v855_v51, %v855_v51  ;;  %946 = vst.msk [vmem:[%s3004_s15 + $0x2] sm:$0x1] %vm497_vm1, %v855_v51 }
 0x145   : > { %v1072_v61 = vcombine.high %v1070_v52, %v1070_v52  ;;  %v1086_v62 = vrot.slane %v1070_v52, %v2990_v19  ;;  %v1093_v63 = vrot.slane %v1071_v53, %v2990_v19  ;;  %v1101_v0 = vcombine.high %v1079_v54, %v1079_v54  ;;  %1170 = vst.msk [vmem:[%s3004_s15 + $0x3] sm:$0x1] %vm497_vm1, %v1079_v54 }
 0x146   : > { %v876_v1 = vrot.slane %v848_v57, %v2990_v19  ;;  %v878_v2 = vcombine.high %v862_v58, %v862_v58  ;;  %v879_v4 = vcombine.high %v869_v59, %v869_v59  ;;  %947 = vst.msk [vmem:[%s3004_s15 + $0xa] sm:$0x1] %vm497_vm1, %v869_v59  ;;  %948 = vst.msk [vmem:[%s3004_s15 + $0x12] sm:$0x1] %vm497_vm1, %v877_v60  ;;  %v1498_v41 = vsub.s32 5, %v2972_v3 }
 0x147   : > { %950 = vst.msk [vmem:[%s3004_s15 + $0x22] sm:$0x1] %vm497_vm1, %v862_v58  ;;  %v881_v5 = vcombine.high %v829_v55, %v829_v55  ;;  %v1100_v6 = vrot.slane %v1072_v61, %v2990_v19  ;;  %v1102_v7 = vcombine.high %v1086_v62, %v1086_v62  ;;  %v1103_v8 = vcombine.high %v1093_v63, %v1093_v63 }
 0x148   : > { %1171 = vst.msk [vmem:[%s3004_s15 + $0xb] sm:$0x1] %vm497_vm1, %v1093_v63  ;;  %1172 = vst.msk [vmem:[%s3004_s15 + $0x13] sm:$0x1] %vm497_vm1, %v1101_v0  ;;  %v888_v9 = vrot.slane %v829_v55, %v2990_v19  ;;  %v880_v10 = vcombine.high %v876_v1, %v876_v1  ;;  %v1105_v14 = vcombine.high %v1053_v56, %v1053_v56 }
 0x149   : > { %1174 = vst.msk [vmem:[%s3004_s15 + $0x23] sm:$0x1] %vm497_vm1, %v1086_v62  ;;  %949 = vst.msk [vmem:[%s3004_s15 + $0x1a] sm:$0x1] %vm497_vm1, %v879_v4  ;;  %v895_v12 = vrot.slane %v881_v5, %v2990_v19  ;;  %v1112_v15 = vrot.slane %v1053_v56, %v2990_v19  ;;  %v1104_v16 = vcombine.high %v1100_v6, %v1100_v6 }
 0x14a   : > { %951 = vst.msk [vmem:[%s3004_s15 + $0x2a] sm:$0x1] %vm497_vm1, %v876_v1  ;;  %952 = vst.msk [vmem:[%s3004_s15 + $0x32] sm:$0x1] %vm497_vm1, %v878_v2  ;;  %v896_v17 = vcombine.high %v888_v9, %v888_v9  ;;  %v904_v18 = vrot.slane %v888_v9, %v2990_v19  ;;  %v1119_v22 = vrot.slane %v1105_v14, %v2990_v19 }
 0x14b   : > { %1173 = vst.msk [vmem:[%s3004_s15 + $0x1b] sm:$0x1] %vm497_vm1, %v1103_v8  ;;  %1175 = vst.msk [vmem:[%s3004_s15 + $0x2b] sm:$0x1] %vm497_vm1, %v1100_v6  ;;  %v897_v20 = vcombine.high %v895_v12, %v895_v12  ;;  %v911_v21 = vrot.slane %v895_v12, %v2990_v19  ;;  %v1120_v23 = vcombine.high %v1112_v15, %v1112_v15 }
 0x14c   : > { %1176 = vst.msk [vmem:[%s3004_s15 + $0x33] sm:$0x1] %vm497_vm1, %v1102_v7  ;;  %953 = vst.msk [vmem:[%s3004_s15 + $0x3a] sm:$0x1] %vm497_vm1, %v880_v10  ;;  %v918_v24 = vrot.slane %v896_v17, %v2990_v19  ;;  %v926_v26 = vcombine.high %v904_v18, %v904_v18  ;;  %v1128_v27 = vrot.slane %v1112_v15, %v2990_v19 }
 0x14d   : > { %1177 = vst.msk [vmem:[%s3004_s15 + $0x3b] sm:$0x1] %vm497_vm1, %v1104_v16  ;;  %954 = vst.msk [vmem:[%s3004_s15 + $0x42] sm:$0x1] %vm497_vm1, %v904_v18  ;;  %v925_v28 = vrot.slane %v897_v20, %v2990_v19  ;;  %v927_v29 = vcombine.high %v911_v21, %v911_v21  ;;  %v1121_v30 = vcombine.high %v1119_v22, %v1119_v22 }
 0x14e   : > { %958 = vst.msk [vmem:[%s3004_s15 + $0x62] sm:$0x1] %vm497_vm1, %v911_v21  ;;  %v1135_v31 = vrot.slane %v1119_v22, %v2990_v19  ;;  %v928_v32 = vcombine.high %v918_v24, %v918_v24  ;;  %955 = vst.msk [vmem:[%s3004_s15 + $0x4a] sm:$0x1] %vm497_vm1, %v918_v24  ;;  %v1142_v33 = vrot.slane %v1120_v23, %v2990_v19 }
 0x14f   : > { %956 = vst.msk [vmem:[%s3004_s15 + $0x52] sm:$0x1] %vm497_vm1, %v926_v26  ;;  %v1150_v34 = vcombine.high %v1128_v27, %v1128_v27  ;;  %1178 = vst.msk [vmem:[%s3004_s15 + $0x43] sm:$0x1] %vm497_vm1, %v1128_v27  ;;  %v929_v35 = vcombine.high %v925_v28, %v925_v28  ;;  %v1149_v36 = vrot.slane %v1121_v30, %v2990_v19 }
 0x150   : > { %959 = vst.msk [vmem:[%s3004_s15 + $0x6a] sm:$0x1] %vm497_vm1, %v925_v28  ;;  %960 = vst.msk [vmem:[%s3004_s15 + $0x72] sm:$0x1] %vm497_vm1, %v927_v29  ;;  %v1151_v37 = vcombine.high %v1135_v31, %v1135_v31  ;;  %v1152_v38 = vcombine.high %v1142_v33, %v1142_v33  ;;  %v1275_v42 = vrot.slane %v2979_v11, %v1274_v40 }
 0x151   : > { %1182 = vst.msk [vmem:[%s3004_s15 + $0x63] sm:$0x1] %vm497_vm1, %v1135_v31  ;;  %957 = vst.msk [vmem:[%s3004_s15 + $0x5a] sm:$0x1] %vm497_vm1, %v928_v32  ;;  %v1153_v39 = vcombine.high %v1149_v36, %v1149_v36  ;;  %v1499_v43 = vrot.slane %v2979_v11, %v1498_v41 }
 0x152   : > { %1179 = vst.msk [vmem:[%s3004_s15 + $0x4b] sm:$0x1] %vm497_vm1, %v1142_v33  ;;  %1180 = vst.msk [vmem:[%s3004_s15 + $0x53] sm:$0x1] %vm497_vm1, %v1150_v34 }
 0x153   : > { %961 = vst.msk [vmem:[%s3004_s15 + $0x7a] sm:$0x1] %vm497_vm1, %v929_v35  ;;  %1183 = vst.msk [vmem:[%s3004_s15 + $0x6b] sm:$0x1] %vm497_vm1, %v1149_v36 }
 0x154   : > { %1184 = vst.msk [vmem:[%s3004_s15 + $0x73] sm:$0x1] %vm497_vm1, %v1151_v37  ;;  %1181 = vst.msk [vmem:[%s3004_s15 + $0x5b] sm:$0x1] %vm497_vm1, %v1152_v38 }
 0x155   : > { %1185 = vst.msk [vmem:[%s3004_s15 + $0x7b] sm:$0x1] %vm497_vm1, %v1153_v39 }
 0x16b   : > { %v1263_v44 = vpop.f32.mrb[8].mxu0  ;;  %v1487_v45 = vpop.f32.mrb[8].mxu1 }
 0x16c   : > { %v1264_v46 = vadd.f32 %v1263_v44, %v2984_v13  ;;  %v1488_v47 = vadd.f32 %v1487_v45, %v2984_v13  ;;  %v1265_v48 = vpop.f32.mrb[9].mxu0  ;;  %v1489_v49 = vpop.f32.mrb[9].mxu1 }
 0x16e   : > { %v1276_v50 = vadd.f32 %v1275_v42, %v1264_v46  ;;  %v1500_v51 = vadd.f32 %v1499_v43, %v1488_v47 }
 0x16f   : > { %v1268_v52 = vpop.f32.mrb[10].mxu0  ;;  %v1492_v53 = vpop.f32.mrb[10].mxu1 }
 0x170   : > { %v1280_v54 = vcombine.high %v1276_v50, %v1276_v50  ;;  %v1287_v55 = vrot.slane %v1276_v50, %v2990_v19  ;;  %v1504_v56 = vcombine.high %v1500_v51, %v1500_v51  ;;  %v1511_v57 = vrot.slane %v1500_v51, %v2990_v19  ;;  %v1270_v58 = vpop.f32.mrb[11].mxu0  ;;  %v1494_v59 = vpop.f32.mrb[11].mxu1 }
 0x171   : > { %v1269_v60 = vadd.f32 %v1268_v52, %v2997_v25  ;;  %v1493_v61 = vadd.f32 %v1492_v53, %v2997_v25  ;;  %v1722_v53 = vsub.s32 6, %v2972_v3 }
 0x172   : > { %v1294_v62 = vrot.slane %v1280_v54, %v2990_v19  ;;  %v1295_v63 = vcombine.high %v1287_v55, %v1287_v55  ;;  %v1303_v0 = vrot.slane %v1287_v55, %v2990_v19  ;;  %v1518_v1 = vrot.slane %v1504_v56, %v2990_v19 }
 0x173   : > { %v1519_v2 = vcombine.high %v1511_v57, %v1511_v57  ;;  %v1527_v4 = vrot.slane %v1511_v57, %v2990_v19  ;;  %v1277_v5 = vadd.f32 %v1275_v42, %v1269_v60  ;;  %v1501_v6 = vadd.f32 %v1499_v43, %v1493_v61 }
 0x174   : > { %v1296_v7 = vcombine.high %v1294_v62, %v1294_v62  ;;  %v1310_v8 = vrot.slane %v1294_v62, %v2990_v19  ;;  %v1317_v9 = vrot.slane %v1295_v63, %v2990_v19  ;;  %v1325_v10 = vcombine.high %v1303_v0, %v1303_v0  ;;  %1394 = vst.msk [vmem:[%s3004_s15 + $0x4] sm:$0x1] %vm497_vm1, %v1303_v0 }
 0x175   : > { %v1520_v12 = vcombine.high %v1518_v1, %v1518_v1  ;;  %v1534_v14 = vrot.slane %v1518_v1, %v2990_v19  ;;  %v1541_v15 = vrot.slane %v1519_v2, %v2990_v19  ;;  %v1549_v16 = vcombine.high %v1527_v4, %v1527_v4  ;;  %1618 = vst.msk [vmem:[%s3004_s15 + $0x5] sm:$0x1] %vm497_vm1, %v1527_v4 }
 0x176   : > { %v1324_v17 = vrot.slane %v1296_v7, %v2990_v19  ;;  %v1326_v18 = vcombine.high %v1310_v8, %v1310_v8  ;;  %v1327_v20 = vcombine.high %v1317_v9, %v1317_v9  ;;  %1395 = vst.msk [vmem:[%s3004_s15 + $0xc] sm:$0x1] %vm497_vm1, %v1317_v9  ;;  %1396 = vst.msk [vmem:[%s3004_s15 + $0x14] sm:$0x1] %vm497_vm1, %v1325_v10  ;;  %v1946_v54 = vsub.s32 7, %v2972_v3 }
 0x177   : > { %1398 = vst.msk [vmem:[%s3004_s15 + $0x24] sm:$0x1] %vm497_vm1, %v1310_v8  ;;  %v1329_v21 = vcombine.high %v1277_v5, %v1277_v5  ;;  %v1548_v22 = vrot.slane %v1520_v12, %v2990_v19  ;;  %v1550_v23 = vcombine.high %v1534_v14, %v1534_v14  ;;  %v1551_v24 = vcombine.high %v1541_v15, %v1541_v15 }
 0x178   : > { %1619 = vst.msk [vmem:[%s3004_s15 + $0xd] sm:$0x1] %vm497_vm1, %v1541_v15  ;;  %1620 = vst.msk [vmem:[%s3004_s15 + $0x15] sm:$0x1] %vm497_vm1, %v1549_v16  ;;  %v1336_v26 = vrot.slane %v1277_v5, %v2990_v19  ;;  %v1328_v27 = vcombine.high %v1324_v17, %v1324_v17  ;;  %v1553_v29 = vcombine.high %v1501_v6, %v1501_v6 }
 0x179   : > { %1622 = vst.msk [vmem:[%s3004_s15 + $0x25] sm:$0x1] %vm497_vm1, %v1534_v14  ;;  %1397 = vst.msk [vmem:[%s3004_s15 + $0x1c] sm:$0x1] %vm497_vm1, %v1327_v20  ;;  %v1343_v28 = vrot.slane %v1329_v21, %v2990_v19  ;;  %v1560_v30 = vrot.slane %v1501_v6, %v2990_v19  ;;  %v1552_v31 = vcombine.high %v1548_v22, %v1548_v22 }
 0x17a   : > { %1399 = vst.msk [vmem:[%s3004_s15 + $0x2c] sm:$0x1] %vm497_vm1, %v1324_v17  ;;  %1400 = vst.msk [vmem:[%s3004_s15 + $0x34] sm:$0x1] %vm497_vm1, %v1326_v18  ;;  %v1344_v32 = vcombine.high %v1336_v26, %v1336_v26  ;;  %v1352_v33 = vrot.slane %v1336_v26, %v2990_v19  ;;  %v1567_v36 = vrot.slane %v1553_v29, %v2990_v19 }
 0x17b   : > { %1621 = vst.msk [vmem:[%s3004_s15 + $0x1d] sm:$0x1] %vm497_vm1, %v1551_v24  ;;  %1623 = vst.msk [vmem:[%s3004_s15 + $0x2d] sm:$0x1] %vm497_vm1, %v1548_v22  ;;  %v1345_v34 = vcombine.high %v1343_v28, %v1343_v28  ;;  %v1359_v35 = vrot.slane %v1343_v28, %v2990_v19  ;;  %v1568_v37 = vcombine.high %v1560_v30, %v1560_v30 }
 0x17c   : > { %1624 = vst.msk [vmem:[%s3004_s15 + $0x35] sm:$0x1] %vm497_vm1, %v1550_v23  ;;  %1401 = vst.msk [vmem:[%s3004_s15 + $0x3c] sm:$0x1] %vm497_vm1, %v1328_v27  ;;  %v1366_v38 = vrot.slane %v1344_v32, %v2990_v19  ;;  %v1374_v39 = vcombine.high %v1352_v33, %v1352_v33  ;;  %v1576_v40 = vrot.slane %v1560_v30, %v2990_v19 }
 0x17d   : > { %1625 = vst.msk [vmem:[%s3004_s15 + $0x3d] sm:$0x1] %vm497_vm1, %v1552_v31  ;;  %1402 = vst.msk [vmem:[%s3004_s15 + $0x44] sm:$0x1] %vm497_vm1, %v1352_v33  ;;  %v1373_v41 = vrot.slane %v1345_v34, %v2990_v19  ;;  %v1375_v42 = vcombine.high %v1359_v35, %v1359_v35  ;;  %v1569_v43 = vcombine.high %v1567_v36, %v1567_v36 }
 0x17e   : > { %1406 = vst.msk [vmem:[%s3004_s15 + $0x64] sm:$0x1] %vm497_vm1, %v1359_v35  ;;  %v1583_v44 = vrot.slane %v1567_v36, %v2990_v19  ;;  %v1376_v45 = vcombine.high %v1366_v38, %v1366_v38  ;;  %1403 = vst.msk [vmem:[%s3004_s15 + $0x4c] sm:$0x1] %vm497_vm1, %v1366_v38  ;;  %v1590_v46 = vrot.slane %v1568_v37, %v2990_v19 }
 0x17f   : > { %1404 = vst.msk [vmem:[%s3004_s15 + $0x54] sm:$0x1] %vm497_vm1, %v1374_v39  ;;  %v1598_v47 = vcombine.high %v1576_v40, %v1576_v40  ;;  %1626 = vst.msk [vmem:[%s3004_s15 + $0x45] sm:$0x1] %vm497_vm1, %v1576_v40  ;;  %v1377_v48 = vcombine.high %v1373_v41, %v1373_v41  ;;  %v1597_v49 = vrot.slane %v1569_v43, %v2990_v19 }
 0x180   : > { %1407 = vst.msk [vmem:[%s3004_s15 + $0x6c] sm:$0x1] %vm497_vm1, %v1373_v41  ;;  %1408 = vst.msk [vmem:[%s3004_s15 + $0x74] sm:$0x1] %vm497_vm1, %v1375_v42  ;;  %v1599_v50 = vcombine.high %v1583_v44, %v1583_v44  ;;  %v1600_v51 = vcombine.high %v1590_v46, %v1590_v46  ;;  %v1723_v55 = vrot.slane %v2979_v11, %v1722_v53 }
 0x181   : > { %1630 = vst.msk [vmem:[%s3004_s15 + $0x65] sm:$0x1] %vm497_vm1, %v1583_v44  ;;  %1405 = vst.msk [vmem:[%s3004_s15 + $0x5c] sm:$0x1] %vm497_vm1, %v1376_v45  ;;  %v1601_v52 = vcombine.high %v1597_v49, %v1597_v49  ;;  %v1947_v56 = vrot.slane %v2979_v11, %v1946_v54 }
 0x182   : > { %1627 = vst.msk [vmem:[%s3004_s15 + $0x4d] sm:$0x1] %vm497_vm1, %v1590_v46  ;;  %1628 = vst.msk [vmem:[%s3004_s15 + $0x55] sm:$0x1] %vm497_vm1, %v1598_v47 }
 0x183   : > { %1409 = vst.msk [vmem:[%s3004_s15 + $0x7c] sm:$0x1] %vm497_vm1, %v1377_v48  ;;  %1631 = vst.msk [vmem:[%s3004_s15 + $0x6d] sm:$0x1] %vm497_vm1, %v1597_v49 }
 0x184   : > { %1632 = vst.msk [vmem:[%s3004_s15 + $0x75] sm:$0x1] %vm497_vm1, %v1599_v50  ;;  %1629 = vst.msk [vmem:[%s3004_s15 + $0x5d] sm:$0x1] %vm497_vm1, %v1600_v51 }
 0x185   : > { %1633 = vst.msk [vmem:[%s3004_s15 + $0x7d] sm:$0x1] %vm497_vm1, %v1601_v52 }
 0x19b   : > { %v1711_v57 = vpop.f32.mrb[12].mxu0  ;;  %v1935_v58 = vpop.f32.mrb[12].mxu1 }
 0x19c   : > { %v1712_v59 = vadd.f32 %v1711_v57, %v2984_v13  ;;  %v1936_v60 = vadd.f32 %v1935_v58, %v2984_v13  ;;  %v1713_v61 = vpop.f32.mrb[13].mxu0  ;;  %v1937_v62 = vpop.f32.mrb[13].mxu1 }
 0x19e   : > { %v1724_v63 = vadd.f32 %v1723_v55, %v1712_v59  ;;  %v1948_v0 = vadd.f32 %v1947_v56, %v1936_v60 }
 0x19f   : > { %v1716_v1 = vpop.f32.mrb[14].mxu0  ;;  %v1940_v2 = vpop.f32.mrb[14].mxu1 }
 0x1a0   : > { %v1728_v4 = vcombine.high %v1724_v63, %v1724_v63  ;;  %v1735_v5 = vrot.slane %v1724_v63, %v2990_v19  ;;  %v1952_v3 = vcombine.high %v1948_v0, %v1948_v0  ;;  %v1959_v6 = vrot.slane %v1948_v0, %v2990_v19  ;;  %v1718_v7 = vpop.f32.mrb[15].mxu0  ;;  %v1942_v11 = vpop.f32.mrb[15].mxu1 }
 0x1a1   : > { %v1717_v8 = vadd.f32 %v1716_v1, %v2997_v25  ;;  %v1941_v9 = vadd.f32 %v1940_v2, %v2997_v25 }
 0x1a2   : > { %v1742_v13 = vrot.slane %v1728_v4, %v2990_v19  ;;  %v1743_v10 = vcombine.high %v1735_v5, %v1735_v5  ;;  %v1751_v12 = vrot.slane %v1735_v5, %v2990_v19  ;;  %v1966_v14 = vrot.slane %v1952_v3, %v2990_v19 }
 0x1a3   : > { %v1967_v15 = vcombine.high %v1959_v6, %v1959_v6  ;;  %v1975_v16 = vrot.slane %v1959_v6, %v2990_v19  ;;  %v1725_v17 = vadd.f32 %v1723_v55, %v1717_v8  ;;  %v1949_v18 = vadd.f32 %v1947_v56, %v1941_v9 }
 0x1a4   : > { %v1744_v20 = vcombine.high %v1742_v13, %v1742_v13  ;;  %v1758_v21 = vrot.slane %v1742_v13, %v2990_v19  ;;  %v1765_v25 = vrot.slane %v1743_v10, %v2990_v19  ;;  %v1773_v22 = vcombine.high %v1751_v12, %v1751_v12  ;;  %1842 = vst.msk [vmem:[%s3004_s15 + $0x6] sm:$0x1] %vm497_vm1, %v1751_v12 }
 0x1a5   : > { %v1968_v23 = vcombine.high %v1966_v14, %v1966_v14  ;;  %v1982_v24 = vrot.slane %v1966_v14, %v2990_v19  ;;  %v1989_v26 = vrot.slane %v1967_v15, %v2990_v19  ;;  %v1997_v27 = vcombine.high %v1975_v16, %v1975_v16  ;;  %2066 = vst.msk [vmem:[%s3004_s15 + $0x7] sm:$0x1] %vm497_vm1, %v1975_v16 }
 0x1a6   : > { %v1772_v28 = vrot.slane %v1744_v20, %v2990_v19  ;;  %v1774_v29 = vcombine.high %v1758_v21, %v1758_v21  ;;  %v1775_v30 = vcombine.high %v1765_v25, %v1765_v25  ;;  %1843 = vst.msk [vmem:[%s3004_s15 + $0xe] sm:$0x1] %vm497_vm1, %v1765_v25  ;;  %1844 = vst.msk [vmem:[%s3004_s15 + $0x16] sm:$0x1] %vm497_vm1, %v1773_v22 }
 0x1a7   : > { %1846 = vst.msk [vmem:[%s3004_s15 + $0x26] sm:$0x1] %vm497_vm1, %v1758_v21  ;;  %v1777_v31 = vcombine.high %v1725_v17, %v1725_v17  ;;  %v1996_v32 = vrot.slane %v1968_v23, %v2990_v19  ;;  %v1998_v33 = vcombine.high %v1982_v24, %v1982_v24  ;;  %v1999_v34 = vcombine.high %v1989_v26, %v1989_v26 }
 0x1a8   : > { %2067 = vst.msk [vmem:[%s3004_s15 + $0xf] sm:$0x1] %vm497_vm1, %v1989_v26  ;;  %2068 = vst.msk [vmem:[%s3004_s15 + $0x17] sm:$0x1] %vm497_vm1, %v1997_v27  ;;  %v1784_v35 = vrot.slane %v1725_v17, %v2990_v19  ;;  %v1776_v36 = vcombine.high %v1772_v28, %v1772_v28  ;;  %v2001_v38 = vcombine.high %v1949_v18, %v1949_v18 }
 0x1a9   : > { %2070 = vst.msk [vmem:[%s3004_s15 + $0x27] sm:$0x1] %vm497_vm1, %v1982_v24  ;;  %1845 = vst.msk [vmem:[%s3004_s15 + $0x1e] sm:$0x1] %vm497_vm1, %v1775_v30  ;;  %v1791_v37 = vrot.slane %v1777_v31, %v2990_v19  ;;  %v2008_v39 = vrot.slane %v1949_v18, %v2990_v19  ;;  %v2000_v40 = vcombine.high %v1996_v32, %v1996_v32 }
 0x1aa   : > { %1847 = vst.msk [vmem:[%s3004_s15 + $0x2e] sm:$0x1] %vm497_vm1, %v1772_v28  ;;  %1848 = vst.msk [vmem:[%s3004_s15 + $0x36] sm:$0x1] %vm497_vm1, %v1774_v29  ;;  %v1792_v41 = vcombine.high %v1784_v35, %v1784_v35  ;;  %v1800_v42 = vrot.slane %v1784_v35, %v2990_v19  ;;  %v2015_v45 = vrot.slane %v2001_v38, %v2990_v19 }
 0x1ab   : > { %2069 = vst.msk [vmem:[%s3004_s15 + $0x1f] sm:$0x1] %vm497_vm1, %v1999_v34  ;;  %2071 = vst.msk [vmem:[%s3004_s15 + $0x2f] sm:$0x1] %vm497_vm1, %v1996_v32  ;;  %v1793_v43 = vcombine.high %v1791_v37, %v1791_v37  ;;  %v1807_v44 = vrot.slane %v1791_v37, %v2990_v19  ;;  %v2016_v46 = vcombine.high %v2008_v39, %v2008_v39 }
 0x1ac   : > { %2072 = vst.msk [vmem:[%s3004_s15 + $0x37] sm:$0x1] %vm497_vm1, %v1998_v33  ;;  %1849 = vst.msk [vmem:[%s3004_s15 + $0x3e] sm:$0x1] %vm497_vm1, %v1776_v36  ;;  %v1814_v47 = vrot.slane %v1792_v41, %v2990_v19  ;;  %v1822_v48 = vcombine.high %v1800_v42, %v1800_v42  ;;  %v2024_v49 = vrot.slane %v2008_v39, %v2990_v19 }
 0x1ad   : > { %2073 = vst.msk [vmem:[%s3004_s15 + $0x3f] sm:$0x1] %vm497_vm1, %v2000_v40  ;;  %1850 = vst.msk [vmem:[%s3004_s15 + $0x46] sm:$0x1] %vm497_vm1, %v1800_v42  ;;  %v1821_v50 = vrot.slane %v1793_v43, %v2990_v19  ;;  %v1823_v51 = vcombine.high %v1807_v44, %v1807_v44  ;;  %v2017_v52 = vcombine.high %v2015_v45, %v2015_v45 }
 0x1ae   : > { %1854 = vst.msk [vmem:[%s3004_s15 + $0x66] sm:$0x1] %vm497_vm1, %v1807_v44  ;;  %v2031_v53 = vrot.slane %v2015_v45, %v2990_v19  ;;  %v1824_v54 = vcombine.high %v1814_v47, %v1814_v47  ;;  %1851 = vst.msk [vmem:[%s3004_s15 + $0x4e] sm:$0x1] %vm497_vm1, %v1814_v47  ;;  %v2038_v55 = vrot.slane %v2016_v46, %v2990_v19 }
 0x1af   : > { %1852 = vst.msk [vmem:[%s3004_s15 + $0x56] sm:$0x1] %vm497_vm1, %v1822_v48  ;;  %v2046_v56 = vcombine.high %v2024_v49, %v2024_v49  ;;  %2074 = vst.msk [vmem:[%s3004_s15 + $0x47] sm:$0x1] %vm497_vm1, %v2024_v49  ;;  %v1825_v57 = vcombine.high %v1821_v50, %v1821_v50  ;;  %v2045_v58 = vrot.slane %v2017_v52, %v2990_v19 }
 0x1b0   : > { %1855 = vst.msk [vmem:[%s3004_s15 + $0x6e] sm:$0x1] %vm497_vm1, %v1821_v50  ;;  %1856 = vst.msk [vmem:[%s3004_s15 + $0x76] sm:$0x1] %vm497_vm1, %v1823_v51  ;;  %v2047_v59 = vcombine.high %v2031_v53, %v2031_v53  ;;  %v2048_v60 = vcombine.high %v2038_v55, %v2038_v55 }
 0x1b1   : > { %2078 = vst.msk [vmem:[%s3004_s15 + $0x67] sm:$0x1] %vm497_vm1, %v2031_v53  ;;  %1853 = vst.msk [vmem:[%s3004_s15 + $0x5e] sm:$0x1] %vm497_vm1, %v1824_v54  ;;  %v2049_v61 = vcombine.high %v2045_v58, %v2045_v58 }
 0x1b2   : > { %2075 = vst.msk [vmem:[%s3004_s15 + $0x4f] sm:$0x1] %vm497_vm1, %v2038_v55  ;;  %2076 = vst.msk [vmem:[%s3004_s15 + $0x57] sm:$0x1] %vm497_vm1, %v2046_v56 }
 0x1b3   : > { %1857 = vst.msk [vmem:[%s3004_s15 + $0x7e] sm:$0x1] %vm497_vm1, %v1825_v57  ;;  %2079 = vst.msk [vmem:[%s3004_s15 + $0x6f] sm:$0x1] %vm497_vm1, %v2045_v58 }
 0x1b4   : > { %2080 = vst.msk [vmem:[%s3004_s15 + $0x77] sm:$0x1] %vm497_vm1, %v2047_v59  ;;  %2077 = vst.msk [vmem:[%s3004_s15 + $0x5f] sm:$0x1] %vm497_vm1, %v2048_v60 }
 0x1b5   : > { %2081 = vst.msk [vmem:[%s3004_s15 + $0x7f] sm:$0x1] %vm497_vm1, %v2049_v61 }
 0x1b6 PF: > { %s14_s17 = sadd.s32 1, %s2581_s17   ;;  %s3396_s15 = smov %s2577_s16 }
 0x1b7   : > { %p11_p5 = scmp.ge.s32.totalorder %s14_s17, 4   ;;  %s3397_s16 = smov %s3399_s18 }
 0x1b9   :  { %13 = sbr.rel (!%p11_p5) target bundleno = 2 (0x2), region = 76 }

// kernel: _forward.1
= control target key start
LH: loop header
LB: loop body
LE: loop exit
PB: predicated region body
PF: predicated region fallthrough
CT: control target
= control target key end

     0   :  { %s2610_s15 = smov 0   ;;  %s2612_s16 = smov 0   ;;  %s3391_s0 = inlined_call_operand.vmem [shape: f32[2,8,16,192], index: 0, kind: input, shape index: {}]   ;;  %s3392_s1 = inlined_call_operand.vmem [shape: f32[192,32], index: 1, kind: input, shape index: {}]   ;;  %s3393_s2 = inlined_call_operand.vmem [shape: f32[16,32], index: 2, kind: input, shape index: {}]   ;;  %s3394_s3 = inlined_call_operand.vmem [shape: f32[8,32], index: 3, kind: input, shape index: {}]   ;;  %s3395_s4 = inlined_call_operand.vmem [shape: f32[2,16,8,32], index: 4, kind: output, shape index: {}]  }
   0x1   :  { %s2614_s17 = smov 0  }
   0x2 LB: > { %s26_s18 = sadd.s32 1, %s2577_s16  ;;  %p2192_p0 = scmp.ge.s32.totalorder %s2581_s17, 1  ;;  %s2581_s17 = sphi %s2614_s17, %s14_s17   ;;  %s2577_s16 = sphi %s2612_s16, %s3397_s16   ;;  %s2573_s15 = sphi %s2610_s15, %s3396_s15  }
   0x3   : > { %p28_p1 = scmp.ge.s32.totalorder %s26_s18, 2  ;;  %p195_p2 = scmp.lt.s32.totalorder %s2581_s17, 3 }
   0x5   : > { %s3399_s18 = smov (%p28_p1, %s26_s18), 0  ;;  %p196_p3 = pnand %p2192_p0, %p195_p2 }
   0x6   : > { %v262_v0 = vld [vmem:[%s3392_s1] sm:$0xff] (!%p196_p3)  ;;  %v263_v1 = vld [vmem:[%s3392_s1 + $0x8] sm:$0xff] (!%p196_p3)  ;;  %v264_v2 = vld [vmem:[%s3392_s1 + $0x10] sm:$0xff] (!%p196_p3)  ;;  %p236_p4 = scmp.lt.s32.totalorder (!%p196_p3), %s2573_s15, 1  ;;  %v2583_v3 = vmov (!%p196_p3), 0.0|0.0   ;;  %vm293_vm0 = vcmask (!%p196_p3), 523264  }
   0x7   : > { %199 = sbr.rel (%p196_p3) target bundleno = 438 (0x1b6), region = 36  ;;  %2245 = vmatprep.subr.bf16.mxu0 (!%p196_p3), %v2583_v3  ;;  %2281 = vmatprep.subr.bf16.mxu1 (!%p196_p3), %v2583_v3  ;;  %v2639_v4 = vpack.c.bf16 (!%p196_p3), %v263_v1, %v262_v0  ;;  %v265_v5 = vld [vmem:[%s3392_s1 + $0x18] sm:$0xff] (!%p196_p3)  ;;  %v266_v7 = vld [vmem:[%s3392_s1 + $0x20] sm:$0xff] (!%p196_p3)  ;;  %v267_v8 = vld [vmem:[%s3392_s1 + $0x28] sm:$0xff] (!%p196_p3)  ;;  %vm497_vm1 = vcmask (!%p196_p3), 253952  }
   0x8   : > { %v2648_v6 = vpack.c.bf16 (!%p196_p3), %v265_v5, %v264_v2  ;;  %v2666_v9 = vpack.c.bf16 (!%p196_p3), %v267_v8, %v266_v7  ;;  %v268_v10 = vld [vmem:[%s3392_s1 + $0x30] sm:$0xff] (!%p196_p3)  ;;  %v269_v11 = vld [vmem:[%s3392_s1 + $0x38] sm:$0xff] (!%p196_p3)  ;;  %v270_v15 = vld [vmem:[%s3392_s1 + $0x40] sm:$0xff] (!%p196_p3)  ;;  %v2584_v7 = vmov (!%p196_p3), 1966171168  }
   0x9   : > { %2247 = vmatpush1.bf16.msra.mxu0 (!%p196_p3), %v2639_v4  ;;  %2283 = vmatpush1.bf16.msra.mxu1 (!%p196_p3), %v2639_v4  ;;  %v2682_v14 = vpack.c.bf16 (!%p196_p3), %v269_v11, %v268_v10  ;;  %v271_v16 = vld [vmem:[%s3392_s1 + $0x48] sm:$0xff] (!%p196_p3)  ;;  %v272_v18 = vld [vmem:[%s3392_s1 + $0x50] sm:$0xff] (!%p196_p3)  ;;  %v273_v19 = vld [vmem:[%s3392_s1 + $0x58] sm:$0xff] (!%p196_p3)  ;;  %v385_v8 = vunpack.c.l.s4 (!%p196_p3), %v2584_v7 }
   0xa   : > { %2248 = vmatprep.subr.bf16.mxu0 (!%p196_p3), %v2583_v3  ;;  %2284 = vmatprep.subr.bf16.mxu1 (!%p196_p3), %v2583_v3  ;;  %v2694_v17 = vpack.c.bf16 (!%p196_p3), %v271_v16, %v270_v15  ;;  %v2706_v20 = vpack.c.bf16 (!%p196_p3), %v273_v19, %v272_v18  ;;  %v274_v21 = vld [vmem:[%s3392_s1 + $0x60] sm:$0xff] (!%p196_p3)  ;;  %v275_v22 = vld [vmem:[%s3392_s1 + $0x68] sm:$0xff] (!%p196_p3)  ;;  %v276_v24 = vld [vmem:[%s3392_s1 + $0x70] sm:$0xff] (!%p196_p3) }
   0xb   : > { %v2718_v23 = vpack.c.bf16 (!%p196_p3), %v275_v22, %v274_v21  ;;  %v277_v25 = vld [vmem:[%s3392_s1 + $0x78] sm:$0xff] (!%p196_p3)  ;;  %v278_v27 = vld [vmem:[%s3392_s1 + $0x80] sm:$0xff] (!%p196_p3)  ;;  %v279_v28 = vld [vmem:[%s3392_s1 + $0x88] sm:$0xff] (!%p196_p3) }
   0xc   : > { %v2730_v26 = vpack.c.bf16 (!%p196_p3), %v277_v25, %v276_v24  ;;  %v2742_v29 = vpack.c.bf16 (!%p196_p3), %v279_v28, %v278_v27  ;;  %v280_v30 = vld [vmem:[%s3392_s1 + $0x90] sm:$0xff] (!%p196_p3)  ;;  %v281_v31 = vld [vmem:[%s3392_s1 + $0x98] sm:$0xff] (!%p196_p3)  ;;  %v282_v33 = vld [vmem:[%s3392_s1 + $0xa0] sm:$0xff] (!%p196_p3) }
   0xd   : > { %2250 = vmatpush1.bf16.msra.mxu0 (!%p196_p3), %v2648_v6  ;;  %2286 = vmatpush1.bf16.msra.mxu1 (!%p196_p3), %v2648_v6  ;;  %v2754_v32 = vpack.c.bf16 (!%p196_p3), %v281_v31, %v280_v30  ;;  %v283_v34 = vld [vmem:[%s3392_s1 + $0xa8] sm:$0xff] (!%p196_p3)  ;;  %v284_v36 = vld [vmem:[%s3392_s1 + $0xb0] sm:$0xff] (!%p196_p3)  ;;  %v285_v37 = vld [vmem:[%s3392_s1 + $0xb8] sm:$0xff] (!%p196_p3) }
   0xe   : > { %s3401_s15 = smov (!%p236_p4, %s2573_s15), 1  ;;  %2251 = vmatprep.subr.bf16.mxu0 %v2583_v3  ;;  %2287 = vmatprep.subr.bf16.mxu1 %v2583_v3  ;;  %v2766_v35 = vpack.c.bf16 %v283_v34, %v282_v33  ;;  %v2778_v38 = vpack.c.bf16 %v285_v37, %v284_v36  ;;  %v2979_v11 = vld [vmem:[%s3394_s3] sm:$0xff]  ;;  %v2997_v25 = vld [vmem:[%s3393_s2 + $0x8] sm:$0xff] }
   0xf   : > { %s2243_s5 = sshll.u32 %s3401_s15, 8 }
  0x10   : > { %s2662_s8 = scalar_lea.vmem %s3391_s0, %s2243_s5  ;;  %s2244_s5 = sshll.u32 %s3401_s15, 7 }
  0x11   : > { %v290_v12 = vld [vmem:[%s2662_s8 + $0x8] sm:$0xff]  ;;  %2253 = vmatpush1.bf16.msra.mxu0 %v2666_v9  ;;  %2289 = vmatpush1.bf16.msra.mxu1 %v2666_v9  ;;  %v289_v39 = vld [vmem:[%s2662_s8] sm:$0xff]  ;;  %v292_v41 = vld [vmem:[%s2662_s8 + $0x18] sm:$0xff]  ;;  %s3004_s15 = scalar_lea.vmem %s3395_s4, %s2244_s5 }
  0x12   : > { %v2200_v13 = vld [vmem:[%s2662_s8 + $0x28] sm:$0xff]  ;;  %2197 = vmatprep.mubr.msk.f32.mxu0 %vm293_vm0, %v290_v12  ;;  %2254 = vmatprep.subr.bf16.mxu0 %v2583_v3  ;;  %v2199_v40 = vld [vmem:[%s2662_s8 + $0x20] sm:$0xff]  ;;  %v2202_v42 = vld [vmem:[%s2662_s8 + $0x38] sm:$0xff]  ;;  %v386_v12 = vunpack.c.0.s8 %v385_v8 }
  0x13   : > { %2203 = vmatprep.mubr.msk.f32.mxu1 %vm293_vm0, %v2200_v13  ;;  %2290 = vmatprep.subr.bf16.mxu1 %v2583_v3  ;;  %v291_v43 = vld [vmem:[%s2662_s8 + $0x10] sm:$0xff]  ;;  %v2206_v45 = vld [vmem:[%s2662_s8 + $0x48] sm:$0xff]  ;;  %v2205_v47 = vld [vmem:[%s2662_s8 + $0x40] sm:$0xff] }
  0x14   : > { %v2201_v44 = vld [vmem:[%s2662_s8 + $0x30] sm:$0xff]  ;;  %v2212_v46 = vld [vmem:[%s2662_s8 + $0x68] sm:$0xff]  ;;  %v2211_v48 = vld [vmem:[%s2662_s8 + $0x60] sm:$0xff] }
  0x15   : > { %2256 = vmatpush1.bf16.msra.mxu0 %v2682_v14  ;;  %2292 = vmatpush1.bf16.msra.mxu1 %v2682_v14  ;;  %v2208_v49 = vld [vmem:[%s2662_s8 + $0x58] sm:$0xff]  ;;  %v2207_v51 = vld [vmem:[%s2662_s8 + $0x50] sm:$0xff]  ;;  %v2218_v53 = vld [vmem:[%s2662_s8 + $0x88] sm:$0xff] }
  0x16   : > { %2257 = vmatprep.subr.bf16.mxu0 %v2583_v3  ;;  %2293 = vmatprep.subr.bf16.mxu1 %v2583_v3  ;;  %v2214_v50 = vld [vmem:[%s2662_s8 + $0x78] sm:$0xff]  ;;  %v2213_v52 = vld [vmem:[%s2662_s8 + $0x70] sm:$0xff]  ;;  %v2224_v54 = vld [vmem:[%s2662_s8 + $0xa8] sm:$0xff] }
  0x17   : > { %v2217_v55 = vld [vmem:[%s2662_s8 + $0x80] sm:$0xff]  ;;  %v2220_v57 = vld [vmem:[%s2662_s8 + $0x98] sm:$0xff]  ;;  %v2219_v59 = vld [vmem:[%s2662_s8 + $0x90] sm:$0xff] }
  0x18   : > { %v2223_v56 = vld [vmem:[%s2662_s8 + $0xa0] sm:$0xff]  ;;  %v2226_v58 = vld [vmem:[%s2662_s8 + $0xb8] sm:$0xff]  ;;  %v2225_v60 = vld [vmem:[%s2662_s8 + $0xb0] sm:$0xff] }
  0x19   : > { %2259 = vmatpush1.bf16.msra.mxu0 %v2694_v17  ;;  %2295 = vmatpush1.bf16.msra.mxu1 %v2694_v17  ;;  %v2230_v61 = vld [vmem:[%s2662_s8 + $0xc8] sm:$0xff]  ;;  %v2229_v63 = vld [vmem:[%s2662_s8 + $0xc0] sm:$0xff]  ;;  %v2232_v1 = vld [vmem:[%s2662_s8 + $0xd8] sm:$0xff] }
  0x1a   : > { %2260 = vmatprep.subr.bf16.mxu0 %v2583_v3  ;;  %2296 = vmatprep.subr.bf16.mxu1 %v2583_v3  ;;  %v2236_v62 = vld [vmem:[%s2662_s8 + $0xe8] sm:$0xff]  ;;  %v2235_v0 = vld [vmem:[%s2662_s8 + $0xe0] sm:$0xff]  ;;  %v2238_v2 = vld [vmem:[%s2662_s8 + $0xf8] sm:$0xff] }
  0x1b   : > { %v2237_v5 = vld [vmem:[%s2662_s8 + $0xf0] sm:$0xff]  ;;  %v2984_v13 = vld [vmem:[%s3393_s2] sm:$0xff] }
  0x1d   : > { %2262 = vmatpush1.bf16.msra.mxu0 %v2706_v20  ;;  %2298 = vmatpush1.bf16.msra.mxu1 %v2706_v20 }
  0x1e   : > { %2263 = vmatprep.subr.bf16.mxu0 %v2583_v3  ;;  %2299 = vmatprep.subr.bf16.mxu1 %v2583_v3 }
  0x21   : > { %2265 = vmatpush1.bf16.msra.mxu0 %v2718_v23  ;;  %2301 = vmatpush1.bf16.msra.mxu1 %v2718_v23 }
  0x22   : > { %2266 = vmatprep.subr.bf16.mxu0 %v2583_v3  ;;  %2302 = vmatprep.subr.bf16.mxu1 %v2583_v3 }
  0x25   : > { %2268 = vmatpush1.bf16.msra.mxu0 %v2730_v26  ;;  %2304 = vmatpush1.bf16.msra.mxu1 %v2730_v26 }
  0x26   : > { %2269 = vmatprep.subr.bf16.mxu0 %v2583_v3  ;;  %2305 = vmatprep.subr.bf16.mxu1 %v2583_v3 }
  0x29   : > { %2271 = vmatpush1.bf16.msra.mxu0 %v2742_v29  ;;  %2307 = vmatpush1.bf16.msra.mxu1 %v2742_v29 }
  0x2a   : > { %2272 = vmatprep.subr.bf16.mxu0 %v2583_v3  ;;  %2308 = vmatprep.subr.bf16.mxu1 %v2583_v3 }
  0x2d   : > { %2274 = vmatpush1.bf16.msra.mxu0 %v2754_v32  ;;  %2310 = vmatpush1.bf16.msra.mxu1 %v2754_v32 }
  0x2e   : > { %2275 = vmatprep.subr.bf16.mxu0 %v2583_v3  ;;  %2311 = vmatprep.subr.bf16.mxu1 %v2583_v3 }
  0x31   : > { %2277 = vmatpush1.bf16.msra.mxu0 %v2766_v35  ;;  %2313 = vmatpush1.bf16.msra.mxu1 %v2766_v35 }
  0x32   : > { %2278 = vmatprep.subr.bf16.mxu0 %v2583_v3  ;;  %2314 = vmatprep.subr.bf16.mxu1 %v2583_v3 }
  0x35   : > { %2280 = vmatpush1.bf16.msra.mxu0 %v2778_v38  ;;  %2316 = vmatpush1.bf16.msra.mxu1 %v2778_v38 }
  0x36   : > { %2317 = vmatprep.subr.bf16.mxu0 %v2583_v3  ;;  %2353 = vmatprep.subr.bf16.mxu1 %v2583_v3 }
  0x38   : > { %365 = vmatmul.mubr.f32.vlgmr.msra.gmra.mrb[0].mxu0 %v289_v39  ;;  %590 = vmatmul.mubr.f32.vlgmr.msra.gmra.mrb[0].mxu1 %v2199_v40 }
  0x39   : > { %2319 = vmatpush1.bf16.msra.mxu0 %v2639_v4  ;;  %2355 = vmatpush1.bf16.msra.mxu1 %v2639_v4 }
  0x3a   : > { %2320 = vmatprep.subr.bf16.mxu0 %v2583_v3  ;;  %2356 = vmatprep.subr.bf16.mxu1 %v2583_v3 }
  0x3b   : > { %2198 = vmatprep.mubr.msk.f32.mxu0 %vm293_vm0, %v292_v41  ;;  %2204 = vmatprep.mubr.msk.f32.mxu1 %vm293_vm0, %v2202_v42 }
  0x3c   : > { %370 = vmatmul.mubr.f32.gmra.mrb[2].mxu0 %v291_v43  ;;  %595 = vmatmul.mubr.f32.gmra.mrb[2].mxu1 %v2201_v44 }
  0x3d   : > { %2322 = vmatpush1.bf16.msra.mxu0 %v2648_v6  ;;  %2358 = vmatpush1.bf16.msra.mxu1 %v2648_v6 }
  0x3e   : > { %2323 = vmatprep.subr.bf16.mxu0 %v2583_v3  ;;  %2359 = vmatprep.subr.bf16.mxu1 %v2583_v3 }
  0x3f   : > { %2209 = vmatprep.mubr.msk.f32.mxu0 %vm293_vm0, %v2206_v45  ;;  %2215 = vmatprep.mubr.msk.f32.mxu1 %vm293_vm0, %v2212_v46 }
  0x41   : > { %2325 = vmatpush1.bf16.msra.mxu0 %v2666_v9  ;;  %2361 = vmatpush1.bf16.msra.mxu1 %v2666_v9 }
  0x42   : > { %2326 = vmatprep.subr.bf16.mxu0 %v2583_v3  ;;  %2362 = vmatprep.subr.bf16.mxu1 %v2583_v3 }
  0x45   : > { %2328 = vmatpush1.bf16.msra.mxu0 %v2682_v14  ;;  %2364 = vmatpush1.bf16.msra.mxu1 %v2682_v14 }
  0x46   : > { %2329 = vmatprep.subr.bf16.mxu0 %v2583_v3  ;;  %2365 = vmatprep.subr.bf16.mxu1 %v2583_v3 }
  0x49   : > { %2331 = vmatpush1.bf16.msra.mxu0 %v2694_v17  ;;  %2367 = vmatpush1.bf16.msra.mxu1 %v2694_v17 }
  0x4a   : > { %2332 = vmatprep.subr.bf16.mxu0 %v2583_v3  ;;  %2368 = vmatprep.subr.bf16.mxu1 %v2583_v3 }
  0x4d   : > { %2334 = vmatpush1.bf16.msra.mxu0 %v2706_v20  ;;  %2370 = vmatpush1.bf16.msra.mxu1 %v2706_v20 }
  0x4e   : > { %2335 = vmatprep.subr.bf16.mxu0 %v2583_v3  ;;  %2371 = vmatprep.subr.bf16.mxu1 %v2583_v3 }
  0x51   : > { %2337 = vmatpush1.bf16.msra.mxu0 %v2718_v23  ;;  %2373 = vmatpush1.bf16.msra.mxu1 %v2718_v23 }
  0x52   : > { %2338 = vmatprep.subr.bf16.mxu0 %v2583_v3  ;;  %2374 = vmatprep.subr.bf16.mxu1 %v2583_v3 }
  0x55   : > { %2340 = vmatpush1.bf16.msra.mxu0 %v2730_v26  ;;  %2376 = vmatpush1.bf16.msra.mxu1 %v2730_v26 }
  0x56   : > { %2341 = vmatprep.subr.bf16.mxu0 %v2583_v3  ;;  %2377 = vmatprep.subr.bf16.mxu1 %v2583_v3 }
  0x59   : > { %2343 = vmatpush1.bf16.msra.mxu0 %v2742_v29  ;;  %2379 = vmatpush1.bf16.msra.mxu1 %v2742_v29 }
  0x5a   : > { %2344 = vmatprep.subr.bf16.mxu0 %v2583_v3  ;;  %2380 = vmatprep.subr.bf16.mxu1 %v2583_v3 }
  0x5d   : > { %2346 = vmatpush1.bf16.msra.mxu0 %v2754_v32  ;;  %2382 = vmatpush1.bf16.msra.mxu1 %v2754_v32 }
  0x5e   : > { %2347 = vmatprep.subr.bf16.mxu0 %v2583_v3  ;;  %2383 = vmatprep.subr.bf16.mxu1 %v2583_v3 }
  0x61   : > { %2349 = vmatpush1.bf16.msra.mxu0 %v2766_v35  ;;  %2385 = vmatpush1.bf16.msra.mxu1 %v2766_v35 }
  0x62   : > { %2350 = vmatprep.subr.bf16.mxu0 %v2583_v3  ;;  %2386 = vmatprep.subr.bf16.mxu1 %v2583_v3 }
  0x65   : > { %2352 = vmatpush1.bf16.msra.mxu0 %v2778_v38  ;;  %2388 = vmatpush1.bf16.msra.mxu1 %v2778_v38 }
  0x66   : > { %2389 = vmatprep.subr.bf16.mxu0 %v2583_v3  ;;  %2425 = vmatprep.subr.bf16.mxu1 %v2583_v3 }
  0x68   : > { %814 = vmatmul.mubr.f32.vlgmr.msra.gmra.mrb[4].mxu0 %v2205_v47  ;;  %1038 = vmatmul.mubr.f32.vlgmr.msra.gmra.mrb[4].mxu1 %v2211_v48 }
  0x69   : > { %2391 = vmatpush1.bf16.msra.mxu0 %v2639_v4  ;;  %2427 = vmatpush1.bf16.msra.mxu1 %v2639_v4 }
  0x6a   : > { %2392 = vmatprep.subr.bf16.mxu0 %v2583_v3  ;;  %2428 = vmatprep.subr.bf16.mxu1 %v2583_v3 }
  0x6b   : > { %2210 = vmatprep.mubr.msk.f32.mxu0 %vm293_vm0, %v2208_v49  ;;  %2216 = vmatprep.mubr.msk.f32.mxu1 %vm293_vm0, %v2214_v50 }
  0x6c   : > { %819 = vmatmul.mubr.f32.gmra.mrb[6].mxu0 %v2207_v51  ;;  %1043 = vmatmul.mubr.f32.gmra.mrb[6].mxu1 %v2213_v52 }
  0x6d   : > { %2394 = vmatpush1.bf16.msra.mxu0 %v2648_v6  ;;  %2430 = vmatpush1.bf16.msra.mxu1 %v2648_v6 }
  0x6e   : > { %2395 = vmatprep.subr.bf16.mxu0 %v2583_v3  ;;  %2431 = vmatprep.subr.bf16.mxu1 %v2583_v3 }
  0x6f   : > { %2221 = vmatprep.mubr.msk.f32.mxu0 %vm293_vm0, %v2218_v53  ;;  %2227 = vmatprep.mubr.msk.f32.mxu1 %vm293_vm0, %v2224_v54 }
  0x71   : > { %2397 = vmatpush1.bf16.msra.mxu0 %v2666_v9  ;;  %2433 = vmatpush1.bf16.msra.mxu1 %v2666_v9 }
  0x72   : > { %2398 = vmatprep.subr.bf16.mxu0 %v2583_v3  ;;  %2434 = vmatprep.subr.bf16.mxu1 %v2583_v3 }
  0x75   : > { %2400 = vmatpush1.bf16.msra.mxu0 %v2682_v14  ;;  %2436 = vmatpush1.bf16.msra.mxu1 %v2682_v14 }
  0x76   : > { %2401 = vmatprep.subr.bf16.mxu0 %v2583_v3  ;;  %2437 = vmatprep.subr.bf16.mxu1 %v2583_v3 }
  0x79   : > { %2403 = vmatpush1.bf16.msra.mxu0 %v2694_v17  ;;  %2439 = vmatpush1.bf16.msra.mxu1 %v2694_v17 }
  0x7a   : > { %2404 = vmatprep.subr.bf16.mxu0 %v2583_v3  ;;  %2440 = vmatprep.subr.bf16.mxu1 %v2583_v3 }
  0x7d   : > { %2406 = vmatpush1.bf16.msra.mxu0 %v2706_v20  ;;  %2442 = vmatpush1.bf16.msra.mxu1 %v2706_v20 }
  0x7e   : > { %2407 = vmatprep.subr.bf16.mxu0 %v2583_v3  ;;  %2443 = vmatprep.subr.bf16.mxu1 %v2583_v3 }
  0x81   : > { %2409 = vmatpush1.bf16.msra.mxu0 %v2718_v23  ;;  %2445 = vmatpush1.bf16.msra.mxu1 %v2718_v23 }
  0x82   : > { %2410 = vmatprep.subr.bf16.mxu0 %v2583_v3  ;;  %2446 = vmatprep.subr.bf16.mxu1 %v2583_v3 }
  0x85   : > { %2412 = vmatpush1.bf16.msra.mxu0 %v2730_v26  ;;  %2448 = vmatpush1.bf16.msra.mxu1 %v2730_v26 }
  0x86   : > { %2413 = vmatprep.subr.bf16.mxu0 %v2583_v3  ;;  %2449 = vmatprep.subr.bf16.mxu1 %v2583_v3 }
  0x89   : > { %2415 = vmatpush1.bf16.msra.mxu0 %v2742_v29  ;;  %2451 = vmatpush1.bf16.msra.mxu1 %v2742_v29 }
  0x8a   : > { %2416 = vmatprep.subr.bf16.mxu0 %v2583_v3  ;;  %2452 = vmatprep.subr.bf16.mxu1 %v2583_v3 }
  0x8d   : > { %2418 = vmatpush1.bf16.msra.mxu0 %v2754_v32  ;;  %2454 = vmatpush1.bf16.msra.mxu1 %v2754_v32 }
  0x8e   : > { %2419 = vmatprep.subr.bf16.mxu0 %v2583_v3  ;;  %2455 = vmatprep.subr.bf16.mxu1 %v2583_v3 }
  0x91   : > { %2421 = vmatpush1.bf16.msra.mxu0 %v2766_v35  ;;  %2457 = vmatpush1.bf16.msra.mxu1 %v2766_v35 }
  0x92   : > { %2422 = vmatprep.subr.bf16.mxu0 %v2583_v3  ;;  %2458 = vmatprep.subr.bf16.mxu1 %v2583_v3 }
  0x95   : > { %2424 = vmatpush1.bf16.msra.mxu0 %v2778_v38  ;;  %2460 = vmatpush1.bf16.msra.mxu1 %v2778_v38 }
  0x96   : > { %2461 = vmatprep.subr.bf16.mxu0 %v2583_v3  ;;  %2497 = vmatprep.subr.bf16.mxu1 %v2583_v3 }
  0x98   : > { %1262 = vmatmul.mubr.f32.vlgmr.msra.gmra.mrb[8].mxu0 %v2217_v55  ;;  %1486 = vmatmul.mubr.f32.vlgmr.msra.gmra.mrb[8].mxu1 %v2223_v56 }
  0x99   : > { %2463 = vmatpush1.bf16.msra.mxu0 %v2639_v4  ;;  %2499 = vmatpush1.bf16.msra.mxu1 %v2639_v4  ;;  %v2231_v4 = vld [vmem:[%s2662_s8 + $0xd0] sm:$0xff] }
  0x9a   : > { %2464 = vmatprep.subr.bf16.mxu0 %v2583_v3  ;;  %2500 = vmatprep.subr.bf16.mxu1 %v2583_v3 }
  0x9b   : > { %2222 = vmatprep.mubr.msk.f32.mxu0 %vm293_vm0, %v2220_v57  ;;  %2228 = vmatprep.mubr.msk.f32.mxu1 %vm293_vm0, %v2226_v58 }
  0x9c   : > { %1267 = vmatmul.mubr.f32.gmra.mrb[10].mxu0 %v2219_v59  ;;  %1491 = vmatmul.mubr.f32.gmra.mrb[10].mxu1 %v2225_v60 }
  0x9d   : > { %2466 = vmatpush1.bf16.msra.mxu0 %v2648_v6  ;;  %2502 = vmatpush1.bf16.msra.mxu1 %v2648_v6  ;;  %v375_v6 = vlaneseq }
  0x9e   : > { %2467 = vmatprep.subr.bf16.mxu0 %v2583_v3  ;;  %2503 = vmatprep.subr.bf16.mxu1 %v2583_v3 }
  0x9f   : > { %2233 = vmatprep.mubr.msk.f32.mxu0 %vm293_vm0, %v2230_v61  ;;  %2239 = vmatprep.mubr.msk.f32.mxu1 %vm293_vm0, %v2236_v62 }
  0xa1   : > { %2469 = vmatpush1.bf16.msra.mxu0 %v2666_v9  ;;  %2505 = vmatpush1.bf16.msra.mxu1 %v2666_v9 }
  0xa2   : > { %2470 = vmatprep.subr.bf16.mxu0 %v2583_v3  ;;  %2506 = vmatprep.subr.bf16.mxu1 %v2583_v3 }
  0xa5   : > { %2472 = vmatpush1.bf16.msra.mxu0 %v2682_v14  ;;  %2508 = vmatpush1.bf16.msra.mxu1 %v2682_v14 }
  0xa6   : > { %2473 = vmatprep.subr.bf16.mxu0 %v2583_v3  ;;  %2509 = vmatprep.subr.bf16.mxu1 %v2583_v3 }
  0xa9   : > { %2475 = vmatpush1.bf16.msra.mxu0 %v2694_v17  ;;  %2511 = vmatpush1.bf16.msra.mxu1 %v2694_v17 }
  0xaa   : > { %2476 = vmatprep.subr.bf16.mxu0 %v2583_v3  ;;  %2512 = vmatprep.subr.bf16.mxu1 %v2583_v3 }
  0xad   : > { %2478 = vmatpush1.bf16.msra.mxu0 %v2706_v20  ;;  %2514 = vmatpush1.bf16.msra.mxu1 %v2706_v20 }
  0xae   : > { %2479 = vmatprep.subr.bf16.mxu0 %v2583_v3  ;;  %2515 = vmatprep.subr.bf16.mxu1 %v2583_v3 }
  0xb1   : > { %2481 = vmatpush1.bf16.msra.mxu0 %v2718_v23  ;;  %2517 = vmatpush1.bf16.msra.mxu1 %v2718_v23 }
  0xb2   : > { %2482 = vmatprep.subr.bf16.mxu0 %v2583_v3  ;;  %2518 = vmatprep.subr.bf16.mxu1 %v2583_v3 }
  0xb5   : > { %2484 = vmatpush1.bf16.msra.mxu0 %v2730_v26  ;;  %2520 = vmatpush1.bf16.msra.mxu1 %v2730_v26 }
  0xb6   : > { %2485 = vmatprep.subr.bf16.mxu0 %v2583_v3  ;;  %2521 = vmatprep.subr.bf16.mxu1 %v2583_v3 }
  0xb9   : > { %2487 = vmatpush1.bf16.msra.mxu0 %v2742_v29  ;;  %2523 = vmatpush1.bf16.msra.mxu1 %v2742_v29 }
  0xba   : > { %2488 = vmatprep.subr.bf16.mxu0 %v2583_v3  ;;  %2524 = vmatprep.subr.bf16.mxu1 %v2583_v3 }
  0xbd   : > { %2490 = vmatpush1.bf16.msra.mxu0 %v2754_v32  ;;  %2526 = vmatpush1.bf16.msra.mxu1 %v2754_v32 }
  0xbe   : > { %2491 = vmatprep.subr.bf16.mxu0 %v2583_v3  ;;  %2527 = vmatprep.subr.bf16.mxu1 %v2583_v3 }
  0xc1   : > { %2493 = vmatpush1.bf16.msra.mxu0 %v2766_v35  ;;  %2529 = vmatpush1.bf16.msra.mxu1 %v2766_v35 }
  0xc2   : > { %2494 = vmatprep.subr.bf16.mxu0 %v2583_v3  ;;  %2530 = vmatprep.subr.bf16.mxu1 %v2583_v3  ;;  %v2972_v3 = vshrl.u32 %v375_v6, 7 }
  0xc4   : > { %v377_v9 = vsub.s32 0, %v2972_v3  ;;  %v602_v10 = vsub.s32 1, %v2972_v3  ;;  %v2990_v19 = vsub.s32 %v386_v12, %v2972_v3 }
  0xc5   : > { %2496 = vmatpush1.bf16.msra.mxu0 %v2778_v38  ;;  %2532 = vmatpush1.bf16.msra.mxu1 %v2778_v38 }
  0xc6   : > { %v378_v14 = vrot.slane %v2979_v11, %v377_v9  ;;  %v603_v15 = vrot.slane %v2979_v11, %v602_v10 }
  0xc8   : > { %1710 = vmatmul.mubr.f32.vlgmr.msra.gmra.mrb[12].mxu0 %v2229_v63  ;;  %1934 = vmatmul.mubr.f32.vlgmr.msra.gmra.mrb[12].mxu1 %v2235_v0 }
  0xc9   : > { %2234 = vmatprep.mubr.msk.f32.mxu0 %vm293_vm0, %v2232_v1  ;;  %2240 = vmatprep.mubr.msk.f32.mxu1 %vm293_vm0, %v2238_v2 }
  0xcc   : > { %1715 = vmatmul.mubr.f32.gmra.mrb[14].mxu0 %v2231_v4  ;;  %1939 = vmatmul.mubr.f32.gmra.mrb[14].mxu1 %v2237_v5 }
 0x10b   : > { %v366_v16 = vpop.f32.mrb[0].mxu0  ;;  %v591_v17 = vpop.f32.mrb[0].mxu1 }
 0x10c   : > { %v367_v18 = vadd.f32 %v366_v16, %v2984_v13  ;;  %v592_v20 = vadd.f32 %v591_v17, %v2984_v13  ;;  %v368_v21 = vpop.f32.mrb[1].mxu0  ;;  %v593_v22 = vpop.f32.mrb[1].mxu1 }
 0x10e   : > { %v379_v23 = vadd.f32 %v378_v14, %v367_v18  ;;  %v604_v24 = vadd.f32 %v603_v15, %v592_v20 }
 0x10f   : > { %v371_v26 = vpop.f32.mrb[2].mxu0  ;;  %v596_v27 = vpop.f32.mrb[2].mxu1 }
 0x110   : > { %v383_v28 = vcombine.high %v379_v23, %v379_v23  ;;  %v390_v29 = vrot.slane %v379_v23, %v2990_v19  ;;  %v608_v30 = vcombine.high %v604_v24, %v604_v24  ;;  %v615_v31 = vrot.slane %v604_v24, %v2990_v19  ;;  %v373_v32 = vpop.f32.mrb[3].mxu0  ;;  %v598_v33 = vpop.f32.mrb[3].mxu1 }
 0x111   : > { %v372_v34 = vadd.f32 %v371_v26, %v2997_v25  ;;  %v597_v35 = vadd.f32 %v596_v27, %v2997_v25  ;;  %v826_v27 = vsub.s32 2, %v2972_v3 }
 0x112   : > { %v397_v36 = vrot.slane %v383_v28, %v2990_v19  ;;  %v398_v37 = vcombine.high %v390_v29, %v390_v29  ;;  %v406_v38 = vrot.slane %v390_v29, %v2990_v19  ;;  %v622_v39 = vrot.slane %v608_v30, %v2990_v19 }
 0x113   : > { %v623_v40 = vcombine.high %v615_v31, %v615_v31  ;;  %v631_v41 = vrot.slane %v615_v31, %v2990_v19  ;;  %v380_v42 = vadd.f32 %v378_v14, %v372_v34  ;;  %v605_v43 = vadd.f32 %v603_v15, %v597_v35 }
 0x114   : > { %v399_v44 = vcombine.high %v397_v36, %v397_v36  ;;  %v413_v45 = vrot.slane %v397_v36, %v2990_v19  ;;  %v420_v46 = vrot.slane %v398_v37, %v2990_v19  ;;  %v428_v47 = vcombine.high %v406_v38, %v406_v38  ;;  %498 = vst.msk [vmem:[%s3004_s15] sm:$0x1] %vm497_vm1, %v406_v38 }
 0x115   : > { %v624_v48 = vcombine.high %v622_v39, %v622_v39  ;;  %v638_v49 = vrot.slane %v622_v39, %v2990_v19  ;;  %v645_v50 = vrot.slane %v623_v40, %v2990_v19  ;;  %v653_v51 = vcombine.high %v631_v41, %v631_v41  ;;  %722 = vst.msk [vmem:[%s3004_s15 + $0x1] sm:$0x1] %vm497_vm1, %v631_v41 }
 0x116   : > { %v427_v52 = vrot.slane %v399_v44, %v2990_v19  ;;  %v429_v53 = vcombine.high %v413_v45, %v413_v45  ;;  %v430_v54 = vcombine.high %v420_v46, %v420_v46  ;;  %499 = vst.msk [vmem:[%s3004_s15 + $0x8] sm:$0x1] %vm497_vm1, %v420_v46  ;;  %500 = vst.msk [vmem:[%s3004_s15 + $0x10] sm:$0x1] %vm497_vm1, %v428_v47  ;;  %v1050_v28 = vsub.s32 3, %v2972_v3 }
 0x117   : > { %502 = vst.msk [vmem:[%s3004_s15 + $0x20] sm:$0x1] %vm497_vm1, %v413_v45  ;;  %v432_v55 = vcombine.high %v380_v42, %v380_v42  ;;  %v652_v56 = vrot.slane %v624_v48, %v2990_v19  ;;  %v654_v57 = vcombine.high %v638_v49, %v638_v49  ;;  %v655_v58 = vcombine.high %v645_v50, %v645_v50 }
 0x118   : > { %723 = vst.msk [vmem:[%s3004_s15 + $0x9] sm:$0x1] %vm497_vm1, %v645_v50  ;;  %724 = vst.msk [vmem:[%s3004_s15 + $0x11] sm:$0x1] %vm497_vm1, %v653_v51  ;;  %v439_v59 = vrot.slane %v380_v42, %v2990_v19  ;;  %v431_v60 = vcombine.high %v427_v52, %v427_v52  ;;  %v657_v62 = vcombine.high %v605_v43, %v605_v43 }
 0x119   : > { %726 = vst.msk [vmem:[%s3004_s15 + $0x21] sm:$0x1] %vm497_vm1, %v638_v49  ;;  %501 = vst.msk [vmem:[%s3004_s15 + $0x18] sm:$0x1] %vm497_vm1, %v430_v54  ;;  %v446_v61 = vrot.slane %v432_v55, %v2990_v19  ;;  %v664_v63 = vrot.slane %v605_v43, %v2990_v19  ;;  %v656_v0 = vcombine.high %v652_v56, %v652_v56 }
 0x11a   : > { %503 = vst.msk [vmem:[%s3004_s15 + $0x28] sm:$0x1] %vm497_vm1, %v427_v52  ;;  %504 = vst.msk [vmem:[%s3004_s15 + $0x30] sm:$0x1] %vm497_vm1, %v429_v53  ;;  %v447_v1 = vcombine.high %v439_v59, %v439_v59  ;;  %v455_v2 = vrot.slane %v439_v59, %v2990_v19  ;;  %v671_v6 = vrot.slane %v657_v62, %v2990_v19 }
 0x11b   : > { %725 = vst.msk [vmem:[%s3004_s15 + $0x19] sm:$0x1] %vm497_vm1, %v655_v58  ;;  %727 = vst.msk [vmem:[%s3004_s15 + $0x29] sm:$0x1] %vm497_vm1, %v652_v56  ;;  %v448_v4 = vcombine.high %v446_v61, %v446_v61  ;;  %v462_v5 = vrot.slane %v446_v61, %v2990_v19  ;;  %v672_v7 = vcombine.high %v664_v63, %v664_v63 }
 0x11c   : > { %728 = vst.msk [vmem:[%s3004_s15 + $0x31] sm:$0x1] %vm497_vm1, %v654_v57  ;;  %505 = vst.msk [vmem:[%s3004_s15 + $0x38] sm:$0x1] %vm497_vm1, %v431_v60  ;;  %v469_v8 = vrot.slane %v447_v1, %v2990_v19  ;;  %v477_v9 = vcombine.high %v455_v2, %v455_v2  ;;  %v680_v10 = vrot.slane %v664_v63, %v2990_v19 }
 0x11d   : > { %729 = vst.msk [vmem:[%s3004_s15 + $0x39] sm:$0x1] %vm497_vm1, %v656_v0  ;;  %506 = vst.msk [vmem:[%s3004_s15 + $0x40] sm:$0x1] %vm497_vm1, %v455_v2  ;;  %v476_v12 = vrot.slane %v448_v4, %v2990_v19  ;;  %v478_v14 = vcombine.high %v462_v5, %v462_v5  ;;  %v673_v15 = vcombine.high %v671_v6, %v671_v6 }
 0x11e   : > { %510 = vst.msk [vmem:[%s3004_s15 + $0x60] sm:$0x1] %vm497_vm1, %v462_v5  ;;  %v687_v16 = vrot.slane %v671_v6, %v2990_v19  ;;  %v479_v17 = vcombine.high %v469_v8, %v469_v8  ;;  %507 = vst.msk [vmem:[%s3004_s15 + $0x48] sm:$0x1] %vm497_vm1, %v469_v8  ;;  %v694_v18 = vrot.slane %v672_v7, %v2990_v19 }
 0x11f   : > { %508 = vst.msk [vmem:[%s3004_s15 + $0x50] sm:$0x1] %vm497_vm1, %v477_v9  ;;  %v702_v20 = vcombine.high %v680_v10, %v680_v10  ;;  %730 = vst.msk [vmem:[%s3004_s15 + $0x41] sm:$0x1] %vm497_vm1, %v680_v10  ;;  %v480_v21 = vcombine.high %v476_v12, %v476_v12  ;;  %v701_v22 = vrot.slane %v673_v15, %v2990_v19 }
 0x120   : > { %511 = vst.msk [vmem:[%s3004_s15 + $0x68] sm:$0x1] %vm497_vm1, %v476_v12  ;;  %512 = vst.msk [vmem:[%s3004_s15 + $0x70] sm:$0x1] %vm497_vm1, %v478_v14  ;;  %v703_v23 = vcombine.high %v687_v16, %v687_v16  ;;  %v704_v24 = vcombine.high %v694_v18, %v694_v18  ;;  %v827_v29 = vrot.slane %v2979_v11, %v826_v27 }
 0x121   : > { %734 = vst.msk [vmem:[%s3004_s15 + $0x61] sm:$0x1] %vm497_vm1, %v687_v16  ;;  %509 = vst.msk [vmem:[%s3004_s15 + $0x58] sm:$0x1] %vm497_vm1, %v479_v17  ;;  %v705_v26 = vcombine.high %v701_v22, %v701_v22  ;;  %v1051_v30 = vrot.slane %v2979_v11, %v1050_v28 }
 0x122   : > { %731 = vst.msk [vmem:[%s3004_s15 + $0x49] sm:$0x1] %vm497_vm1, %v694_v18  ;;  %732 = vst.msk [vmem:[%s3004_s15 + $0x51] sm:$0x1] %vm497_vm1, %v702_v20 }
 0x123   : > { %513 = vst.msk [vmem:[%s3004_s15 + $0x78] sm:$0x1] %vm497_vm1, %v480_v21  ;;  %735 = vst.msk [vmem:[%s3004_s15 + $0x69] sm:$0x1] %vm497_vm1, %v701_v22 }
 0x124   : > { %736 = vst.msk [vmem:[%s3004_s15 + $0x71] sm:$0x1] %vm497_vm1, %v703_v23  ;;  %733 = vst.msk [vmem:[%s3004_s15 + $0x59] sm:$0x1] %vm497_vm1, %v704_v24 }
 0x125   : > { %737 = vst.msk [vmem:[%s3004_s15 + $0x79] sm:$0x1] %vm497_vm1, %v705_v26 }
 0x13b   : > { %v815_v31 = vpop.f32.mrb[4].mxu0  ;;  %v1039_v32 = vpop.f32.mrb[4].mxu1 }
 0x13c   : > { %v816_v33 = vadd.f32 %v815_v31, %v2984_v13  ;;  %v1040_v34 = vadd.f32 %v1039_v32, %v2984_v13  ;;  %v817_v35 = vpop.f32.mrb[5].mxu0  ;;  %v1041_v36 = vpop.f32.mrb[5].mxu1 }
 0x13e   : > { %v828_v37 = vadd.f32 %v827_v29, %v816_v33  ;;  %v1052_v38 = vadd.f32 %v1051_v30, %v1040_v34 }
 0x13f   : > { %v820_v39 = vpop.f32.mrb[6].mxu0  ;;  %v1044_v40 = vpop.f32.mrb[6].mxu1 }
 0x140   : > { %v832_v41 = vcombine.high %v828_v37, %v828_v37  ;;  %v839_v42 = vrot.slane %v828_v37, %v2990_v19  ;;  %v1056_v43 = vcombine.high %v1052_v38, %v1052_v38  ;;  %v1063_v44 = vrot.slane %v1052_v38, %v2990_v19  ;;  %v822_v45 = vpop.f32.mrb[7].mxu0  ;;  %v1046_v46 = vpop.f32.mrb[7].mxu1 }
 0x141   : > { %v821_v47 = vadd.f32 %v820_v39, %v2997_v25  ;;  %v1045_v48 = vadd.f32 %v1044_v40, %v2997_v25  ;;  %v1274_v40 = vsub.s32 4, %v2972_v3 }
 0x142   : > { %v846_v49 = vrot.slane %v832_v41, %v2990_v19  ;;  %v847_v50 = vcombine.high %v839_v42, %v839_v42  ;;  %v855_v51 = vrot.slane %v839_v42, %v2990_v19  ;;  %v1070_v52 = vrot.slane %v1056_v43, %v2990_v19 }
 0x143   : > { %v1071_v53 = vcombine.high %v1063_v44, %v1063_v44  ;;  %v1079_v54 = vrot.slane %v1063_v44, %v2990_v19  ;;  %v829_v55 = vadd.f32 %v827_v29, %v821_v47  ;;  %v1053_v56 = vadd.f32 %v1051_v30, %v1045_v48 }
 0x144   : > { %v848_v57 = vcombine.high %v846_v49, %v846_v49  ;;  %v862_v58 = vrot.slane %v846_v49, %v2990_v19  ;;  %v869_v59 = vrot.slane %v847_v50, %v2990_v19  ;;  %v877_v60 = vcombine.high %v855_v51, %v855_v51  ;;  %946 = vst.msk [vmem:[%s3004_s15 + $0x2] sm:$0x1] %vm497_vm1, %v855_v51 }
 0x145   : > { %v1072_v61 = vcombine.high %v1070_v52, %v1070_v52  ;;  %v1086_v62 = vrot.slane %v1070_v52, %v2990_v19  ;;  %v1093_v63 = vrot.slane %v1071_v53, %v2990_v19  ;;  %v1101_v0 = vcombine.high %v1079_v54, %v1079_v54  ;;  %1170 = vst.msk [vmem:[%s3004_s15 + $0x3] sm:$0x1] %vm497_vm1, %v1079_v54 }
 0x146   : > { %v876_v1 = vrot.slane %v848_v57, %v2990_v19  ;;  %v878_v2 = vcombine.high %v862_v58, %v862_v58  ;;  %v879_v4 = vcombine.high %v869_v59, %v869_v59  ;;  %947 = vst.msk [vmem:[%s3004_s15 + $0xa] sm:$0x1] %vm497_vm1, %v869_v59  ;;  %948 = vst.msk [vmem:[%s3004_s15 + $0x12] sm:$0x1] %vm497_vm1, %v877_v60  ;;  %v1498_v41 = vsub.s32 5, %v2972_v3 }
 0x147   : > { %950 = vst.msk [vmem:[%s3004_s15 + $0x22] sm:$0x1] %vm497_vm1, %v862_v58  ;;  %v881_v5 = vcombine.high %v829_v55, %v829_v55  ;;  %v1100_v6 = vrot.slane %v1072_v61, %v2990_v19  ;;  %v1102_v7 = vcombine.high %v1086_v62, %v1086_v62  ;;  %v1103_v8 = vcombine.high %v1093_v63, %v1093_v63 }
 0x148   : > { %1171 = vst.msk [vmem:[%s3004_s15 + $0xb] sm:$0x1] %vm497_vm1, %v1093_v63  ;;  %1172 = vst.msk [vmem:[%s3004_s15 + $0x13] sm:$0x1] %vm497_vm1, %v1101_v0  ;;  %v888_v9 = vrot.slane %v829_v55, %v2990_v19  ;;  %v880_v10 = vcombine.high %v876_v1, %v876_v1  ;;  %v1105_v14 = vcombine.high %v1053_v56, %v1053_v56 }
 0x149   : > { %1174 = vst.msk [vmem:[%s3004_s15 + $0x23] sm:$0x1] %vm497_vm1, %v1086_v62  ;;  %949 = vst.msk [vmem:[%s3004_s15 + $0x1a] sm:$0x1] %vm497_vm1, %v879_v4  ;;  %v895_v12 = vrot.slane %v881_v5, %v2990_v19  ;;  %v1112_v15 = vrot.slane %v1053_v56, %v2990_v19  ;;  %v1104_v16 = vcombine.high %v1100_v6, %v1100_v6 }
 0x14a   : > { %951 = vst.msk [vmem:[%s3004_s15 + $0x2a] sm:$0x1] %vm497_vm1, %v876_v1  ;;  %952 = vst.msk [vmem:[%s3004_s15 + $0x32] sm:$0x1] %vm497_vm1, %v878_v2  ;;  %v896_v17 = vcombine.high %v888_v9, %v888_v9  ;;  %v904_v18 = vrot.slane %v888_v9, %v2990_v19  ;;  %v1119_v22 = vrot.slane %v1105_v14, %v2990_v19 }
 0x14b   : > { %1173 = vst.msk [vmem:[%s3004_s15 + $0x1b] sm:$0x1] %vm497_vm1, %v1103_v8  ;;  %1175 = vst.msk [vmem:[%s3004_s15 + $0x2b] sm:$0x1] %vm497_vm1, %v1100_v6  ;;  %v897_v20 = vcombine.high %v895_v12, %v895_v12  ;;  %v911_v21 = vrot.slane %v895_v12, %v2990_v19  ;;  %v1120_v23 = vcombine.high %v1112_v15, %v1112_v15 }
 0x14c   : > { %1176 = vst.msk [vmem:[%s3004_s15 + $0x33] sm:$0x1] %vm497_vm1, %v1102_v7  ;;  %953 = vst.msk [vmem:[%s3004_s15 + $0x3a] sm:$0x1] %vm497_vm1, %v880_v10  ;;  %v918_v24 = vrot.slane %v896_v17, %v2990_v19  ;;  %v926_v26 = vcombine.high %v904_v18, %v904_v18  ;;  %v1128_v27 = vrot.slane %v1112_v15, %v2990_v19 }
 0x14d   : > { %1177 = vst.msk [vmem:[%s3004_s15 + $0x3b] sm:$0x1] %vm497_vm1, %v1104_v16  ;;  %954 = vst.msk [vmem:[%s3004_s15 + $0x42] sm:$0x1] %vm497_vm1, %v904_v18  ;;  %v925_v28 = vrot.slane %v897_v20, %v2990_v19  ;;  %v927_v29 = vcombine.high %v911_v21, %v911_v21  ;;  %v1121_v30 = vcombine.high %v1119_v22, %v1119_v22 }
 0x14e   : > { %958 = vst.msk [vmem:[%s3004_s15 + $0x62] sm:$0x1] %vm497_vm1, %v911_v21  ;;  %v1135_v31 = vrot.slane %v1119_v22, %v2990_v19  ;;  %v928_v32 = vcombine.high %v918_v24, %v918_v24  ;;  %955 = vst.msk [vmem:[%s3004_s15 + $0x4a] sm:$0x1] %vm497_vm1, %v918_v24  ;;  %v1142_v33 = vrot.slane %v1120_v23, %v2990_v19 }
 0x14f   : > { %956 = vst.msk [vmem:[%s3004_s15 + $0x52] sm:$0x1] %vm497_vm1, %v926_v26  ;;  %v1150_v34 = vcombine.high %v1128_v27, %v1128_v27  ;;  %1178 = vst.msk [vmem:[%s3004_s15 + $0x43] sm:$0x1] %vm497_vm1, %v1128_v27  ;;  %v929_v35 = vcombine.high %v925_v28, %v925_v28  ;;  %v1149_v36 = vrot.slane %v1121_v30, %v2990_v19 }
 0x150   : > { %959 = vst.msk [vmem:[%s3004_s15 + $0x6a] sm:$0x1] %vm497_vm1, %v925_v28  ;;  %960 = vst.msk [vmem:[%s3004_s15 + $0x72] sm:$0x1] %vm497_vm1, %v927_v29  ;;  %v1151_v37 = vcombine.high %v1135_v31, %v1135_v31  ;;  %v1152_v38 = vcombine.high %v1142_v33, %v1142_v33  ;;  %v1275_v42 = vrot.slane %v2979_v11, %v1274_v40 }
 0x151   : > { %1182 = vst.msk [vmem:[%s3004_s15 + $0x63] sm:$0x1] %vm497_vm1, %v1135_v31  ;;  %957 = vst.msk [vmem:[%s3004_s15 + $0x5a] sm:$0x1] %vm497_vm1, %v928_v32  ;;  %v1153_v39 = vcombine.high %v1149_v36, %v1149_v36  ;;  %v1499_v43 = vrot.slane %v2979_v11, %v1498_v41 }
 0x152   : > { %1179 = vst.msk [vmem:[%s3004_s15 + $0x4b] sm:$0x1] %vm497_vm1, %v1142_v33  ;;  %1180 = vst.msk [vmem:[%s3004_s15 + $0x53] sm:$0x1] %vm497_vm1, %v1150_v34 }
 0x153   : > { %961 = vst.msk [vmem:[%s3004_s15 + $0x7a] sm:$0x1] %vm497_vm1, %v929_v35  ;;  %1183 = vst.msk [vmem:[%s3004_s15 + $0x6b] sm:$0x1] %vm497_vm1, %v1149_v36 }
 0x154   : > { %1184 = vst.msk [vmem:[%s3004_s15 + $0x73] sm:$0x1] %vm497_vm1, %v1151_v37  ;;  %1181 = vst.msk [vmem:[%s3004_s15 + $0x5b] sm:$0x1] %vm497_vm1, %v1152_v38 }
 0x155   : > { %1185 = vst.msk [vmem:[%s3004_s15 + $0x7b] sm:$0x1] %vm497_vm1, %v1153_v39 }
 0x16b   : > { %v1263_v44 = vpop.f32.mrb[8].mxu0  ;;  %v1487_v45 = vpop.f32.mrb[8].mxu1 }
 0x16c   : > { %v1264_v46 = vadd.f32 %v1263_v44, %v2984_v13  ;;  %v1488_v47 = vadd.f32 %v1487_v45, %v2984_v13  ;;  %v1265_v48 = vpop.f32.mrb[9].mxu0  ;;  %v1489_v49 = vpop.f32.mrb[9].mxu1 }
 0x16e   : > { %v1276_v50 = vadd.f32 %v1275_v42, %v1264_v46  ;;  %v1500_v51 = vadd.f32 %v1499_v43, %v1488_v47 }
 0x16f   : > { %v1268_v52 = vpop.f32.mrb[10].mxu0  ;;  %v1492_v53 = vpop.f32.mrb[10].mxu1 }
 0x170   : > { %v1280_v54 = vcombine.high %v1276_v50, %v1276_v50  ;;  %v1287_v55 = vrot.slane %v1276_v50, %v2990_v19  ;;  %v1504_v56 = vcombine.high %v1500_v51, %v1500_v51  ;;  %v1511_v57 = vrot.slane %v1500_v51, %v2990_v19  ;;  %v1270_v58 = vpop.f32.mrb[11].mxu0  ;;  %v1494_v59 = vpop.f32.mrb[11].mxu1 }
 0x171   : > { %v1269_v60 = vadd.f32 %v1268_v52, %v2997_v25  ;;  %v1493_v61 = vadd.f32 %v1492_v53, %v2997_v25  ;;  %v1722_v53 = vsub.s32 6, %v2972_v3 }
 0x172   : > { %v1294_v62 = vrot.slane %v1280_v54, %v2990_v19  ;;  %v1295_v63 = vcombine.high %v1287_v55, %v1287_v55  ;;  %v1303_v0 = vrot.slane %v1287_v55, %v2990_v19  ;;  %v1518_v1 = vrot.slane %v1504_v56, %v2990_v19 }
 0x173   : > { %v1519_v2 = vcombine.high %v1511_v57, %v1511_v57  ;;  %v1527_v4 = vrot.slane %v1511_v57, %v2990_v19  ;;  %v1277_v5 = vadd.f32 %v1275_v42, %v1269_v60  ;;  %v1501_v6 = vadd.f32 %v1499_v43, %v1493_v61 }
 0x174   : > { %v1296_v7 = vcombine.high %v1294_v62, %v1294_v62  ;;  %v1310_v8 = vrot.slane %v1294_v62, %v2990_v19  ;;  %v1317_v9 = vrot.slane %v1295_v63, %v2990_v19  ;;  %v1325_v10 = vcombine.high %v1303_v0, %v1303_v0  ;;  %1394 = vst.msk [vmem:[%s3004_s15 + $0x4] sm:$0x1] %vm497_vm1, %v1303_v0 }
 0x175   : > { %v1520_v12 = vcombine.high %v1518_v1, %v1518_v1  ;;  %v1534_v14 = vrot.slane %v1518_v1, %v2990_v19  ;;  %v1541_v15 = vrot.slane %v1519_v2, %v2990_v19  ;;  %v1549_v16 = vcombine.high %v1527_v4, %v1527_v4  ;;  %1618 = vst.msk [vmem:[%s3004_s15 + $0x5] sm:$0x1] %vm497_vm1, %v1527_v4 }
 0x176   : > { %v1324_v17 = vrot.slane %v1296_v7, %v2990_v19  ;;  %v1326_v18 = vcombine.high %v1310_v8, %v1310_v8  ;;  %v1327_v20 = vcombine.high %v1317_v9, %v1317_v9  ;;  %1395 = vst.msk [vmem:[%s3004_s15 + $0xc] sm:$0x1] %vm497_vm1, %v1317_v9  ;;  %1396 = vst.msk [vmem:[%s3004_s15 + $0x14] sm:$0x1] %vm497_vm1, %v1325_v10  ;;  %v1946_v54 = vsub.s32 7, %v2972_v3 }
 0x177   : > { %1398 = vst.msk [vmem:[%s3004_s15 + $0x24] sm:$0x1] %vm497_vm1, %v1310_v8  ;;  %v1329_v21 = vcombine.high %v1277_v5, %v1277_v5  ;;  %v1548_v22 = vrot.slane %v1520_v12, %v2990_v19  ;;  %v1550_v23 = vcombine.high %v1534_v14, %v1534_v14  ;;  %v1551_v24 = vcombine.high %v1541_v15, %v1541_v15 }
 0x178   : > { %1619 = vst.msk [vmem:[%s3004_s15 + $0xd] sm:$0x1] %vm497_vm1, %v1541_v15  ;;  %1620 = vst.msk [vmem:[%s3004_s15 + $0x15] sm:$0x1] %vm497_vm1, %v1549_v16  ;;  %v1336_v26 = vrot.slane %v1277_v5, %v2990_v19  ;;  %v1328_v27 = vcombine.high %v1324_v17, %v1324_v17  ;;  %v1553_v29 = vcombine.high %v1501_v6, %v1501_v6 }
 0x179   : > { %1622 = vst.msk [vmem:[%s3004_s15 + $0x25] sm:$0x1] %vm497_vm1, %v1534_v14  ;;  %1397 = vst.msk [vmem:[%s3004_s15 + $0x1c] sm:$0x1] %vm497_vm1, %v1327_v20  ;;  %v1343_v28 = vrot.slane %v1329_v21, %v2990_v19  ;;  %v1560_v30 = vrot.slane %v1501_v6, %v2990_v19  ;;  %v1552_v31 = vcombine.high %v1548_v22, %v1548_v22 }
 0x17a   : > { %1399 = vst.msk [vmem:[%s3004_s15 + $0x2c] sm:$0x1] %vm497_vm1, %v1324_v17  ;;  %1400 = vst.msk [vmem:[%s3004_s15 + $0x34] sm:$0x1] %vm497_vm1, %v1326_v18  ;;  %v1344_v32 = vcombine.high %v1336_v26, %v1336_v26  ;;  %v1352_v33 = vrot.slane %v1336_v26, %v2990_v19  ;;  %v1567_v36 = vrot.slane %v1553_v29, %v2990_v19 }
 0x17b   : > { %1621 = vst.msk [vmem:[%s3004_s15 + $0x1d] sm:$0x1] %vm497_vm1, %v1551_v24  ;;  %1623 = vst.msk [vmem:[%s3004_s15 + $0x2d] sm:$0x1] %vm497_vm1, %v1548_v22  ;;  %v1345_v34 = vcombine.high %v1343_v28, %v1343_v28  ;;  %v1359_v35 = vrot.slane %v1343_v28, %v2990_v19  ;;  %v1568_v37 = vcombine.high %v1560_v30, %v1560_v30 }
 0x17c   : > { %1624 = vst.msk [vmem:[%s3004_s15 + $0x35] sm:$0x1] %vm497_vm1, %v1550_v23  ;;  %1401 = vst.msk [vmem:[%s3004_s15 + $0x3c] sm:$0x1] %vm497_vm1, %v1328_v27  ;;  %v1366_v38 = vrot.slane %v1344_v32, %v2990_v19  ;;  %v1374_v39 = vcombine.high %v1352_v33, %v1352_v33  ;;  %v1576_v40 = vrot.slane %v1560_v30, %v2990_v19 }
 0x17d   : > { %1625 = vst.msk [vmem:[%s3004_s15 + $0x3d] sm:$0x1] %vm497_vm1, %v1552_v31  ;;  %1402 = vst.msk [vmem:[%s3004_s15 + $0x44] sm:$0x1] %vm497_vm1, %v1352_v33  ;;  %v1373_v41 = vrot.slane %v1345_v34, %v2990_v19  ;;  %v1375_v42 = vcombine.high %v1359_v35, %v1359_v35  ;;  %v1569_v43 = vcombine.high %v1567_v36, %v1567_v36 }
 0x17e   : > { %1406 = vst.msk [vmem:[%s3004_s15 + $0x64] sm:$0x1] %vm497_vm1, %v1359_v35  ;;  %v1583_v44 = vrot.slane %v1567_v36, %v2990_v19  ;;  %v1376_v45 = vcombine.high %v1366_v38, %v1366_v38  ;;  %1403 = vst.msk [vmem:[%s3004_s15 + $0x4c] sm:$0x1] %vm497_vm1, %v1366_v38  ;;  %v1590_v46 = vrot.slane %v1568_v37, %v2990_v19 }
 0x17f   : > { %1404 = vst.msk [vmem:[%s3004_s15 + $0x54] sm:$0x1] %vm497_vm1, %v1374_v39  ;;  %v1598_v47 = vcombine.high %v1576_v40, %v1576_v40  ;;  %1626 = vst.msk [vmem:[%s3004_s15 + $0x45] sm:$0x1] %vm497_vm1, %v1576_v40  ;;  %v1377_v48 = vcombine.high %v1373_v41, %v1373_v41  ;;  %v1597_v49 = vrot.slane %v1569_v43, %v2990_v19 }
 0x180   : > { %1407 = vst.msk [vmem:[%s3004_s15 + $0x6c] sm:$0x1] %vm497_vm1, %v1373_v41  ;;  %1408 = vst.msk [vmem:[%s3004_s15 + $0x74] sm:$0x1] %vm497_vm1, %v1375_v42  ;;  %v1599_v50 = vcombine.high %v1583_v44, %v1583_v44  ;;  %v1600_v51 = vcombine.high %v1590_v46, %v1590_v46  ;;  %v1723_v55 = vrot.slane %v2979_v11, %v1722_v53 }
 0x181   : > { %1630 = vst.msk [vmem:[%s3004_s15 + $0x65] sm:$0x1] %vm497_vm1, %v1583_v44  ;;  %1405 = vst.msk [vmem:[%s3004_s15 + $0x5c] sm:$0x1] %vm497_vm1, %v1376_v45  ;;  %v1601_v52 = vcombine.high %v1597_v49, %v1597_v49  ;;  %v1947_v56 = vrot.slane %v2979_v11, %v1946_v54 }
 0x182   : > { %1627 = vst.msk [vmem:[%s3004_s15 + $0x4d] sm:$0x1] %vm497_vm1, %v1590_v46  ;;  %1628 = vst.msk [vmem:[%s3004_s15 + $0x55] sm:$0x1] %vm497_vm1, %v1598_v47 }
 0x183   : > { %1409 = vst.msk [vmem:[%s3004_s15 + $0x7c] sm:$0x1] %vm497_vm1, %v1377_v48  ;;  %1631 = vst.msk [vmem:[%s3004_s15 + $0x6d] sm:$0x1] %vm497_vm1, %v1597_v49 }
 0x184   : > { %1632 = vst.msk [vmem:[%s3004_s15 + $0x75] sm:$0x1] %vm497_vm1, %v1599_v50  ;;  %1629 = vst.msk [vmem:[%s3004_s15 + $0x5d] sm:$0x1] %vm497_vm1, %v1600_v51 }
 0x185   : > { %1633 = vst.msk [vmem:[%s3004_s15 + $0x7d] sm:$0x1] %vm497_vm1, %v1601_v52 }
 0x19b   : > { %v1711_v57 = vpop.f32.mrb[12].mxu0  ;;  %v1935_v58 = vpop.f32.mrb[12].mxu1 }
 0x19c   : > { %v1712_v59 = vadd.f32 %v1711_v57, %v2984_v13  ;;  %v1936_v60 = vadd.f32 %v1935_v58, %v2984_v13  ;;  %v1713_v61 = vpop.f32.mrb[13].mxu0  ;;  %v1937_v62 = vpop.f32.mrb[13].mxu1 }
 0x19e   : > { %v1724_v63 = vadd.f32 %v1723_v55, %v1712_v59  ;;  %v1948_v0 = vadd.f32 %v1947_v56, %v1936_v60 }
 0x19f   : > { %v1716_v1 = vpop.f32.mrb[14].mxu0  ;;  %v1940_v2 = vpop.f32.mrb[14].mxu1 }
 0x1a0   : > { %v1728_v4 = vcombine.high %v1724_v63, %v1724_v63  ;;  %v1735_v5 = vrot.slane %v1724_v63, %v2990_v19  ;;  %v1952_v3 = vcombine.high %v1948_v0, %v1948_v0  ;;  %v1959_v6 = vrot.slane %v1948_v0, %v2990_v19  ;;  %v1718_v7 = vpop.f32.mrb[15].mxu0  ;;  %v1942_v11 = vpop.f32.mrb[15].mxu1 }
 0x1a1   : > { %v1717_v8 = vadd.f32 %v1716_v1, %v2997_v25  ;;  %v1941_v9 = vadd.f32 %v1940_v2, %v2997_v25 }
 0x1a2   : > { %v1742_v13 = vrot.slane %v1728_v4, %v2990_v19  ;;  %v1743_v10 = vcombine.high %v1735_v5, %v1735_v5  ;;  %v1751_v12 = vrot.slane %v1735_v5, %v2990_v19  ;;  %v1966_v14 = vrot.slane %v1952_v3, %v2990_v19 }
 0x1a3   : > { %v1967_v15 = vcombine.high %v1959_v6, %v1959_v6  ;;  %v1975_v16 = vrot.slane %v1959_v6, %v2990_v19  ;;  %v1725_v17 = vadd.f32 %v1723_v55, %v1717_v8  ;;  %v1949_v18 = vadd.f32 %v1947_v56, %v1941_v9 }
 0x1a4   : > { %v1744_v20 = vcombine.high %v1742_v13, %v1742_v13  ;;  %v1758_v21 = vrot.slane %v1742_v13, %v2990_v19  ;;  %v1765_v25 = vrot.slane %v1743_v10, %v2990_v19  ;;  %v1773_v22 = vcombine.high %v1751_v12, %v1751_v12  ;;  %1842 = vst.msk [vmem:[%s3004_s15 + $0x6] sm:$0x1] %vm497_vm1, %v1751_v12 }
 0x1a5   : > { %v1968_v23 = vcombine.high %v1966_v14, %v1966_v14  ;;  %v1982_v24 = vrot.slane %v1966_v14, %v2990_v19  ;;  %v1989_v26 = vrot.slane %v1967_v15, %v2990_v19  ;;  %v1997_v27 = vcombine.high %v1975_v16, %v1975_v16  ;;  %2066 = vst.msk [vmem:[%s3004_s15 + $0x7] sm:$0x1] %vm497_vm1, %v1975_v16 }
 0x1a6   : > { %v1772_v28 = vrot.slane %v1744_v20, %v2990_v19  ;;  %v1774_v29 = vcombine.high %v1758_v21, %v1758_v21  ;;  %v1775_v30 = vcombine.high %v1765_v25, %v1765_v25  ;;  %1843 = vst.msk [vmem:[%s3004_s15 + $0xe] sm:$0x1] %vm497_vm1, %v1765_v25  ;;  %1844 = vst.msk [vmem:[%s3004_s15 + $0x16] sm:$0x1] %vm497_vm1, %v1773_v22 }
 0x1a7   : > { %1846 = vst.msk [vmem:[%s3004_s15 + $0x26] sm:$0x1] %vm497_vm1, %v1758_v21  ;;  %v1777_v31 = vcombine.high %v1725_v17, %v1725_v17  ;;  %v1996_v32 = vrot.slane %v1968_v23, %v2990_v19  ;;  %v1998_v33 = vcombine.high %v1982_v24, %v1982_v24  ;;  %v1999_v34 = vcombine.high %v1989_v26, %v1989_v26 }
 0x1a8   : > { %2067 = vst.msk [vmem:[%s3004_s15 + $0xf] sm:$0x1] %vm497_vm1, %v1989_v26  ;;  %2068 = vst.msk [vmem:[%s3004_s15 + $0x17] sm:$0x1] %vm497_vm1, %v1997_v27  ;;  %v1784_v35 = vrot.slane %v1725_v17, %v2990_v19  ;;  %v1776_v36 = vcombine.high %v1772_v28, %v1772_v28  ;;  %v2001_v38 = vcombine.high %v1949_v18, %v1949_v18 }
 0x1a9   : > { %2070 = vst.msk [vmem:[%s3004_s15 + $0x27] sm:$0x1] %vm497_vm1, %v1982_v24  ;;  %1845 = vst.msk [vmem:[%s3004_s15 + $0x1e] sm:$0x1] %vm497_vm1, %v1775_v30  ;;  %v1791_v37 = vrot.slane %v1777_v31, %v2990_v19  ;;  %v2008_v39 = vrot.slane %v1949_v18, %v2990_v19  ;;  %v2000_v40 = vcombine.high %v1996_v32, %v1996_v32 }
 0x1aa   : > { %1847 = vst.msk [vmem:[%s3004_s15 + $0x2e] sm:$0x1] %vm497_vm1, %v1772_v28  ;;  %1848 = vst.msk [vmem:[%s3004_s15 + $0x36] sm:$0x1] %vm497_vm1, %v1774_v29  ;;  %v1792_v41 = vcombine.high %v1784_v35, %v1784_v35  ;;  %v1800_v42 = vrot.slane %v1784_v35, %v2990_v19  ;;  %v2015_v45 = vrot.slane %v2001_v38, %v2990_v19 }
 0x1ab   : > { %2069 = vst.msk [vmem:[%s3004_s15 + $0x1f] sm:$0x1] %vm497_vm1, %v1999_v34  ;;  %2071 = vst.msk [vmem:[%s3004_s15 + $0x2f] sm:$0x1] %vm497_vm1, %v1996_v32  ;;  %v1793_v43 = vcombine.high %v1791_v37, %v1791_v37  ;;  %v1807_v44 = vrot.slane %v1791_v37, %v2990_v19  ;;  %v2016_v46 = vcombine.high %v2008_v39, %v2008_v39 }
 0x1ac   : > { %2072 = vst.msk [vmem:[%s3004_s15 + $0x37] sm:$0x1] %vm497_vm1, %v1998_v33  ;;  %1849 = vst.msk [vmem:[%s3004_s15 + $0x3e] sm:$0x1] %vm497_vm1, %v1776_v36  ;;  %v1814_v47 = vrot.slane %v1792_v41, %v2990_v19  ;;  %v1822_v48 = vcombine.high %v1800_v42, %v1800_v42  ;;  %v2024_v49 = vrot.slane %v2008_v39, %v2990_v19 }
 0x1ad   : > { %2073 = vst.msk [vmem:[%s3004_s15 + $0x3f] sm:$0x1] %vm497_vm1, %v2000_v40  ;;  %1850 = vst.msk [vmem:[%s3004_s15 + $0x46] sm:$0x1] %vm497_vm1, %v1800_v42  ;;  %v1821_v50 = vrot.slane %v1793_v43, %v2990_v19  ;;  %v1823_v51 = vcombine.high %v1807_v44, %v1807_v44  ;;  %v2017_v52 = vcombine.high %v2015_v45, %v2015_v45 }
 0x1ae   : > { %1854 = vst.msk [vmem:[%s3004_s15 + $0x66] sm:$0x1] %vm497_vm1, %v1807_v44  ;;  %v2031_v53 = vrot.slane %v2015_v45, %v2990_v19  ;;  %v1824_v54 = vcombine.high %v1814_v47, %v1814_v47  ;;  %1851 = vst.msk [vmem:[%s3004_s15 + $0x4e] sm:$0x1] %vm497_vm1, %v1814_v47  ;;  %v2038_v55 = vrot.slane %v2016_v46, %v2990_v19 }
 0x1af   : > { %1852 = vst.msk [vmem:[%s3004_s15 + $0x56] sm:$0x1] %vm497_vm1, %v1822_v48  ;;  %v2046_v56 = vcombine.high %v2024_v49, %v2024_v49  ;;  %2074 = vst.msk [vmem:[%s3004_s15 + $0x47] sm:$0x1] %vm497_vm1, %v2024_v49  ;;  %v1825_v57 = vcombine.high %v1821_v50, %v1821_v50  ;;  %v2045_v58 = vrot.slane %v2017_v52, %v2990_v19 }
 0x1b0   : > { %1855 = vst.msk [vmem:[%s3004_s15 + $0x6e] sm:$0x1] %vm497_vm1, %v1821_v50  ;;  %1856 = vst.msk [vmem:[%s3004_s15 + $0x76] sm:$0x1] %vm497_vm1, %v1823_v51  ;;  %v2047_v59 = vcombine.high %v2031_v53, %v2031_v53  ;;  %v2048_v60 = vcombine.high %v2038_v55, %v2038_v55 }
 0x1b1   : > { %2078 = vst.msk [vmem:[%s3004_s15 + $0x67] sm:$0x1] %vm497_vm1, %v2031_v53  ;;  %1853 = vst.msk [vmem:[%s3004_s15 + $0x5e] sm:$0x1] %vm497_vm1, %v1824_v54  ;;  %v2049_v61 = vcombine.high %v2045_v58, %v2045_v58 }
 0x1b2   : > { %2075 = vst.msk [vmem:[%s3004_s15 + $0x4f] sm:$0x1] %vm497_vm1, %v2038_v55  ;;  %2076 = vst.msk [vmem:[%s3004_s15 + $0x57] sm:$0x1] %vm497_vm1, %v2046_v56 }
 0x1b3   : > { %1857 = vst.msk [vmem:[%s3004_s15 + $0x7e] sm:$0x1] %vm497_vm1, %v1825_v57  ;;  %2079 = vst.msk [vmem:[%s3004_s15 + $0x6f] sm:$0x1] %vm497_vm1, %v2045_v58 }
 0x1b4   : > { %2080 = vst.msk [vmem:[%s3004_s15 + $0x77] sm:$0x1] %vm497_vm1, %v2047_v59  ;;  %2077 = vst.msk [vmem:[%s3004_s15 + $0x5f] sm:$0x1] %vm497_vm1, %v2048_v60 }
 0x1b5   : > { %2081 = vst.msk [vmem:[%s3004_s15 + $0x7f] sm:$0x1] %vm497_vm1, %v2049_v61 }
 0x1b6 PF: > { %s14_s17 = sadd.s32 1, %s2581_s17   ;;  %s3396_s15 = smov %s2577_s16 }
 0x1b7   : > { %p11_p5 = scmp.ge.s32.totalorder %s14_s17, 4   ;;  %s3397_s16 = smov %s3399_s18 }
 0x1b9   :  { %13 = sbr.rel (!%p11_p5) target bundleno = 2 (0x2), region = 76 }

</bundles_post_ra>
